<compile_context>
chip_gen: v7x
topology: tpu7x:2x2x1
jax: 0.10.0
libtpu: 0.0.40
codegen_flags: <defaults>
</compile_context>

<pallas_src>
import numpy as np
import jax
import jax.numpy as jnp
from jax.experimental import pallas as pl
from jax.experimental.pallas import tpu as pltpu


VMEM_LIMIT = 64 * 1024 * 1024  # TODO(synk): re-derive per generation (v7x has 64 MiB physical VMEM).
SEQ_PAD_MULT = 8               # pad sequence to a multiple of this (128 for lane-dense v5e stores)


# ----------------------------------------------------------------------------
# helpers
# ----------------------------------------------------------------------------
def _round_up(x, m):
    return ((x + m - 1) // m) * m


def _tile_dim(dim, target, mult):
    """Pick (tile, padded_dim).

    The tile is either the full dim (always a legal block) or a multiple of
    `mult` (8 for sublane dims, 128 for lane dims).  If no decent divisor of
    `dim` exists, the dim is padded up so the grid divides exactly — this is
    what keeps S=257-style prime shapes from collapsing to 1-8 row MXU tiles.
    """
    if dim <= target:
        return dim, dim
    t = (target // mult) * mult
    tt = t
    best = 0
    while tt >= mult:
        if dim % tt == 0:
            best = tt
            break
        tt -= mult
    if best >= max(t // 4, mult):
        return best, dim
    return t, _round_up(dim, t)


def _pad1(v, n):
    return v if v.shape[0] == n else jnp.pad(v, (0, n - v.shape[0]))


def _pad2(a, m, n):
    M, N = a.shape
    if M == m and N == n:
        return a
    return jnp.pad(a, ((0, m - M), (0, n - N)))


def _head_groups(D, num_heads):
    """Group heads so each group's lane width is a multiple of 128 (or full D)."""
    Dh = D // num_heads
    for hpg in range(1, num_heads + 1):
        if num_heads % hpg:
            continue
        gw = hpg * Dh
        if gw % 128 == 0 or hpg == num_heads:
            return hpg, gw, num_heads // hpg
    return num_heads, D, 1


def bicubic_resize_matrix(in_size, out_size, a=-0.75):
    """PyTorch/kornia-compatible bicubic (align_corners=True) resize matrix."""
    R = np.zeros((out_size, in_size), dtype=np.float64)
    scale = 0.0 if out_size == 1 else (in_size - 1) / (out_size - 1)

    def cubic1(t):  # |t| <= 1
        return ((a + 2.0) * t - (a + 3.0)) * t * t + 1.0

    def cubic2(t):  # 1 < |t| < 2
        return ((a * t - 5.0 * a) * t + 8.0 * a) * t - 4.0 * a

    for i in range(out_size):
        src = i * scale
        x0 = int(np.floor(src))
        t = src - x0
        ws = [cubic2(t + 1.0), cubic1(t), cubic1(1.0 - t), cubic2(2.0 - t)]
        for k, wv in enumerate(ws):
            idx = min(max(x0 - 1 + k, 0), in_size - 1)
            R[i, idx] += wv
    return jnp.asarray(R, dtype=jnp.float32)


# ----------------------------------------------------------------------------
# Kernel: preprocess = bicubic resize (separable matmuls) + fused affine
#         normalize  ( ((x+1)/2 - mean)/std  ==  x*scale_c + bias_c )
#   width pass done for all channels in one matmul (stacked sublanes)
# ----------------------------------------------------------------------------
def preprocess(x, rh, rw, scale_c, bias_c):
    B, C, Hin, Win = x.shape
    Hout, Wout = rh.shape[0], rw.shape[0]

    def kernel(scale_ref, bias_ref, x_ref, rh_ref, rw_ref, o_ref):
        rhv = rh_ref[...]
        rwv = rw_ref[...]
        # width pass, all channels at once: (C*Hin, Win) contracted with rw
        x2 = x_ref[...].astype(jnp.float32).reshape(C * Hin, Win)
        xw = jax.lax.dot_general(x2, rwv, (((1,), (1,)), ((), ())),
                                 preferred_element_type=jnp.float32)  # (C*Hin, Wout)
        for c in range(C):                                            # static unroll, C=3
            y = jnp.dot(rhv, xw[c * Hin:(c + 1) * Hin, :],
                        preferred_element_type=jnp.float32)           # (Hout, Wout)
            o_ref[c] = y * scale_ref[c] + bias_ref[c]

    return pl.pallas_call(
        kernel,
        grid=(B,),
        in_specs=[
            pl.BlockSpec(memory_space=pltpu.MemorySpace.SMEM),   # scale_c (C,)
            pl.BlockSpec(memory_space=pltpu.MemorySpace.SMEM),   # bias_c  (C,)
            pl.BlockSpec((None, C, Hin, Win), lambda b: (b, 0, 0, 0)),
            pl.BlockSpec((Hout, Hin), lambda b: (0, 0)),
            pl.BlockSpec((Wout, Win), lambda b: (0, 0)),
        ],
        out_specs=pl.BlockSpec((None, C, Hout, Wout), lambda b: (b, 0, 0, 0)),
        out_shape=jax.ShapeDtypeStruct((B, C, Hout, Wout), jnp.float32),
        compiler_params=pltpu.CompilerParams(dimension_semantics=("parallel",)),
    )(scale_c, bias_c, x, rh, rw)


# ----------------------------------------------------------------------------
# Kernel: tiled matmul  (bf16 MXU operands, f32 VMEM accumulator,
#         bias + optional quick_gelu + optional fused residual add epilogue)
#   M/N/K padded to legal tile multiples when needed; result sliced back.
# ----------------------------------------------------------------------------
def tiled_linear(x, w, b=None, residual=None, activation=None,
                 out_dtype=jnp.float32,
                 tm_target=256, tn_target=256, tk_target=1024):
    M, K = x.shape
    N = w.shape[1]
    tm, Mp = _tile_dim(M, tm_target, 8)
    tn, Np = _tile_dim(N, tn_target, 128)
    tk, Kp = _tile_dim(K, tk_target, 128)
    nk = Kp // tk

    if b is None:
        b = jnp.zeros((N,), jnp.float32)
    xP = _pad2(x, Mp, Kp)
    wP = _pad2(w, Kp, Np)
    bP = _pad1(b.astype(jnp.float32), Np).reshape(1, Np)
    has_res = residual is not None
    cast_x = x.dtype != jnp.bfloat16

    def kernel(x_ref, w_ref, b_ref, *rest):
        if has_res:
            res_ref, o_ref, acc_ref = rest
        else:
            o_ref, acc_ref = rest
        k = pl.program_id(2)

        @pl.when(k == 0)
        def _():
            acc_ref[...] = jnp.zeros_like(acc_ref)

        xv = x_ref[...]
        if cast_x:
            xv = xv.astype(jnp.bfloat16)
        acc_ref[...] += jnp.dot(xv, w_ref[...],
                                preferred_element_type=jnp.float32)

        @pl.when(k == nk - 1)
        def _():
            y = acc_ref[...] + b_ref[...]
            if activation == "quick_gelu":
                y = y * jax.nn.sigmoid(1.702 * y)
            if has_res:
                y = y + res_ref[...].astype(jnp.float32)
            o_ref[...] = y.astype(o_ref.dtype)

    in_specs = [
        pl.BlockSpec((tm, tk), lambda i, j, k: (i, k)),
        pl.BlockSpec((tk, tn), lambda i, j, k: (k, j)),
        pl.BlockSpec((1, tn), lambda i, j, k: (0, j)),
    ]
    ins = [xP, wP, bP]
    if has_res:
        in_specs.append(pl.BlockSpec((tm, tn), lambda i, j, k: (i, j)))
        ins.append(_pad2(residual, Mp, Np))

    out = pl.pallas_call(
        kernel,
        grid=(Mp // tm, Np // tn, nk),
        in_specs=in_specs,
        out_specs=pl.BlockSpec((tm, tn), lambda i, j, k: (i, j)),
        out_shape=jax.ShapeDtypeStruct((Mp, Np), out_dtype),
        scratch_shapes=[pltpu.VMEM((tm, tn), jnp.float32)],
        compiler_params=pltpu.CompilerParams(
            dimension_semantics=("parallel", "parallel", "arbitrary"),
            vmem_limit_bytes=VMEM_LIMIT),
    )(*ins)
    if Mp != M or Np != N:
        out = out[:M, :N]
    return out


# ----------------------------------------------------------------------------
# Kernel: fused LayerNorm (f32) + matmul (bf16 MXU) + bias [+ quick_gelu]
#   LN of the (tm, D) row tile is computed ONCE per row tile (at j==0) into a
#   bf16 VMEM scratch and reused for every output-column tile.
# ----------------------------------------------------------------------------
def ln_linear(x, gamma, beta, w, b, activation=None, out_dtype=jnp.bfloat16,
              eps=1e-5, tm_target=256, tn_target=512):
    M, D = x.shape
    N = w.shape[1]
    tm, Mp = _tile_dim(M, tm_target, 8)
    tn, Np = _tile_dim(N, tn_target, 128)
    xP = _pad2(x, Mp, D)
    wP = _pad2(w, D, Np)
    bP = _pad1(b.astype(jnp.float32), Np).reshape(1, Np)
    g2 = gamma.reshape(1, D)
    be2 = beta.reshape(1, D)

    def kernel(x_ref, g_ref, be_ref, w_ref, b_ref, o_ref, xn_ref):
        @pl.when(pl.program_id(1) == 0)
        def _():
            xv = x_ref[...].astype(jnp.float32)
            mu = jnp.mean(xv, axis=-1, keepdims=True)
            xc = xv - mu
            var = jnp.mean(xc * xc, axis=-1, keepdims=True)
            xn_ref[...] = (xc * jax.lax.rsqrt(var + eps) * g_ref[...]
                           + be_ref[...]).astype(jnp.bfloat16)

        y = jnp.dot(xn_ref[...], w_ref[...],
                    preferred_element_type=jnp.float32) + b_ref[...]
        if activation == "quick_gelu":
            y = y * jax.nn.sigmoid(1.702 * y)
        o_ref[...] = y.astype(o_ref.dtype)

    out = pl.pallas_call(
        kernel,
        grid=(Mp // tm, Np // tn),
        in_specs=[
            pl.BlockSpec((tm, D), lambda i, j: (i, 0)),
            pl.BlockSpec((1, D), lambda i, j: (0, 0)),
            pl.BlockSpec((1, D), lambda i, j: (0, 0)),
            pl.BlockSpec((D, tn), lambda i, j: (0, j)),
            pl.BlockSpec((1, tn), lambda i, j: (0, j)),
        ],
        out_specs=pl.BlockSpec((tm, tn), lambda i, j: (i, j)),
        out_shape=jax.ShapeDtypeStruct((Mp, Np), out_dtype),
        scratch_shapes=[pltpu.VMEM((tm, D), jnp.bfloat16)],
        compiler_params=pltpu.CompilerParams(
            dimension_semantics=("parallel", "arbitrary"),
            vmem_limit_bytes=VMEM_LIMIT),
    )(xP, g2, be2, wP, bP)
    if Mp != M or Np != N:
        out = out[:M, :N]
    return out


# ----------------------------------------------------------------------------
# Kernel: embeddings pre-LayerNorm with the positional-embedding add fused in
#         (output is the f32 residual stream).
# ----------------------------------------------------------------------------
def embed_layernorm(h, pos, gamma, beta, eps=1e-5):
    B, S_pad, D = h.shape
    g2 = gamma.reshape(1, D)
    b2 = beta.reshape(1, D)

    def kernel(x_ref, p_ref, g_ref, b_ref, o_ref):
        xv = x_ref[...].astype(jnp.float32) + p_ref[...]
        mu = jnp.mean(xv, axis=-1, keepdims=True)
        xc = xv - mu
        var = jnp.mean(xc * xc, axis=-1, keepdims=True)
        o_ref[...] = (xc * jax.lax.rsqrt(var + eps) * g_ref[...]
                      + b_ref[...]).astype(o_ref.dtype)

    return pl.pallas_call(
        kernel,
        grid=(B,),
        in_specs=[
            pl.BlockSpec((None, S_pad, D), lambda b: (b, 0, 0)),
            pl.BlockSpec((S_pad, D), lambda b: (0, 0)),
            pl.BlockSpec((1, D), lambda b: (0, 0)),
            pl.BlockSpec((1, D), lambda b: (0, 0)),
        ],
        out_specs=pl.BlockSpec((None, S_pad, D), lambda b: (b, 0, 0)),
        out_shape=jax.ShapeDtypeStruct((B, S_pad, D), jnp.float32),
        compiler_params=pltpu.CompilerParams(dimension_semantics=("parallel",)),
    )(h, pos, g2, b2)


# ----------------------------------------------------------------------------
# Kernel: multi-head attention.
#   - bf16 Q/K/V, grid over (batch, head-group) -> both axes "parallel"
#     (uses the second v7x TensorCore; group lane width is a multiple of 128
#      when possible, so loads/stores are lane-dense)
#   - per-head outputs written directly into o_ref column slices (no concat)
#   - 1/sqrt(Dh) scale already folded into the Q projection weights
#   - padded key positions masked with -1e9; softmax in f32; EUP reciprocal
# ----------------------------------------------------------------------------
def attention(q, k, v, num_heads, s_valid):
    B, S_pad, D = q.shape
    Dh = D // num_heads
    hpg, gw, n_groups = _head_groups(D, num_heads)
    need_mask = s_valid < S_pad

    def kernel(q_ref, k_ref, v_ref, o_ref):
        if need_mask:
            col = jax.lax.broadcasted_iota(jnp.int32, (S_pad, S_pad), 1)
            neg = jnp.where(col < s_valid, jnp.float32(0.0), jnp.float32(-1e9))
        for hh in range(hpg):                     # static unroll inside group
            lo = hh * Dh
            qh = q_ref[:, lo:lo + Dh]             # bf16 (S_pad, Dh)
            kh = k_ref[:, lo:lo + Dh]
            vh = v_ref[:, lo:lo + Dh]
            s = jax.lax.dot_general(qh, kh, (((1,), (1,)), ((), ())),
                                    preferred_element_type=jnp.float32)
            if need_mask:
                s = s + neg
            s = s - jnp.max(s, axis=-1, keepdims=True)
            p = jnp.exp(s)
            p = p * pl.reciprocal(jnp.sum(p, axis=-1, keepdims=True),
                                  approx=True)
            o_ref[:, lo:lo + Dh] = jnp.dot(
                p.astype(jnp.bfloat16), vh,
                preferred_element_type=jnp.float32).astype(o_ref.dtype)

    spec = pl.BlockSpec((None, S_pad, gw), lambda b, g: (b, 0, g))
    return pl.pallas_call(
        kernel,
        grid=(B, n_groups),
        in_specs=[spec, spec, spec],
        out_specs=pl.BlockSpec((None, S_pad, gw), lambda b, g: (b, 0, g)),
        out_shape=jax.ShapeDtypeStruct((B, S_pad, D), jnp.bfloat16),
        compiler_params=pltpu.CompilerParams(
            dimension_semantics=("parallel", "parallel"),
            vmem_limit_bytes=VMEM_LIMIT),
    )(q, k, v)


# ----------------------------------------------------------------------------
# Kernel: tiny tail — CLS post-LayerNorm + visual projection, one fused kernel
# ----------------------------------------------------------------------------
def final_head(pooled, gamma, beta, w_proj, eps=1e-5):
    B, D = pooled.shape
    P = w_proj.shape[1]
    g2 = gamma.reshape(1, D)
    b2 = beta.reshape(1, D)

    def kernel(x_ref, g_ref, b_ref, w_ref, o_ref):
        xv = x_ref[...].astype(jnp.float32)
        mu = jnp.mean(xv, axis=-1, keepdims=True)
        xc = xv - mu
        var = jnp.mean(xc * xc, axis=-1, keepdims=True)
        hn = xc * jax.lax.rsqrt(var + eps) * g_ref[...] + b_ref[...]
        o_ref[...] = jnp.dot(hn.astype(jnp.bfloat16), w_ref[...],
                             preferred_element_type=jnp.float32)

    return pl.pallas_call(
        kernel,
        grid=(1,),
        in_specs=[
            pl.BlockSpec((B, D), lambda i: (0, 0)),
            pl.BlockSpec((1, D), lambda i: (0, 0)),
            pl.BlockSpec((1, D), lambda i: (0, 0)),
            pl.BlockSpec((D, P), lambda i: (0, 0)),
        ],
        out_specs=pl.BlockSpec((B, P), lambda i: (0, 0)),
        out_shape=jax.ShapeDtypeStruct((B, P), jnp.float32),
    )(pooled, g2, b2, w_proj)


# ----------------------------------------------------------------------------
# Parameter init (deterministic, synthetic scaled-down CLIP vision tower)
# ----------------------------------------------------------------------------
def init_params(key, cfg):
    D, p, img = cfg["hidden"], cfg["patch"], cfg["image_size"]
    P = cfg["proj_dim"]
    gh = img // p
    S = gh * gh + 1
    cnt = [0]

    def nxt():
        cnt[0] += 1
        return jax.random.fold_in(key, cnt[0])

    def w(shape, scale=0.02):
        return scale * jax.random.normal(nxt(), shape, jnp.float32)

    params = {
        "mean": jnp.array([0.48145466, 0.4578275, 0.40821073], jnp.float32),
        "std": jnp.array([0.26862954, 0.26130258, 0.27577711], jnp.float32),
        "patch_w": w((3 * p * p, D)),        # conv(kernel=stride=patch) as matmul
        "class_emb": w((D,)),
        "pos_emb": w((S, D)),
        "pre_ln_g": jnp.ones((D,), jnp.float32),
        "pre_ln_b": jnp.zeros((D,), jnp.float32),
        "post_ln_g": jnp.ones((D,), jnp.float32),
        "post_ln_b": jnp.zeros((D,), jnp.float32),
        "w_proj": w((D, P)),                 # visual_projection (no bias)
        "layers": [],
    }
    I = cfg["intermediate"]
    for _ in range(cfg["layers"]):
        params["layers"].append({
            "ln1_g": jnp.ones((D,), jnp.float32),
            "ln1_b": jnp.zeros((D,), jnp.float32),
            "wq": w((D, D)), "bq": jnp.zeros((D,), jnp.float32),
            "wk": w((D, D)), "bk": jnp.zeros((D,), jnp.float32),
            "wv": w((D, D)), "bv": jnp.zeros((D,), jnp.float32),
            "wo": w((D, D)), "bo": jnp.zeros((D,), jnp.float32),
            "ln2_g": jnp.ones((D,), jnp.float32),
            "ln2_b": jnp.zeros((D,), jnp.float32),
            "w1": w((D, I)), "b1": jnp.zeros((I,), jnp.float32),
            "w2": w((I, D)), "b2": jnp.zeros((D,), jnp.float32),
        })
    return params


def prepare_params(raw, cfg):
    """Pack for inference: fold preprocess affine, fuse QKV (scale folded into
    the Q columns), bf16 weights."""
    mean, std = raw["mean"], raw["std"]
    D, nH = cfg["hidden"], cfg["heads"]
    scale = float(D // nH) ** -0.5
    pp = {
        "pre_scale": (0.5 / std).astype(jnp.float32),
        "pre_bias": ((0.5 - mean) / std).astype(jnp.float32),
        "patch_w": raw["patch_w"].astype(jnp.bfloat16),
        "class_emb": raw["class_emb"],
        "pos_emb": raw["pos_emb"],
        "pre_ln_g": raw["pre_ln_g"], "pre_ln_b": raw["pre_ln_b"],
        "post_ln_g": raw["post_ln_g"], "post_ln_b": raw["post_ln_b"],
        "w_proj": raw["w_proj"].astype(jnp.bfloat16),
        "layers": [],
    }
    for lp in raw["layers"]:
        # TODO(synk): when loading a real CLIP checkpoint, transpose the conv
        # weight (D,C,p,p) to (C*p*p, D) flattened in (C,ph,pw) order.
        w_qkv = jnp.concatenate([lp["wq"] * scale, lp["wk"], lp["wv"]], axis=1)
        b_qkv = jnp.concatenate([lp["bq"] * scale, lp["bk"], lp["bv"]], axis=0)
        pp["layers"].append({
            "ln1_g": lp["ln1_g"], "ln1_b": lp["ln1_b"],
            "w_qkv": w_qkv.astype(jnp.bfloat16), "b_qkv": b_qkv,
            "wo": lp["wo"].astype(jnp.bfloat16), "bo": lp["bo"],
            "ln2_g": lp["ln2_g"], "ln2_b": lp["ln2_b"],
            "w1": lp["w1"].astype(jnp.bfloat16), "b1": lp["b1"],
            "w2": lp["w2"].astype(jnp.bfloat16), "b2": lp["b2"],
        })
    return pp


# ----------------------------------------------------------------------------
# Forward pass
# ----------------------------------------------------------------------------
def image_to_clip_embeds(x, pp, cfg):
    B, C, Hin, Win = x.shape
    img, p, D = cfg["image_size"], cfg["patch"], cfg["hidden"]
    nH = cfg["heads"]
    gh = img // p
    S = gh * gh + 1
    S_pad = _round_up(S, SEQ_PAD_MULT)      # 257 -> 264 at real CLIP shapes

    # ---- preprocess: bicubic resize + fused affine normalize (Pallas) ----
    rh = bicubic_resize_matrix(Hin, img)
    rw = bicubic_resize_matrix(Win, img)
    xp = preprocess(x, rh, rw, pp["pre_scale"], pp["pre_bias"])  # (B,3,img,img)

    # ---- patch embedding: stride-p conv == matmul over flattened patches ----
    # TODO(synk): fold this strided patch gather into the patch-embed kernel's
    # DMA (index_map) to remove one XLA layout pass over xp.
    patches = xp.reshape(B, 3, gh, p, gh, p).transpose(0, 2, 4, 1, 3, 5)
    patches = patches.reshape(B * gh * gh, 3 * p * p)
    patch_emb = tiled_linear(patches, pp["patch_w"]).reshape(B, gh * gh, D)

    # CLS concat + pad sequence to S_pad (padded rows masked in attention and
    # dropped at the end); pos_emb add is fused into the pre-LN kernel.
    cls = jnp.broadcast_to(pp["class_emb"].reshape(1, 1, D), (B, 1, D))
    h = jnp.concatenate([cls, patch_emb], axis=1)                 # (B, S, D)
    h = jnp.pad(h, ((0, 0), (0, S_pad - S), (0, 0)))
    pos = _pad2(pp["pos_emb"], S_pad, D)

    # ---- pre layernorm (+pos_emb): output is the f32 residual stream ----
    h2 = embed_layernorm(h, pos, pp["pre_ln_g"], pp["pre_ln_b"])
    h2 = h2.reshape(B * S_pad, D)

    for lp in pp["layers"]:
        # attention block: LN1 + fused QKV matmul (bf16 out), MHA, out-proj+res
        qkv = ln_linear(h2, lp["ln1_g"], lp["ln1_b"], lp["w_qkv"], lp["b_qkv"],
                        out_dtype=jnp.bfloat16)
        qkv3 = qkv.reshape(B, S_pad, 3 * D)
        attn = attention(qkv3[:, :, :D], qkv3[:, :, D:2 * D], qkv3[:, :, 2 * D:],
                         nH, S).reshape(B * S_pad, D)
        h2 = tiled_linear(attn, lp["wo"], lp["bo"], residual=h2)
        # MLP block: LN2 + fc1 + quick_gelu (bf16 out, one kernel), fc2 + res
        m = ln_linear(h2, lp["ln2_g"], lp["ln2_b"], lp["w1"], lp["b1"],
                      activation="quick_gelu", out_dtype=jnp.bfloat16)
        h2 = tiled_linear(m, lp["w2"], lp["b2"], residual=h2)

    # ---- pooled CLS -> post layernorm + visual projection (one kernel) ----
    pooled = h2.reshape(B, S_pad, D)[:, 0, :]
    return final_head(pooled, pp["post_ln_g"], pp["post_ln_b"], pp["w_proj"])


if __name__ == "__main__":
    # Scaled-down CLIP-vision config (real ViT-L/14 is 224/14/1024/24 layers;
    # same computation graph at small shapes).
    cfg = dict(image_size=32, patch=8, hidden=32, heads=4,
               layers=2, intermediate=128, proj_dim=64)

    raw_params = init_params(jax.random.PRNGKey(0), cfg)
    pp = prepare_params(raw_params, cfg)

    # Input in [-1, 1], NCHW, as the module's forward expects.
    x = jax.random.uniform(jax.random.PRNGKey(0), (2, 3, 16, 16),
                           jnp.float32, minval=-1.0, maxval=1.0)

    fwd = jax.jit(lambda xx: image_to_clip_embeds(xx, pp, cfg))
    out = jax.block_until_ready(fwd(x))

    assert out.shape == (2, cfg["proj_dim"]), out.shape
    assert out.dtype == jnp.float32
    assert bool(jnp.all(jnp.isfinite(out)))
    print("KERNEL_OK")
</pallas_src>

<mosaic_0001>
module attributes {stable_mosaic.version = 11 : i64} {
  func.func @kernel(%arg0: i32, %arg1: memref<3xf32, #tpu.memory_space<smem>>, %arg2: memref<3xf32, #tpu.memory_space<smem>>, %arg3: memref<1x3x16x16xf32, #tpu.memory_space<vmem>>, %arg4: memref<32x16xf32, #tpu.memory_space<vmem>>, %arg5: memref<32x16xf32, #tpu.memory_space<vmem>>, %arg6: memref<1x3x32x32xf32, #tpu.memory_space<vmem>>) attributes {dimension_semantics = [#tpu.dimension_semantics<parallel>], iteration_bounds = array<i64: 2>, scalar_prefetch = 0 : i64, scratch_operands = 0 : i64, tpu.core_type = #tpu.core_type<tc>, window_params = [{transform_indices = @transform_0, window_bounds = array<i64: 3>}, {transform_indices = @transform_1, window_bounds = array<i64: 3>}, {transform_indices = @transform_2, window_bounds = array<i64: 1, 3, 16, 16>}, {pipeline_mode = #tpu.pipeline_mode<synchronous>, transform_indices = @transform_3, window_bounds = array<i64: 32, 16>}, {pipeline_mode = #tpu.pipeline_mode<synchronous>, transform_indices = @transform_4, window_bounds = array<i64: 32, 16>}, {transform_indices = @transform_5, window_bounds = array<i64: 1, 3, 32, 32>}]} {
    %c0 = arith.constant 0 : index
    %c0_0 = arith.constant 0 : index
    %0 = vector.load %arg4[%c0, %c0_0] : memref<32x16xf32, #tpu.memory_space<vmem>>, vector<32x16xf32>
    %c0_1 = arith.constant 0 : index
    %c0_2 = arith.constant 0 : index
    %1 = vector.load %arg5[%c0_1, %c0_2] : memref<32x16xf32, #tpu.memory_space<vmem>>, vector<32x16xf32>
    %c0_3 = arith.constant 0 : index
    %c0_4 = arith.constant 0 : index
    %c0_5 = arith.constant 0 : index
    %c0_6 = arith.constant 0 : index
    %2 = vector.load %arg3[%c0_3, %c0_4, %c0_5, %c0_6] : memref<1x3x16x16xf32, #tpu.memory_space<vmem>>, vector<1x3x16x16xf32>
    %3 = vector.shape_cast %2 : vector<1x3x16x16xf32> to vector<3x16x16xf32>
    %4 = vector.shape_cast %3 : vector<3x16x16xf32> to vector<48x16xf32>
    %cst = arith.constant dense<0.000000e+00> : vector<48x32xf32>
    %5 = tpu.matmul %4, %1, %cst {dimension_numbers = #tpu.dot_dimension_numbers<[1], [1], [0], [0], [0, 0, 1, 0], [], []>} : vector<48x16xf32>, vector<32x16xf32>, vector<48x32xf32> -> vector<48x32xf32>
    %6 = vector.extract_strided_slice %5 {offsets = [0, 0], sizes = [16, 32], strides = [1, 1]} : vector<48x32xf32> to vector<16x32xf32>
    %cst_7 = arith.constant dense<0.000000e+00> : vector<32x32xf32>
    %7 = tpu.matmul %0, %6, %cst_7 {dimension_numbers = #tpu.dot_dimension_numbers<[1], [0], [0], [1], [0, 0, 1, 1], [], []>} : vector<32x16xf32>, vector<16x32xf32>, vector<32x32xf32> -> vector<32x32xf32>
    %c0_8 = arith.constant 0 : index
    %8 = memref.load %arg1[%c0_8] : memref<3xf32, #tpu.memory_space<smem>>
    %9 = vector.broadcast %8 : f32 to vector<32x32xf32>
    %10 = arith.mulf %7, %9 : vector<32x32xf32>
    %c0_9 = arith.constant 0 : index
    %11 = memref.load %arg2[%c0_9] : memref<3xf32, #tpu.memory_space<smem>>
    %12 = vector.broadcast %11 : f32 to vector<32x32xf32>
    %13 = arith.addf %10, %12 : vector<32x32xf32>
    %c0_10 = arith.constant 0 : index
    %c0_11 = arith.constant 0 : index
    %c0_12 = arith.constant 0 : index
    %c0_13 = arith.constant 0 : index
    %14 = vector.load %arg6[%c0_10, %c0_11, %c0_12, %c0_13] : memref<1x3x32x32xf32, #tpu.memory_space<vmem>>, vector<1x1x32x32xf32>
    %15 = vector.shape_cast %14 : vector<1x1x32x32xf32> to vector<32x32xf32>
    %16 = vector.shape_cast %13 : vector<32x32xf32> to vector<1x1x32x32xf32>
    tpu.vector_store %arg6[%c0_10, %c0_11, %c0_12, %c0_13], %16 {strides = array<i32>} : memref<1x3x32x32xf32, #tpu.memory_space<vmem>>, vector<1x1x32x32xf32>,
    %17 = vector.extract_strided_slice %5 {offsets = [16, 0], sizes = [16, 32], strides = [1, 1]} : vector<48x32xf32> to vector<16x32xf32>
    %cst_14 = arith.constant dense<0.000000e+00> : vector<32x32xf32>
    %18 = tpu.matmul %0, %17, %cst_14 {dimension_numbers = #tpu.dot_dimension_numbers<[1], [0], [0], [1], [0, 0, 1, 1], [], []>} : vector<32x16xf32>, vector<16x32xf32>, vector<32x32xf32> -> vector<32x32xf32>
    %c1 = arith.constant 1 : index
    %19 = memref.load %arg1[%c1] : memref<3xf32, #tpu.memory_space<smem>>
    %20 = vector.broadcast %19 : f32 to vector<32x32xf32>
    %21 = arith.mulf %18, %20 : vector<32x32xf32>
    %c1_15 = arith.constant 1 : index
    %22 = memref.load %arg2[%c1_15] : memref<3xf32, #tpu.memory_space<smem>>
    %23 = vector.broadcast %22 : f32 to vector<32x32xf32>
    %24 = arith.addf %21, %23 : vector<32x32xf32>
    %c0_16 = arith.constant 0 : index
    %c1_17 = arith.constant 1 : index
    %c0_18 = arith.constant 0 : index
    %c0_19 = arith.constant 0 : index
    %25 = vector.load %arg6[%c0_16, %c1_17, %c0_18, %c0_19] : memref<1x3x32x32xf32, #tpu.memory_space<vmem>>, vector<1x1x32x32xf32>
    %26 = vector.shape_cast %25 : vector<1x1x32x32xf32> to vector<32x32xf32>
    %27 = vector.shape_cast %24 : vector<32x32xf32> to vector<1x1x32x32xf32>
    tpu.vector_store %arg6[%c0_16, %c1_17, %c0_18, %c0_19], %27 {strides = array<i32>} : memref<1x3x32x32xf32, #tpu.memory_space<vmem>>, vector<1x1x32x32xf32>,
    %28 = vector.extract_strided_slice %5 {offsets = [32, 0], sizes = [16, 32], strides = [1, 1]} : vector<48x32xf32> to vector<16x32xf32>
    %cst_20 = arith.constant dense<0.000000e+00> : vector<32x32xf32>
    %29 = tpu.matmul %0, %28, %cst_20 {dimension_numbers = #tpu.dot_dimension_numbers<[1], [0], [0], [1], [0, 0, 1, 1], [], []>} : vector<32x16xf32>, vector<16x32xf32>, vector<32x32xf32> -> vector<32x32xf32>
    %c2 = arith.constant 2 : index
    %30 = memref.load %arg1[%c2] : memref<3xf32, #tpu.memory_space<smem>>
    %31 = vector.broadcast %30 : f32 to vector<32x32xf32>
    %32 = arith.mulf %29, %31 : vector<32x32xf32>
    %c2_21 = arith.constant 2 : index
    %33 = memref.load %arg2[%c2_21] : memref<3xf32, #tpu.memory_space<smem>>
    %34 = vector.broadcast %33 : f32 to vector<32x32xf32>
    %35 = arith.addf %32, %34 : vector<32x32xf32>
    %c0_22 = arith.constant 0 : index
    %c2_23 = arith.constant 2 : index
    %c0_24 = arith.constant 0 : index
    %c0_25 = arith.constant 0 : index
    %36 = vector.load %arg6[%c0_22, %c2_23, %c0_24, %c0_25] : memref<1x3x32x32xf32, #tpu.memory_space<vmem>>, vector<1x1x32x32xf32>
    %37 = vector.shape_cast %36 : vector<1x1x32x32xf32> to vector<32x32xf32>
    %38 = vector.shape_cast %35 : vector<32x32xf32> to vector<1x1x32x32xf32>
    tpu.vector_store %arg6[%c0_22, %c2_23, %c0_24, %c0_25], %38 {strides = array<i32>} : memref<1x3x32x32xf32, #tpu.memory_space<vmem>>, vector<1x1x32x32xf32>,
    return
  }
  func.func @transform_0(%arg0: i32) -> i32 {
    %c0_i32 = arith.constant 0 : i32
    %c0_i32_0 = arith.constant 0 : i32
    return %c0_i32 : i32
  }
  func.func @transform_1(%arg0: i32) -> i32 {
    %c0_i32 = arith.constant 0 : i32
    %c0_i32_0 = arith.constant 0 : i32
    return %c0_i32 : i32
  }
  func.func @transform_2(%arg0: i32) -> (i32, i32, i32, i32) {
    %c0_i32 = arith.constant 0 : i32
    %c0_i32_0 = arith.constant 0 : i32
    %c0_i32_1 = arith.constant 0 : i32
    %c0_i32_2 = arith.constant 0 : i32
    return %arg0, %c0_i32, %c0_i32_0, %c0_i32_1 : i32, i32, i32, i32
  }
  func.func @transform_3(%arg0: i32) -> (i32, i32) {
    %c0_i32 = arith.constant 0 : i32
    %c0_i32_0 = arith.constant 0 : i32
    %c0_i32_1 = arith.constant 0 : i32
    return %c0_i32, %c0_i32_0 : i32, i32
  }
  func.func @transform_4(%arg0: i32) -> (i32, i32) {
    %c0_i32 = arith.constant 0 : i32
    %c0_i32_0 = arith.constant 0 : i32
    %c0_i32_1 = arith.constant 0 : i32
    return %c0_i32, %c0_i32_0 : i32, i32
  }
  func.func @transform_5(%arg0: i32) -> (i32, i32, i32, i32) {
    %c0_i32 = arith.constant 0 : i32
    %c0_i32_0 = arith.constant 0 : i32
    %c0_i32_1 = arith.constant 0 : i32
    %c0_i32_2 = arith.constant 0 : i32
    return %arg0, %c0_i32, %c0_i32_0, %c0_i32_1 : i32, i32, i32, i32
  }
}

module attributes {stable_mosaic.version = 11 : i64} {
  func.func @kernel(%arg0: i32, %arg1: i32, %arg2: i32, %arg3: memref<32x192xf32, #tpu.memory_space<vmem>>, %arg4: memref<192x32xbf16, #tpu.memory_space<vmem>>, %arg5: memref<1x32xf32, #tpu.memory_space<vmem>>, %arg6: memref<32x32xf32, #tpu.memory_space<vmem>>, %arg7: memref<32x32xf32, #tpu.memory_space<vmem>>) attributes {dimension_semantics = [#tpu.dimension_semantics<parallel>, #tpu.dimension_semantics<parallel>, #tpu.dimension_semantics<arbitrary>], iteration_bounds = array<i64: 1, 1, 1>, scalar_prefetch = 0 : i64, scratch_operands = 1 : i64, tpu.core_type = #tpu.core_type<tc>, window_params = [{transform_indices = @transform_0, window_bounds = array<i64: 32, 192>}, {transform_indices = @transform_1, window_bounds = array<i64: 192, 32>}, {transform_indices = @transform_2, window_bounds = array<i64: 1, 32>}, {transform_indices = @transform_3, window_bounds = array<i64: 32, 32>}]} {
    %c0_i32 = arith.constant 0 : i32
    %0 = arith.cmpi eq, %arg2, %c0_i32 : i32
    %1 = arith.extui %0 : i1 to i32
    %c0_i32_0 = arith.constant 0 : i32
    %2 = arith.cmpi ne, %1, %c0_i32_0 : i32
    scf.if %2 {
      %cst_10 = arith.constant 0.000000e+00 : f32
      %13 = vector.broadcast %cst_10 : f32 to vector<32x32xf32>
      %c0_11 = arith.constant 0 : index
      %c0_12 = arith.constant 0 : index
      %14 = vector.load %arg7[%c0_11, %c0_12] : memref<32x32xf32, #tpu.memory_space<vmem>>, vector<32x32xf32>
      tpu.vector_store %arg7[%c0_11, %c0_12], %13 {strides = array<i32>} : memref<32x32xf32, #tpu.memory_space<vmem>>, vector<32x32xf32>,
    } else {
    }
    %c0 = arith.constant 0 : index
    %c0_1 = arith.constant 0 : index
    %3 = vector.load %arg3[%c0, %c0_1] : memref<32x192xf32, #tpu.memory_space<vmem>>, vector<32x192xf32>
    %4 = arith.truncf %3 : vector<32x192xf32> to vector<32x192xbf16>
    %c0_2 = arith.constant 0 : index
    %c0_3 = arith.constant 0 : index
    %5 = vector.load %arg7[%c0_2, %c0_3] : memref<32x32xf32, #tpu.memory_space<vmem>>, vector<32x32xf32>
    %c0_4 = arith.constant 0 : index
    %c0_5 = arith.constant 0 : index
    %6 = vector.load %arg4[%c0_4, %c0_5] : memref<192x32xbf16, #tpu.memory_space<vmem>>, vector<192x32xbf16>
    %cst = arith.constant dense<0.000000e+00> : vector<32x32xf32>
    %7 = tpu.matmul %4, %6, %cst {dimension_numbers = #tpu.dot_dimension_numbers<[1], [0], [0], [1], [0, 0, 1, 1], [], []>} : vector<32x192xbf16>, vector<192x32xbf16>, vector<32x32xf32> -> vector<32x32xf32>
    %8 = arith.addf %5, %7 : vector<32x32xf32>
    %c0_6 = arith.constant 0 : index
    %c0_7 = arith.constant 0 : index
    %9 = vector.load %arg7[%c0_6, %c0_7] : memref<32x32xf32, #tpu.memory_space<vmem>>, vector<32x32xf32>
    tpu.vector_store %arg7[%c0_6, %c0_7], %8 {strides = array<i32>} : memref<32x32xf32, #tpu.memory_space<vmem>>, vector<32x32xf32>,
    %c0_i32_8 = arith.constant 0 : i32
    %10 = arith.cmpi eq, %arg2, %c0_i32_8 : i32
    %11 = arith.extui %10 : i1 to i32
    %c0_i32_9 = arith.constant 0 : i32
    %12 = arith.cmpi ne, %11, %c0_i32_9 : i32
    scf.if %12 {
      %c0_10 = arith.constant 0 : index
      %c0_11 = arith.constant 0 : index
      %13 = vector.load %arg7[%c0_10, %c0_11] : memref<32x32xf32, #tpu.memory_space<vmem>>, vector<32x32xf32>
      %c0_12 = arith.constant 0 : index
      %c0_13 = arith.constant 0 : index
      %14 = vector.load %arg5[%c0_12, %c0_13] : memref<1x32xf32, #tpu.memory_space<vmem>>, vector<1x32xf32>
      %15 = vector.broadcast %14 : vector<1x32xf32> to vector<32x32xf32>
      %16 = arith.addf %13, %15 : vector<32x32xf32>
      %c0_14 = arith.constant 0 : index
      %c0_15 = arith.constant 0 : index
      %17 = vector.load %arg6[%c0_14, %c0_15] : memref<32x32xf32, #tpu.memory_space<vmem>>, vector<32x32xf32>
      tpu.vector_store %arg6[%c0_14, %c0_15], %16 {strides = array<i32>} : memref<32x32xf32, #tpu.memory_space<vmem>>, vector<32x32xf32>,
    } else {
    }
    return
  }
  func.func @transform_0(%arg0: i32, %arg1: i32, %arg2: i32) -> (i32, i32) {
    %c0_i32 = arith.constant 0 : i32
    return %arg0, %arg2 : i32, i32
  }
  func.func @transform_1(%arg0: i32, %arg1: i32, %arg2: i32) -> (i32, i32) {
    %c0_i32 = arith.constant 0 : i32
    return %arg2, %arg1 : i32, i32
  }
  func.func @transform_2(%arg0: i32, %arg1: i32, %arg2: i32) -> (i32, i32) {
    %c0_i32 = arith.constant 0 : i32
    %c0_i32_0 = arith.constant 0 : i32
    return %c0_i32, %arg1 : i32, i32
  }
  func.func @transform_3(%arg0: i32, %arg1: i32, %arg2: i32) -> (i32, i32) {
    %c0_i32 = arith.constant 0 : i32
    return %arg0, %arg1 : i32, i32
  }
}

module attributes {stable_mosaic.version = 11 : i64} {
  func.func @kernel(%arg0: i32, %arg1: memref<1x24x32xf32, #tpu.memory_space<vmem>>, %arg2: memref<24x32xf32, #tpu.memory_space<vmem>>, %arg3: memref<1x32xf32, #tpu.memory_space<vmem>>, %arg4: memref<1x32xf32, #tpu.memory_space<vmem>>, %arg5: memref<1x24x32xf32, #tpu.memory_space<vmem>>) attributes {dimension_semantics = [#tpu.dimension_semantics<parallel>], iteration_bounds = array<i64: 2>, scalar_prefetch = 0 : i64, scratch_operands = 0 : i64, tpu.core_type = #tpu.core_type<tc>, window_params = [{transform_indices = @transform_0, window_bounds = array<i64: 1, 24, 32>}, {pipeline_mode = #tpu.pipeline_mode<synchronous>, transform_indices = @transform_1, window_bounds = array<i64: 24, 32>}, {pipeline_mode = #tpu.pipeline_mode<synchronous>, transform_indices = @transform_2, window_bounds = array<i64: 1, 32>}, {pipeline_mode = #tpu.pipeline_mode<synchronous>, transform_indices = @transform_3, window_bounds = array<i64: 1, 32>}, {transform_indices = @transform_4, window_bounds = array<i64: 1, 24, 32>}]} {
    %c0 = arith.constant 0 : index
    %c0_0 = arith.constant 0 : index
    %c0_1 = arith.constant 0 : index
    %0 = vector.load %arg1[%c0, %c0_0, %c0_1] : memref<1x24x32xf32, #tpu.memory_space<vmem>>, vector<1x24x32xf32>
    %1 = vector.shape_cast %0 : vector<1x24x32xf32> to vector<24x32xf32>
    %c0_2 = arith.constant 0 : index
    %c0_3 = arith.constant 0 : index
    %2 = vector.load %arg2[%c0_2, %c0_3] : memref<24x32xf32, #tpu.memory_space<vmem>>, vector<24x32xf32>
    %3 = arith.addf %1, %2 : vector<24x32xf32>
    %cst = arith.constant dense<0.000000e+00> : vector<24xf32>
    %4 = vector.multi_reduction <add>, %3, %cst [1] : vector<24x32xf32> to vector<24xf32>
    %5 = vector.shape_cast %4 : vector<24xf32> to vector<24x1xf32>
    %cst_4 = arith.constant 3.200000e+01 : f32
    %6 = vector.broadcast %cst_4 : f32 to vector<24x1xf32>
    %7 = arith.divf %5, %6 : vector<24x1xf32>
    %8 = vector.broadcast %7 : vector<24x1xf32> to vector<24x32xf32>
    %9 = arith.subf %3, %8 : vector<24x32xf32>
    %10 = arith.mulf %9, %9 : vector<24x32xf32>
    %cst_5 = arith.constant dense<0.000000e+00> : vector<24xf32>
    %11 = vector.multi_reduction <add>, %10, %cst_5 [1] : vector<24x32xf32> to vector<24xf32>
    %12 = vector.shape_cast %11 : vector<24xf32> to vector<24x1xf32>
    %cst_6 = arith.constant 3.200000e+01 : f32
    %13 = vector.broadcast %cst_6 : f32 to vector<24x1xf32>
    %14 = arith.divf %12, %13 : vector<24x1xf32>
    %cst_7 = arith.constant 9.99999974E-6 : f32
    %15 = vector.broadcast %cst_7 : f32 to vector<24x1xf32>
    %16 = arith.addf %14, %15 : vector<24x1xf32>
    %17 = math.rsqrt %16 : vector<24x1xf32>
    %18 = vector.broadcast %17 : vector<24x1xf32> to vector<24x32xf32>
    %19 = arith.mulf %9, %18 : vector<24x32xf32>
    %c0_8 = arith.constant 0 : index
    %c0_9 = arith.constant 0 : index
    %20 = vector.load %arg3[%c0_8, %c0_9] : memref<1x32xf32, #tpu.memory_space<vmem>>, vector<1x32xf32>
    %21 = vector.broadcast %20 : vector<1x32xf32> to vector<24x32xf32>
    %22 = arith.mulf %19, %21 : vector<24x32xf32>
    %c0_10 = arith.constant 0 : index
    %c0_11 = arith.constant 0 : index
    %23 = vector.load %arg4[%c0_10, %c0_11] : memref<1x32xf32, #tpu.memory_space<vmem>>, vector<1x32xf32>
    %24 = vector.broadcast %23 : vector<1x32xf32> to vector<24x32xf32>
    %25 = arith.addf %22, %24 : vector<24x32xf32>
    %c0_12 = arith.constant 0 : index
    %c0_13 = arith.constant 0 : index
    %c0_14 = arith.constant 0 : index
    %26 = vector.load %arg5[%c0_12, %c0_13, %c0_14] : memref<1x24x32xf32, #tpu.memory_space<vmem>>, vector<1x24x32xf32>
    %27 = vector.shape_cast %26 : vector<1x24x32xf32> to vector<24x32xf32>
    %28 = vector.shape_cast %25 : vector<24x32xf32> to vector<1x24x32xf32>
    tpu.vector_store %arg5[%c0_12, %c0_13, %c0_14], %28 {strides = array<i32>} : memref<1x24x32xf32, #tpu.memory_space<vmem>>, vector<1x24x32xf32>,
    return
  }
  func.func @transform_0(%arg0: i32) -> (i32, i32, i32) {
    %c0_i32 = arith.constant 0 : i32
    %c0_i32_0 = arith.constant 0 : i32
    %c0_i32_1 = arith.constant 0 : i32
    return %arg0, %c0_i32, %c0_i32_0 : i32, i32, i32
  }
  func.func @transform_1(%arg0: i32) -> (i32, i32) {
    %c0_i32 = arith.constant 0 : i32
    %c0_i32_0 = arith.constant 0 : i32
    %c0_i32_1 = arith.constant 0 : i32
    return %c0_i32, %c0_i32_0 : i32, i32
  }
  func.func @transform_2(%arg0: i32) -> (i32, i32) {
    %c0_i32 = arith.constant 0 : i32
    %c0_i32_0 = arith.constant 0 : i32
    %c0_i32_1 = arith.constant 0 : i32
    return %c0_i32, %c0_i32_0 : i32, i32
  }
  func.func @transform_3(%arg0: i32) -> (i32, i32) {
    %c0_i32 = arith.constant 0 : i32
    %c0_i32_0 = arith.constant 0 : i32
    %c0_i32_1 = arith.constant 0 : i32
    return %c0_i32, %c0_i32_0 : i32, i32
  }
  func.func @transform_4(%arg0: i32) -> (i32, i32, i32) {
    %c0_i32 = arith.constant 0 : i32
    %c0_i32_0 = arith.constant 0 : i32
    %c0_i32_1 = arith.constant 0 : i32
    return %arg0, %c0_i32, %c0_i32_0 : i32, i32, i32
  }
}

module attributes {stable_mosaic.version = 11 : i64} {
  func.func @kernel(%arg0: i32, %arg1: i32, %arg2: memref<48x32xf32, #tpu.memory_space<vmem>>, %arg3: memref<1x32xf32, #tpu.memory_space<vmem>>, %arg4: memref<1x32xf32, #tpu.memory_space<vmem>>, %arg5: memref<32x96xbf16, #tpu.memory_space<vmem>>, %arg6: memref<1x96xf32, #tpu.memory_space<vmem>>, %arg7: memref<48x96xbf16, #tpu.memory_space<vmem>>, %arg8: memref<48x32xbf16, #tpu.memory_space<vmem>>) attributes {dimension_semantics = [#tpu.dimension_semantics<parallel>, #tpu.dimension_semantics<arbitrary>], iteration_bounds = array<i64: 1, 1>, scalar_prefetch = 0 : i64, scratch_operands = 1 : i64, tpu.core_type = #tpu.core_type<tc>, window_params = [{transform_indices = @transform_0, window_bounds = array<i64: 48, 32>}, {pipeline_mode = #tpu.pipeline_mode<synchronous>, transform_indices = @transform_1, window_bounds = array<i64: 1, 32>}, {pipeline_mode = #tpu.pipeline_mode<synchronous>, transform_indices = @transform_2, window_bounds = array<i64: 1, 32>}, {transform_indices = @transform_3, window_bounds = array<i64: 32, 96>}, {transform_indices = @transform_4, window_bounds = array<i64: 1, 96>}, {transform_indices = @transform_5, window_bounds = array<i64: 48, 96>}]} {
    %c0_i32 = arith.constant 0 : i32
    %0 = arith.cmpi eq, %arg1, %c0_i32 : i32
    %1 = arith.extui %0 : i1 to i32
    %c0_i32_0 = arith.constant 0 : i32
    %2 = arith.cmpi ne, %1, %c0_i32_0 : i32
    scf.if %2 {
      %c0_8 = arith.constant 0 : index
      %c0_9 = arith.constant 0 : index
      %11 = vector.load %arg2[%c0_8, %c0_9] : memref<48x32xf32, #tpu.memory_space<vmem>>, vector<48x32xf32>
      %cst_10 = arith.constant dense<0.000000e+00> : vector<48xf32>
      %12 = vector.multi_reduction <add>, %11, %cst_10 [1] : vector<48x32xf32> to vector<48xf32>
      %13 = vector.shape_cast %12 : vector<48xf32> to vector<48x1xf32>
      %cst_11 = arith.constant 3.200000e+01 : f32
      %14 = vector.broadcast %cst_11 : f32 to vector<48x1xf32>
      %15 = arith.divf %13, %14 : vector<48x1xf32>
      %16 = vector.broadcast %15 : vector<48x1xf32> to vector<48x32xf32>
      %17 = arith.subf %11, %16 : vector<48x32xf32>
      %18 = arith.mulf %17, %17 : vector<48x32xf32>
      %cst_12 = arith.constant dense<0.000000e+00> : vector<48xf32>
      %19 = vector.multi_reduction <add>, %18, %cst_12 [1] : vector<48x32xf32> to vector<48xf32>
      %20 = vector.shape_cast %19 : vector<48xf32> to vector<48x1xf32>
      %cst_13 = arith.constant 3.200000e+01 : f32
      %21 = vector.broadcast %cst_13 : f32 to vector<48x1xf32>
      %22 = arith.divf %20, %21 : vector<48x1xf32>
      %cst_14 = arith.constant 9.99999974E-6 : f32
      %23 = vector.broadcast %cst_14 : f32 to vector<48x1xf32>
      %24 = arith.addf %22, %23 : vector<48x1xf32>
      %25 = math.rsqrt %24 : vector<48x1xf32>
      %26 = vector.broadcast %25 : vector<48x1xf32> to vector<48x32xf32>
      %27 = arith.mulf %17, %26 : vector<48x32xf32>
      %c0_15 = arith.constant 0 : index
      %c0_16 = arith.constant 0 : index
      %28 = vector.load %arg3[%c0_15, %c0_16] : memref<1x32xf32, #tpu.memory_space<vmem>>, vector<1x32xf32>
      %29 = vector.broadcast %28 : vector<1x32xf32> to vector<48x32xf32>
      %30 = arith.mulf %27, %29 : vector<48x32xf32>
      %c0_17 = arith.constant 0 : index
      %c0_18 = arith.constant 0 : index
      %31 = vector.load %arg4[%c0_17, %c0_18] : memref<1x32xf32, #tpu.memory_space<vmem>>, vector<1x32xf32>
      %32 = vector.broadcast %31 : vector<1x32xf32> to vector<48x32xf32>
      %33 = arith.addf %30, %32 : vector<48x32xf32>
      %34 = arith.truncf %33 : vector<48x32xf32> to vector<48x32xbf16>
      %c0_19 = arith.constant 0 : index
      %c0_20 = arith.constant 0 : index
      %35 = vector.load %arg8[%c0_19, %c0_20] : memref<48x32xbf16, #tpu.memory_space<vmem>>, vector<48x32xbf16>
      tpu.vector_store %arg8[%c0_19, %c0_20], %34 {strides = array<i32>} : memref<48x32xbf16, #tpu.memory_space<vmem>>, vector<48x32xbf16>,
    } else {
    }
    %c0 = arith.constant 0 : index
    %c0_1 = arith.constant 0 : index
    %3 = vector.load %arg8[%c0, %c0_1] : memref<48x32xbf16, #tpu.memory_space<vmem>>, vector<48x32xbf16>
    %c0_2 = arith.constant 0 : index
    %c0_3 = arith.constant 0 : index
    %4 = vector.load %arg5[%c0_2, %c0_3] : memref<32x96xbf16, #tpu.memory_space<vmem>>, vector<32x96xbf16>
    %cst = arith.constant dense<0.000000e+00> : vector<48x96xf32>
    %5 = tpu.matmul %3, %4, %cst {dimension_numbers = #tpu.dot_dimension_numbers<[1], [0], [0], [1], [0, 0, 1, 1], [], []>} : vector<48x32xbf16>, vector<32x96xbf16>, vector<48x96xf32> -> vector<48x96xf32>
    %c0_4 = arith.constant 0 : index
    %c0_5 = arith.constant 0 : index
    %6 = vector.load %arg6[%c0_4, %c0_5] : memref<1x96xf32, #tpu.memory_space<vmem>>, vector<1x96xf32>
    %7 = vector.broadcast %6 : vector<1x96xf32> to vector<48x96xf32>
    %8 = arith.addf %5, %7 : vector<48x96xf32>
    %9 = arith.truncf %8 : vector<48x96xf32> to vector<48x96xbf16>
    %c0_6 = arith.constant 0 : index
    %c0_7 = arith.constant 0 : index
    %10 = vector.load %arg7[%c0_6, %c0_7] : memref<48x96xbf16, #tpu.memory_space<vmem>>, vector<48x96xbf16>
    tpu.vector_store %arg7[%c0_6, %c0_7], %9 {strides = array<i32>} : memref<48x96xbf16, #tpu.memory_space<vmem>>, vector<48x96xbf16>,
    return
  }
  func.func @transform_0(%arg0: i32, %arg1: i32) -> (i32, i32) {
    %c0_i32 = arith.constant 0 : i32
    %c0_i32_0 = arith.constant 0 : i32
    return %arg0, %c0_i32 : i32, i32
  }
  func.func @transform_1(%arg0: i32, %arg1: i32) -> (i32, i32) {
    %c0_i32 = arith.constant 0 : i32
    %c0_i32_0 = arith.constant 0 : i32
    %c0_i32_1 = arith.constant 0 : i32
    return %c0_i32, %c0_i32_0 : i32, i32
  }
  func.func @transform_2(%arg0: i32, %arg1: i32) -> (i32, i32) {
    %c0_i32 = arith.constant 0 : i32
    %c0_i32_0 = arith.constant 0 : i32
    %c0_i32_1 = arith.constant 0 : i32
    return %c0_i32, %c0_i32_0 : i32, i32
  }
  func.func @transform_3(%arg0: i32, %arg1: i32) -> (i32, i32) {
    %c0_i32 = arith.constant 0 : i32
    %c0_i32_0 = arith.constant 0 : i32
    return %c0_i32, %arg1 : i32, i32
  }
  func.func @transform_4(%arg0: i32, %arg1: i32) -> (i32, i32) {
    %c0_i32 = arith.constant 0 : i32
    %c0_i32_0 = arith.constant 0 : i32
    return %c0_i32, %arg1 : i32, i32
  }
  func.func @transform_5(%arg0: i32, %arg1: i32) -> (i32, i32) {
    %c0_i32 = arith.constant 0 : i32
    return %arg0, %arg1 : i32, i32
  }
}

module attributes {stable_mosaic.version = 11 : i64} {
  func.func @kernel(%arg0: i32, %arg1: i32, %arg2: memref<1x24x32xbf16, #tpu.memory_space<vmem>>, %arg3: memref<1x24x32xbf16, #tpu.memory_space<vmem>>, %arg4: memref<1x24x32xbf16, #tpu.memory_space<vmem>>, %arg5: memref<1x24x32xbf16, #tpu.memory_space<vmem>>) attributes {dimension_semantics = [#tpu.dimension_semantics<parallel>, #tpu.dimension_semantics<parallel>], iteration_bounds = array<i64: 2, 1>, scalar_prefetch = 0 : i64, scratch_operands = 0 : i64, tpu.core_type = #tpu.core_type<tc>, window_params = [{transform_indices = @transform_0, window_bounds = array<i64: 1, 24, 32>}, {transform_indices = @transform_1, window_bounds = array<i64: 1, 24, 32>}, {transform_indices = @transform_2, window_bounds = array<i64: 1, 24, 32>}, {transform_indices = @transform_3, window_bounds = array<i64: 1, 24, 32>}]} {
    %0 = tpu.iota {dimensions = array<i32: 1>} : vector<24x24xi32>
    %c17_i32 = arith.constant 17 : i32
    %1 = vector.broadcast %c17_i32 : i32 to vector<24x24xi32>
    %2 = arith.cmpi slt, %0, %1 : vector<24x24xi32>
    %cst = arith.constant 0.000000e+00 : f32
    %cst_0 = arith.constant -1.000000e+09 : f32
    %3 = vector.broadcast %cst : f32 to vector<24x24xf32>
    %4 = vector.broadcast %cst_0 : f32 to vector<24x24xf32>
    %5 = arith.select %2, %3, %4 : vector<24x24xi1>, vector<24x24xf32>
    %c0 = arith.constant 0 : index
    %c0_1 = arith.constant 0 : index
    %c0_2 = arith.constant 0 : index
    %6 = vector.load %arg2[%c0, %c0_1, %c0_2] : memref<1x24x32xbf16, #tpu.memory_space<vmem>>, vector<1x24x8xbf16>
    %7 = vector.shape_cast %6 : vector<1x24x8xbf16> to vector<24x8xbf16>
    %c0_3 = arith.constant 0 : index
    %c0_4 = arith.constant 0 : index
    %c0_5 = arith.constant 0 : index
    %8 = vector.load %arg3[%c0_3, %c0_4, %c0_5] : memref<1x24x32xbf16, #tpu.memory_space<vmem>>, vector<1x24x8xbf16>
    %9 = vector.shape_cast %8 : vector<1x24x8xbf16> to vector<24x8xbf16>
    %c0_6 = arith.constant 0 : index
    %c0_7 = arith.constant 0 : index
    %c0_8 = arith.constant 0 : index
    %10 = vector.load %arg4[%c0_6, %c0_7, %c0_8] : memref<1x24x32xbf16, #tpu.memory_space<vmem>>, vector<1x24x8xbf16>
    %11 = vector.shape_cast %10 : vector<1x24x8xbf16> to vector<24x8xbf16>
    %cst_9 = arith.constant dense<0.000000e+00> : vector<24x24xf32>
    %12 = tpu.matmul %7, %9, %cst_9 {dimension_numbers = #tpu.dot_dimension_numbers<[1], [1], [0], [0], [0, 0, 1, 0], [], []>} : vector<24x8xbf16>, vector<24x8xbf16>, vector<24x24xf32> -> vector<24x24xf32>
    %13 = arith.addf %12, %5 : vector<24x24xf32>
    %cst_10 = arith.constant dense<0xFF800000> : vector<24xf32>
    %14 = vector.multi_reduction <maximumf>, %13, %cst_10 [1] : vector<24x24xf32> to vector<24xf32>
    %15 = vector.shape_cast %14 : vector<24xf32> to vector<24x1xf32>
    %16 = vector.broadcast %15 : vector<24x1xf32> to vector<24x24xf32>
    %17 = arith.subf %13, %16 : vector<24x24xf32>
    %18 = math.exp %17 : vector<24x24xf32>
    %cst_11 = arith.constant dense<0.000000e+00> : vector<24xf32>
    %19 = vector.multi_reduction <add>, %18, %cst_11 [1] : vector<24x24xf32> to vector<24xf32>
    %20 = vector.shape_cast %19 : vector<24xf32> to vector<24x1xf32>
    %21 = tpu.reciprocal %20 {approx = true} : vector<24x1xf32> -> vector<24x1xf32>
    %22 = vector.broadcast %21 : vector<24x1xf32> to vector<24x24xf32>
    %23 = arith.mulf %18, %22 : vector<24x24xf32>
    %24 = arith.truncf %23 : vector<24x24xf32> to vector<24x24xbf16>
    %cst_12 = arith.constant dense<0.000000e+00> : vector<24x8xf32>
    %25 = tpu.matmul %24, %11, %cst_12 {dimension_numbers = #tpu.dot_dimension_numbers<[1], [0], [0], [1], [0, 0, 1, 1], [], []>} : vector<24x24xbf16>, vector<24x8xbf16>, vector<24x8xf32> -> vector<24x8xf32>
    %26 = arith.truncf %25 : vector<24x8xf32> to vector<24x8xbf16>
    %c0_13 = arith.constant 0 : index
    %c0_14 = arith.constant 0 : index
    %c0_15 = arith.constant 0 : index
    %27 = vector.load %arg5[%c0_13, %c0_14, %c0_15] : memref<1x24x32xbf16, #tpu.memory_space<vmem>>, vector<1x24x8xbf16>
    %28 = vector.shape_cast %27 : vector<1x24x8xbf16> to vector<24x8xbf16>
    %29 = vector.shape_cast %26 : vector<24x8xbf16> to vector<1x24x8xbf16>
    tpu.vector_store %arg5[%c0_13, %c0_14, %c0_15], %29 {strides = array<i32>} : memref<1x24x32xbf16, #tpu.memory_space<vmem>>, vector<1x24x8xbf16>,
    %c0_16 = arith.constant 0 : index
    %c0_17 = arith.constant 0 : index
    %c8 = arith.constant 8 : index
    %30 = vector.load %arg2[%c0_16, %c0_17, %c8] : memref<1x24x32xbf16, #tpu.memory_space<vmem>>, vector<1x24x8xbf16>
    %31 = vector.shape_cast %30 : vector<1x24x8xbf16> to vector<24x8xbf16>
    %c0_18 = arith.constant 0 : index
    %c0_19 = arith.constant 0 : index
    %c8_20 = arith.constant 8 : index
    %32 = vector.load %arg3[%c0_18, %c0_19, %c8_20] : memref<1x24x32xbf16, #tpu.memory_space<vmem>>, vector<1x24x8xbf16>
    %33 = vector.shape_cast %32 : vector<1x24x8xbf16> to vector<24x8xbf16>
    %c0_21 = arith.constant 0 : index
    %c0_22 = arith.constant 0 : index
    %c8_23 = arith.constant 8 : index
    %34 = vector.load %arg4[%c0_21, %c0_22, %c8_23] : memref<1x24x32xbf16, #tpu.memory_space<vmem>>, vector<1x24x8xbf16>
    %35 = vector.shape_cast %34 : vector<1x24x8xbf16> to vector<24x8xbf16>
    %cst_24 = arith.constant dense<0.000000e+00> : vector<24x24xf32>
    %36 = tpu.matmul %31, %33, %cst_24 {dimension_numbers = #tpu.dot_dimension_numbers<[1], [1], [0], [0], [0, 0, 1, 0], [], []>} : vector<24x8xbf16>, vector<24x8xbf16>, vector<24x24xf32> -> vector<24x24xf32>
    %37 = arith.addf %36, %5 : vector<24x24xf32>
    %cst_25 = arith.constant dense<0xFF800000> : vector<24xf32>
    %38 = vector.multi_reduction <maximumf>, %37, %cst_25 [1] : vector<24x24xf32> to vector<24xf32>
    %39 = vector.shape_cast %38 : vector<24xf32> to vector<24x1xf32>
    %40 = vector.broadcast %39 : vector<24x1xf32> to vector<24x24xf32>
    %41 = arith.subf %37, %40 : vector<24x24xf32>
    %42 = math.exp %41 : vector<24x24xf32>
    %cst_26 = arith.constant dense<0.000000e+00> : vector<24xf32>
    %43 = vector.multi_reduction <add>, %42, %cst_26 [1] : vector<24x24xf32> to vector<24xf32>
    %44 = vector.shape_cast %43 : vector<24xf32> to vector<24x1xf32>
    %45 = tpu.reciprocal %44 {approx = true} : vector<24x1xf32> -> vector<24x1xf32>
    %46 = vector.broadcast %45 : vector<24x1xf32> to vector<24x24xf32>
    %47 = arith.mulf %42, %46 : vector<24x24xf32>
    %48 = arith.truncf %47 : vector<24x24xf32> to vector<24x24xbf16>
    %cst_27 = arith.constant dense<0.000000e+00> : vector<24x8xf32>
    %49 = tpu.matmul %48, %35, %cst_27 {dimension_numbers = #tpu.dot_dimension_numbers<[1], [0], [0], [1], [0, 0, 1, 1], [], []>} : vector<24x24xbf16>, vector<24x8xbf16>, vector<24x8xf32> -> vector<24x8xf32>
    %50 = arith.truncf %49 : vector<24x8xf32> to vector<24x8xbf16>
    %c0_28 = arith.constant 0 : index
    %c0_29 = arith.constant 0 : index
    %c8_30 = arith.constant 8 : index
    %51 = vector.load %arg5[%c0_28, %c0_29, %c8_30] : memref<1x24x32xbf16, #tpu.memory_space<vmem>>, vector<1x24x8xbf16>
    %52 = vector.shape_cast %51 : vector<1x24x8xbf16> to vector<24x8xbf16>
    %53 = vector.shape_cast %50 : vector<24x8xbf16> to vector<1x24x8xbf16>
    tpu.vector_store %arg5[%c0_28, %c0_29, %c8_30], %53 {strides = array<i32>} : memref<1x24x32xbf16, #tpu.memory_space<vmem>>, vector<1x24x8xbf16>,
    %c0_31 = arith.constant 0 : index
    %c0_32 = arith.constant 0 : index
    %c16 = arith.constant 16 : index
    %54 = vector.load %arg2[%c0_31, %c0_32, %c16] : memref<1x24x32xbf16, #tpu.memory_space<vmem>>, vector<1x24x8xbf16>
    %55 = vector.shape_cast %54 : vector<1x24x8xbf16> to vector<24x8xbf16>
    %c0_33 = arith.constant 0 : index
    %c0_34 = arith.constant 0 : index
    %c16_35 = arith.constant 16 : index
    %56 = vector.load %arg3[%c0_33, %c0_34, %c16_35] : memref<1x24x32xbf16, #tpu.memory_space<vmem>>, vector<1x24x8xbf16>
    %57 = vector.shape_cast %56 : vector<1x24x8xbf16> to vector<24x8xbf16>
    %c0_36 = arith.constant 0 : index
    %c0_37 = arith.constant 0 : index
    %c16_38 = arith.constant 16 : index
    %58 = vector.load %arg4[%c0_36, %c0_37, %c16_38] : memref<1x24x32xbf16, #tpu.memory_space<vmem>>, vector<1x24x8xbf16>
    %59 = vector.shape_cast %58 : vector<1x24x8xbf16> to vector<24x8xbf16>
    %cst_39 = arith.constant dense<0.000000e+00> : vector<24x24xf32>
    %60 = tpu.matmul %55, %57, %cst_39 {dimension_numbers = #tpu.dot_dimension_numbers<[1], [1], [0], [0], [0, 0, 1, 0], [], []>} : vector<24x8xbf16>, vector<24x8xbf16>, vector<24x24xf32> -> vector<24x24xf32>
    %61 = arith.addf %60, %5 : vector<24x24xf32>
    %cst_40 = arith.constant dense<0xFF800000> : vector<24xf32>
    %62 = vector.multi_reduction <maximumf>, %61, %cst_40 [1] : vector<24x24xf32> to vector<24xf32>
    %63 = vector.shape_cast %62 : vector<24xf32> to vector<24x1xf32>
    %64 = vector.broadcast %63 : vector<24x1xf32> to vector<24x24xf32>
    %65 = arith.subf %61, %64 : vector<24x24xf32>
    %66 = math.exp %65 : vector<24x24xf32>
    %cst_41 = arith.constant dense<0.000000e+00> : vector<24xf32>
    %67 = vector.multi_reduction <add>, %66, %cst_41 [1] : vector<24x24xf32> to vector<24xf32>
    %68 = vector.shape_cast %67 : vector<24xf32> to vector<24x1xf32>
    %69 = tpu.reciprocal %68 {approx = true} : vector<24x1xf32> -> vector<24x1xf32>
    %70 = vector.broadcast %69 : vector<24x1xf32> to vector<24x24xf32>
    %71 = arith.mulf %66, %70 : vector<24x24xf32>
    %72 = arith.truncf %71 : vector<24x24xf32> to vector<24x24xbf16>
    %cst_42 = arith.constant dense<0.000000e+00> : vector<24x8xf32>
    %73 = tpu.matmul %72, %59, %cst_42 {dimension_numbers = #tpu.dot_dimension_numbers<[1], [0], [0], [1], [0, 0, 1, 1], [], []>} : vector<24x24xbf16>, vector<24x8xbf16>, vector<24x8xf32> -> vector<24x8xf32>
    %74 = arith.truncf %73 : vector<24x8xf32> to vector<24x8xbf16>
    %c0_43 = arith.constant 0 : index
    %c0_44 = arith.constant 0 : index
    %c16_45 = arith.constant 16 : index
    %75 = vector.load %arg5[%c0_43, %c0_44, %c16_45] : memref<1x24x32xbf16, #tpu.memory_space<vmem>>, vector<1x24x8xbf16>
    %76 = vector.shape_cast %75 : vector<1x24x8xbf16> to vector<24x8xbf16>
    %77 = vector.shape_cast %74 : vector<24x8xbf16> to vector<1x24x8xbf16>
    tpu.vector_store %arg5[%c0_43, %c0_44, %c16_45], %77 {strides = array<i32>} : memref<1x24x32xbf16, #tpu.memory_space<vmem>>, vector<1x24x8xbf16>,
    %c0_46 = arith.constant 0 : index
    %c0_47 = arith.constant 0 : index
    %c24 = arith.constant 24 : index
    %78 = vector.load %arg2[%c0_46, %c0_47, %c24] : memref<1x24x32xbf16, #tpu.memory_space<vmem>>, vector<1x24x8xbf16>
    %79 = vector.shape_cast %78 : vector<1x24x8xbf16> to vector<24x8xbf16>
    %c0_48 = arith.constant 0 : index
    %c0_49 = arith.constant 0 : index
    %c24_50 = arith.constant 24 : index
    %80 = vector.load %arg3[%c0_48, %c0_49, %c24_50] : memref<1x24x32xbf16, #tpu.memory_space<vmem>>, vector<1x24x8xbf16>
    %81 = vector.shape_cast %80 : vector<1x24x8xbf16> to vector<24x8xbf16>
    %c0_51 = arith.constant 0 : index
    %c0_52 = arith.constant 0 : index
    %c24_53 = arith.constant 24 : index
    %82 = vector.load %arg4[%c0_51, %c0_52, %c24_53] : memref<1x24x32xbf16, #tpu.memory_space<vmem>>, vector<1x24x8xbf16>
    %83 = vector.shape_cast %82 : vector<1x24x8xbf16> to vector<24x8xbf16>
    %cst_54 = arith.constant dense<0.000000e+00> : vector<24x24xf32>
    %84 = tpu.matmul %79, %81, %cst_54 {dimension_numbers = #tpu.dot_dimension_numbers<[1], [1], [0], [0], [0, 0, 1, 0], [], []>} : vector<24x8xbf16>, vector<24x8xbf16>, vector<24x24xf32> -> vector<24x24xf32>
    %85 = arith.addf %84, %5 : vector<24x24xf32>
    %cst_55 = arith.constant dense<0xFF800000> : vector<24xf32>
    %86 = vector.multi_reduction <maximumf>, %85, %cst_55 [1] : vector<24x24xf32> to vector<24xf32>
    %87 = vector.shape_cast %86 : vector<24xf32> to vector<24x1xf32>
    %88 = vector.broadcast %87 : vector<24x1xf32> to vector<24x24xf32>
    %89 = arith.subf %85, %88 : vector<24x24xf32>
    %90 = math.exp %89 : vector<24x24xf32>
    %cst_56 = arith.constant dense<0.000000e+00> : vector<24xf32>
    %91 = vector.multi_reduction <add>, %90, %cst_56 [1] : vector<24x24xf32> to vector<24xf32>
    %92 = vector.shape_cast %91 : vector<24xf32> to vector<24x1xf32>
    %93 = tpu.reciprocal %92 {approx = true} : vector<24x1xf32> -> vector<24x1xf32>
    %94 = vector.broadcast %93 : vector<24x1xf32> to vector<24x24xf32>
    %95 = arith.mulf %90, %94 : vector<24x24xf32>
    %96 = arith.truncf %95 : vector<24x24xf32> to vector<24x24xbf16>
    %cst_57 = arith.constant dense<0.000000e+00> : vector<24x8xf32>
    %97 = tpu.matmul %96, %83, %cst_57 {dimension_numbers = #tpu.dot_dimension_numbers<[1], [0], [0], [1], [0, 0, 1, 1], [], []>} : vector<24x24xbf16>, vector<24x8xbf16>, vector<24x8xf32> -> vector<24x8xf32>
    %98 = arith.truncf %97 : vector<24x8xf32> to vector<24x8xbf16>
    %c0_58 = arith.constant 0 : index
    %c0_59 = arith.constant 0 : index
    %c24_60 = arith.constant 24 : index
    %99 = vector.load %arg5[%c0_58, %c0_59, %c24_60] : memref<1x24x32xbf16, #tpu.memory_space<vmem>>, vector<1x24x8xbf16>
    %100 = vector.shape_cast %99 : vector<1x24x8xbf16> to vector<24x8xbf16>
    %101 = vector.shape_cast %98 : vector<24x8xbf16> to vector<1x24x8xbf16>
    tpu.vector_store %arg5[%c0_58, %c0_59, %c24_60], %101 {strides = array<i32>} : memref<1x24x32xbf16, #tpu.memory_space<vmem>>, vector<1x24x8xbf16>,
    return
  }
  func.func @transform_0(%arg0: i32, %arg1: i32) -> (i32, i32, i32) {
    %c0_i32 = arith.constant 0 : i32
    %c0_i32_0 = arith.constant 0 : i32
    return %arg0, %c0_i32, %arg1 : i32, i32, i32
  }
  func.func @transform_1(%arg0: i32, %arg1: i32) -> (i32, i32, i32) {
    %c0_i32 = arith.constant 0 : i32
    %c0_i32_0 = arith.constant 0 : i32
    return %arg0, %c0_i32, %arg1 : i32, i32, i32
  }
  func.func @transform_2(%arg0: i32, %arg1: i32) -> (i32, i32, i32) {
    %c0_i32 = arith.constant 0 : i32
    %c0_i32_0 = arith.constant 0 : i32
    return %arg0, %c0_i32, %arg1 : i32, i32, i32
  }
  func.func @transform_3(%arg0: i32, %arg1: i32) -> (i32, i32, i32) {
    %c0_i32 = arith.constant 0 : i32
    %c0_i32_0 = arith.constant 0 : i32
    return %arg0, %c0_i32, %arg1 : i32, i32, i32
  }
}

module attributes {stable_mosaic.version = 11 : i64} {
  func.func @kernel(%arg0: i32, %arg1: i32, %arg2: i32, %arg3: memref<48x32xbf16, #tpu.memory_space<vmem>>, %arg4: memref<32x32xbf16, #tpu.memory_space<vmem>>, %arg5: memref<1x32xf32, #tpu.memory_space<vmem>>, %arg6: memref<48x32xf32, #tpu.memory_space<vmem>>, %arg7: memref<48x32xf32, #tpu.memory_space<vmem>>, %arg8: memref<48x32xf32, #tpu.memory_space<vmem>>) attributes {dimension_semantics = [#tpu.dimension_semantics<parallel>, #tpu.dimension_semantics<parallel>, #tpu.dimension_semantics<arbitrary>], iteration_bounds = array<i64: 1, 1, 1>, scalar_prefetch = 0 : i64, scratch_operands = 1 : i64, tpu.core_type = #tpu.core_type<tc>, window_params = [{transform_indices = @transform_0, window_bounds = array<i64: 48, 32>}, {transform_indices = @transform_1, window_bounds = array<i64: 32, 32>}, {transform_indices = @transform_2, window_bounds = array<i64: 1, 32>}, {transform_indices = @transform_3, window_bounds = array<i64: 48, 32>}, {transform_indices = @transform_4, window_bounds = array<i64: 48, 32>}]} {
    %c0_i32 = arith.constant 0 : i32
    %0 = arith.cmpi eq, %arg2, %c0_i32 : i32
    %1 = arith.extui %0 : i1 to i32
    %c0_i32_0 = arith.constant 0 : i32
    %2 = arith.cmpi ne, %1, %c0_i32_0 : i32
    scf.if %2 {
      %cst_10 = arith.constant 0.000000e+00 : f32
      %12 = vector.broadcast %cst_10 : f32 to vector<48x32xf32>
      %c0_11 = arith.constant 0 : index
      %c0_12 = arith.constant 0 : index
      %13 = vector.load %arg8[%c0_11, %c0_12] : memref<48x32xf32, #tpu.memory_space<vmem>>, vector<48x32xf32>
      tpu.vector_store %arg8[%c0_11, %c0_12], %12 {strides = array<i32>} : memref<48x32xf32, #tpu.memory_space<vmem>>, vector<48x32xf32>,
    } else {
    }
    %c0 = arith.constant 0 : index
    %c0_1 = arith.constant 0 : index
    %3 = vector.load %arg3[%c0, %c0_1] : memref<48x32xbf16, #tpu.memory_space<vmem>>, vector<48x32xbf16>
    %c0_2 = arith.constant 0 : index
    %c0_3 = arith.constant 0 : index
    %4 = vector.load %arg8[%c0_2, %c0_3] : memref<48x32xf32, #tpu.memory_space<vmem>>, vector<48x32xf32>
    %c0_4 = arith.constant 0 : index
    %c0_5 = arith.constant 0 : index
    %5 = vector.load %arg4[%c0_4, %c0_5] : memref<32x32xbf16, #tpu.memory_space<vmem>>, vector<32x32xbf16>
    %cst = arith.constant dense<0.000000e+00> : vector<48x32xf32>
    %6 = tpu.matmul %3, %5, %cst {dimension_numbers = #tpu.dot_dimension_numbers<[1], [0], [0], [1], [0, 0, 1, 1], [], []>} : vector<48x32xbf16>, vector<32x32xbf16>, vector<48x32xf32> -> vector<48x32xf32>
    %7 = arith.addf %4, %6 : vector<48x32xf32>
    %c0_6 = arith.constant 0 : index
    %c0_7 = arith.constant 0 : index
    %8 = vector.load %arg8[%c0_6, %c0_7] : memref<48x32xf32, #tpu.memory_space<vmem>>, vector<48x32xf32>
    tpu.vector_store %arg8[%c0_6, %c0_7], %7 {strides = array<i32>} : memref<48x32xf32, #tpu.memory_space<vmem>>, vector<48x32xf32>,
    %c0_i32_8 = arith.constant 0 : i32
    %9 = arith.cmpi eq, %arg2, %c0_i32_8 : i32
    %10 = arith.extui %9 : i1 to i32
    %c0_i32_9 = arith.constant 0 : i32
    %11 = arith.cmpi ne, %10, %c0_i32_9 : i32
    scf.if %11 {
      %c0_10 = arith.constant 0 : index
      %c0_11 = arith.constant 0 : index
      %12 = vector.load %arg8[%c0_10, %c0_11] : memref<48x32xf32, #tpu.memory_space<vmem>>, vector<48x32xf32>
      %c0_12 = arith.constant 0 : index
      %c0_13 = arith.constant 0 : index
      %13 = vector.load %arg5[%c0_12, %c0_13] : memref<1x32xf32, #tpu.memory_space<vmem>>, vector<1x32xf32>
      %14 = vector.broadcast %13 : vector<1x32xf32> to vector<48x32xf32>
      %15 = arith.addf %12, %14 : vector<48x32xf32>
      %c0_14 = arith.constant 0 : index
      %c0_15 = arith.constant 0 : index
      %16 = vector.load %arg6[%c0_14, %c0_15] : memref<48x32xf32, #tpu.memory_space<vmem>>, vector<48x32xf32>
      %17 = arith.addf %15, %16 : vector<48x32xf32>
      %c0_16 = arith.constant 0 : index
      %c0_17 = arith.constant 0 : index
      %18 = vector.load %arg7[%c0_16, %c0_17] : memref<48x32xf32, #tpu.memory_space<vmem>>, vector<48x32xf32>
      tpu.vector_store %arg7[%c0_16, %c0_17], %17 {strides = array<i32>} : memref<48x32xf32, #tpu.memory_space<vmem>>, vector<48x32xf32>,
    } else {
    }
    return
  }
  func.func @transform_0(%arg0: i32, %arg1: i32, %arg2: i32) -> (i32, i32) {
    %c0_i32 = arith.constant 0 : i32
    return %arg0, %arg2 : i32, i32
  }
  func.func @transform_1(%arg0: i32, %arg1: i32, %arg2: i32) -> (i32, i32) {
    %c0_i32 = arith.constant 0 : i32
    return %arg2, %arg1 : i32, i32
  }
  func.func @transform_2(%arg0: i32, %arg1: i32, %arg2: i32) -> (i32, i32) {
    %c0_i32 = arith.constant 0 : i32
    %c0_i32_0 = arith.constant 0 : i32
    return %c0_i32, %arg1 : i32, i32
  }
  func.func @transform_3(%arg0: i32, %arg1: i32, %arg2: i32) -> (i32, i32) {
    %c0_i32 = arith.constant 0 : i32
    return %arg0, %arg1 : i32, i32
  }
  func.func @transform_4(%arg0: i32, %arg1: i32, %arg2: i32) -> (i32, i32) {
    %c0_i32 = arith.constant 0 : i32
    return %arg0, %arg1 : i32, i32
  }
}

module attributes {stable_mosaic.version = 11 : i64} {
  func.func @kernel(%arg0: i32, %arg1: i32, %arg2: memref<48x32xf32, #tpu.memory_space<vmem>>, %arg3: memref<1x32xf32, #tpu.memory_space<vmem>>, %arg4: memref<1x32xf32, #tpu.memory_space<vmem>>, %arg5: memref<32x128xbf16, #tpu.memory_space<vmem>>, %arg6: memref<1x128xf32, #tpu.memory_space<vmem>>, %arg7: memref<48x128xbf16, #tpu.memory_space<vmem>>, %arg8: memref<48x32xbf16, #tpu.memory_space<vmem>>) attributes {dimension_semantics = [#tpu.dimension_semantics<parallel>, #tpu.dimension_semantics<arbitrary>], iteration_bounds = array<i64: 1, 1>, scalar_prefetch = 0 : i64, scratch_operands = 1 : i64, tpu.core_type = #tpu.core_type<tc>, window_params = [{transform_indices = @transform_0, window_bounds = array<i64: 48, 32>}, {pipeline_mode = #tpu.pipeline_mode<synchronous>, transform_indices = @transform_1, window_bounds = array<i64: 1, 32>}, {pipeline_mode = #tpu.pipeline_mode<synchronous>, transform_indices = @transform_2, window_bounds = array<i64: 1, 32>}, {transform_indices = @transform_3, window_bounds = array<i64: 32, 128>}, {transform_indices = @transform_4, window_bounds = array<i64: 1, 128>}, {transform_indices = @transform_5, window_bounds = array<i64: 48, 128>}]} {
    %c0_i32 = arith.constant 0 : i32
    %0 = arith.cmpi eq, %arg1, %c0_i32 : i32
    %1 = arith.extui %0 : i1 to i32
    %c0_i32_0 = arith.constant 0 : i32
    %2 = arith.cmpi ne, %1, %c0_i32_0 : i32
    scf.if %2 {
      %c0_10 = arith.constant 0 : index
      %c0_11 = arith.constant 0 : index
      %19 = vector.load %arg2[%c0_10, %c0_11] : memref<48x32xf32, #tpu.memory_space<vmem>>, vector<48x32xf32>
      %cst_12 = arith.constant dense<0.000000e+00> : vector<48xf32>
      %20 = vector.multi_reduction <add>, %19, %cst_12 [1] : vector<48x32xf32> to vector<48xf32>
      %21 = vector.shape_cast %20 : vector<48xf32> to vector<48x1xf32>
      %cst_13 = arith.constant 3.200000e+01 : f32
      %22 = vector.broadcast %cst_13 : f32 to vector<48x1xf32>
      %23 = arith.divf %21, %22 : vector<48x1xf32>
      %24 = vector.broadcast %23 : vector<48x1xf32> to vector<48x32xf32>
      %25 = arith.subf %19, %24 : vector<48x32xf32>
      %26 = arith.mulf %25, %25 : vector<48x32xf32>
      %cst_14 = arith.constant dense<0.000000e+00> : vector<48xf32>
      %27 = vector.multi_reduction <add>, %26, %cst_14 [1] : vector<48x32xf32> to vector<48xf32>
      %28 = vector.shape_cast %27 : vector<48xf32> to vector<48x1xf32>
      %cst_15 = arith.constant 3.200000e+01 : f32
      %29 = vector.broadcast %cst_15 : f32 to vector<48x1xf32>
      %30 = arith.divf %28, %29 : vector<48x1xf32>
      %cst_16 = arith.constant 9.99999974E-6 : f32
      %31 = vector.broadcast %cst_16 : f32 to vector<48x1xf32>
      %32 = arith.addf %30, %31 : vector<48x1xf32>
      %33 = math.rsqrt %32 : vector<48x1xf32>
      %34 = vector.broadcast %33 : vector<48x1xf32> to vector<48x32xf32>
      %35 = arith.mulf %25, %34 : vector<48x32xf32>
      %c0_17 = arith.constant 0 : index
      %c0_18 = arith.constant 0 : index
      %36 = vector.load %arg3[%c0_17, %c0_18] : memref<1x32xf32, #tpu.memory_space<vmem>>, vector<1x32xf32>
      %37 = vector.broadcast %36 : vector<1x32xf32> to vector<48x32xf32>
      %38 = arith.mulf %35, %37 : vector<48x32xf32>
      %c0_19 = arith.constant 0 : index
      %c0_20 = arith.constant 0 : index
      %39 = vector.load %arg4[%c0_19, %c0_20] : memref<1x32xf32, #tpu.memory_space<vmem>>, vector<1x32xf32>
      %40 = vector.broadcast %39 : vector<1x32xf32> to vector<48x32xf32>
      %41 = arith.addf %38, %40 : vector<48x32xf32>
      %42 = arith.truncf %41 : vector<48x32xf32> to vector<48x32xbf16>
      %c0_21 = arith.constant 0 : index
      %c0_22 = arith.constant 0 : index
      %43 = vector.load %arg8[%c0_21, %c0_22] : memref<48x32xbf16, #tpu.memory_space<vmem>>, vector<48x32xbf16>
      tpu.vector_store %arg8[%c0_21, %c0_22], %42 {strides = array<i32>} : memref<48x32xbf16, #tpu.memory_space<vmem>>, vector<48x32xbf16>,
    } else {
    }
    %c0 = arith.constant 0 : index
    %c0_1 = arith.constant 0 : index
    %3 = vector.load %arg8[%c0, %c0_1] : memref<48x32xbf16, #tpu.memory_space<vmem>>, vector<48x32xbf16>
    %c0_2 = arith.constant 0 : index
    %c0_3 = arith.constant 0 : index
    %4 = vector.load %arg5[%c0_2, %c0_3] : memref<32x128xbf16, #tpu.memory_space<vmem>>, vector<32x128xbf16>
    %cst = arith.constant dense<0.000000e+00> : vector<48x128xf32>
    %5 = tpu.matmul %3, %4, %cst {dimension_numbers = #tpu.dot_dimension_numbers<[1], [0], [0], [1], [0, 0, 1, 1], [], []>} : vector<48x32xbf16>, vector<32x128xbf16>, vector<48x128xf32> -> vector<48x128xf32>
    %c0_4 = arith.constant 0 : index
    %c0_5 = arith.constant 0 : index
    %6 = vector.load %arg6[%c0_4, %c0_5] : memref<1x128xf32, #tpu.memory_space<vmem>>, vector<1x128xf32>
    %7 = vector.broadcast %6 : vector<1x128xf32> to vector<48x128xf32>
    %8 = arith.addf %5, %7 : vector<48x128xf32>
    %cst_6 = arith.constant 1.702000e+00 : f32
    %9 = vector.broadcast %cst_6 : f32 to vector<48x128xf32>
    %10 = arith.mulf %9, %8 : vector<48x128xf32>
    %11 = arith.negf %10 : vector<48x128xf32>
    %12 = math.exp %11 : vector<48x128xf32>
    %cst_7 = arith.constant 1.000000e+00 : f32
    %13 = vector.broadcast %cst_7 : f32 to vector<48x128xf32>
    %14 = arith.addf %13, %12 : vector<48x128xf32>
    %15 = arith.divf %13, %14 : vector<48x128xf32>
    %16 = arith.mulf %8, %15 : vector<48x128xf32>
    %17 = arith.truncf %16 : vector<48x128xf32> to vector<48x128xbf16>
    %c0_8 = arith.constant 0 : index
    %c0_9 = arith.constant 0 : index
    %18 = vector.load %arg7[%c0_8, %c0_9] : memref<48x128xbf16, #tpu.memory_space<vmem>>, vector<48x128xbf16>
    tpu.vector_store %arg7[%c0_8, %c0_9], %17 {strides = array<i32>} : memref<48x128xbf16, #tpu.memory_space<vmem>>, vector<48x128xbf16>,
    return
  }
  func.func @transform_0(%arg0: i32, %arg1: i32) -> (i32, i32) {
    %c0_i32 = arith.constant 0 : i32
    %c0_i32_0 = arith.constant 0 : i32
    return %arg0, %c0_i32 : i32, i32
  }
  func.func @transform_1(%arg0: i32, %arg1: i32) -> (i32, i32) {
    %c0_i32 = arith.constant 0 : i32
    %c0_i32_0 = arith.constant 0 : i32
    %c0_i32_1 = arith.constant 0 : i32
    return %c0_i32, %c0_i32_0 : i32, i32
  }
  func.func @transform_2(%arg0: i32, %arg1: i32) -> (i32, i32) {
    %c0_i32 = arith.constant 0 : i32
    %c0_i32_0 = arith.constant 0 : i32
    %c0_i32_1 = arith.constant 0 : i32
    return %c0_i32, %c0_i32_0 : i32, i32
  }
  func.func @transform_3(%arg0: i32, %arg1: i32) -> (i32, i32) {
    %c0_i32 = arith.constant 0 : i32
    %c0_i32_0 = arith.constant 0 : i32
    return %c0_i32, %arg1 : i32, i32
  }
  func.func @transform_4(%arg0: i32, %arg1: i32) -> (i32, i32) {
    %c0_i32 = arith.constant 0 : i32
    %c0_i32_0 = arith.constant 0 : i32
    return %c0_i32, %arg1 : i32, i32
  }
  func.func @transform_5(%arg0: i32, %arg1: i32) -> (i32, i32) {
    %c0_i32 = arith.constant 0 : i32
    return %arg0, %arg1 : i32, i32
  }
}

module attributes {stable_mosaic.version = 11 : i64} {
  func.func @kernel(%arg0: i32, %arg1: i32, %arg2: i32, %arg3: memref<48x128xbf16, #tpu.memory_space<vmem>>, %arg4: memref<128x32xbf16, #tpu.memory_space<vmem>>, %arg5: memref<1x32xf32, #tpu.memory_space<vmem>>, %arg6: memref<48x32xf32, #tpu.memory_space<vmem>>, %arg7: memref<48x32xf32, #tpu.memory_space<vmem>>, %arg8: memref<48x32xf32, #tpu.memory_space<vmem>>) attributes {dimension_semantics = [#tpu.dimension_semantics<parallel>, #tpu.dimension_semantics<parallel>, #tpu.dimension_semantics<arbitrary>], iteration_bounds = array<i64: 1, 1, 1>, scalar_prefetch = 0 : i64, scratch_operands = 1 : i64, tpu.core_type = #tpu.core_type<tc>, window_params = [{transform_indices = @transform_0, window_bounds = array<i64: 48, 128>}, {transform_indices = @transform_1, window_bounds = array<i64: 128, 32>}, {transform_indices = @transform_2, window_bounds = array<i64: 1, 32>}, {transform_indices = @transform_3, window_bounds = array<i64: 48, 32>}, {transform_indices = @transform_4, window_bounds = array<i64: 48, 32>}]} {
    %c0_i32 = arith.constant 0 : i32
    %0 = arith.cmpi eq, %arg2, %c0_i32 : i32
    %1 = arith.extui %0 : i1 to i32
    %c0_i32_0 = arith.constant 0 : i32
    %2 = arith.cmpi ne, %1, %c0_i32_0 : i32
    scf.if %2 {
      %cst_10 = arith.constant 0.000000e+00 : f32
      %12 = vector.broadcast %cst_10 : f32 to vector<48x32xf32>
      %c0_11 = arith.constant 0 : index
      %c0_12 = arith.constant 0 : index
      %13 = vector.load %arg8[%c0_11, %c0_12] : memref<48x32xf32, #tpu.memory_space<vmem>>, vector<48x32xf32>
      tpu.vector_store %arg8[%c0_11, %c0_12], %12 {strides = array<i32>} : memref<48x32xf32, #tpu.memory_space<vmem>>, vector<48x32xf32>,
    } else {
    }
    %c0 = arith.constant 0 : index
    %c0_1 = arith.constant 0 : index
    %3 = vector.load %arg3[%c0, %c0_1] : memref<48x128xbf16, #tpu.memory_space<vmem>>, vector<48x128xbf16>
    %c0_2 = arith.constant 0 : index
    %c0_3 = arith.constant 0 : index
    %4 = vector.load %arg8[%c0_2, %c0_3] : memref<48x32xf32, #tpu.memory_space<vmem>>, vector<48x32xf32>
    %c0_4 = arith.constant 0 : index
    %c0_5 = arith.constant 0 : index
    %5 = vector.load %arg4[%c0_4, %c0_5] : memref<128x32xbf16, #tpu.memory_space<vmem>>, vector<128x32xbf16>
    %cst = arith.constant dense<0.000000e+00> : vector<48x32xf32>
    %6 = tpu.matmul %3, %5, %cst {dimension_numbers = #tpu.dot_dimension_numbers<[1], [0], [0], [1], [0, 0, 1, 1], [], []>} : vector<48x128xbf16>, vector<128x32xbf16>, vector<48x32xf32> -> vector<48x32xf32>
    %7 = arith.addf %4, %6 : vector<48x32xf32>
    %c0_6 = arith.constant 0 : index
    %c0_7 = arith.constant 0 : index
    %8 = vector.load %arg8[%c0_6, %c0_7] : memref<48x32xf32, #tpu.memory_space<vmem>>, vector<48x32xf32>
    tpu.vector_store %arg8[%c0_6, %c0_7], %7 {strides = array<i32>} : memref<48x32xf32, #tpu.memory_space<vmem>>, vector<48x32xf32>,
    %c0_i32_8 = arith.constant 0 : i32
    %9 = arith.cmpi eq, %arg2, %c0_i32_8 : i32
    %10 = arith.extui %9 : i1 to i32
    %c0_i32_9 = arith.constant 0 : i32
    %11 = arith.cmpi ne, %10, %c0_i32_9 : i32
    scf.if %11 {
      %c0_10 = arith.constant 0 : index
      %c0_11 = arith.constant 0 : index
      %12 = vector.load %arg8[%c0_10, %c0_11] : memref<48x32xf32, #tpu.memory_space<vmem>>, vector<48x32xf32>
      %c0_12 = arith.constant 0 : index
      %c0_13 = arith.constant 0 : index
      %13 = vector.load %arg5[%c0_12, %c0_13] : memref<1x32xf32, #tpu.memory_space<vmem>>, vector<1x32xf32>
      %14 = vector.broadcast %13 : vector<1x32xf32> to vector<48x32xf32>
      %15 = arith.addf %12, %14 : vector<48x32xf32>
      %c0_14 = arith.constant 0 : index
      %c0_15 = arith.constant 0 : index
      %16 = vector.load %arg6[%c0_14, %c0_15] : memref<48x32xf32, #tpu.memory_space<vmem>>, vector<48x32xf32>
      %17 = arith.addf %15, %16 : vector<48x32xf32>
      %c0_16 = arith.constant 0 : index
      %c0_17 = arith.constant 0 : index
      %18 = vector.load %arg7[%c0_16, %c0_17] : memref<48x32xf32, #tpu.memory_space<vmem>>, vector<48x32xf32>
      tpu.vector_store %arg7[%c0_16, %c0_17], %17 {strides = array<i32>} : memref<48x32xf32, #tpu.memory_space<vmem>>, vector<48x32xf32>,
    } else {
    }
    return
  }
  func.func @transform_0(%arg0: i32, %arg1: i32, %arg2: i32) -> (i32, i32) {
    %c0_i32 = arith.constant 0 : i32
    return %arg0, %arg2 : i32, i32
  }
  func.func @transform_1(%arg0: i32, %arg1: i32, %arg2: i32) -> (i32, i32) {
    %c0_i32 = arith.constant 0 : i32
    return %arg2, %arg1 : i32, i32
  }
  func.func @transform_2(%arg0: i32, %arg1: i32, %arg2: i32) -> (i32, i32) {
    %c0_i32 = arith.constant 0 : i32
    %c0_i32_0 = arith.constant 0 : i32
    return %c0_i32, %arg1 : i32, i32
  }
  func.func @transform_3(%arg0: i32, %arg1: i32, %arg2: i32) -> (i32, i32) {
    %c0_i32 = arith.constant 0 : i32
    return %arg0, %arg1 : i32, i32
  }
  func.func @transform_4(%arg0: i32, %arg1: i32, %arg2: i32) -> (i32, i32) {
    %c0_i32 = arith.constant 0 : i32
    return %arg0, %arg1 : i32, i32
  }
}

module attributes {stable_mosaic.version = 11 : i64} {
  func.func @kernel(%arg0: i32, %arg1: memref<2x32xf32, #tpu.memory_space<vmem>>, %arg2: memref<1x32xf32, #tpu.memory_space<vmem>>, %arg3: memref<1x32xf32, #tpu.memory_space<vmem>>, %arg4: memref<32x64xbf16, #tpu.memory_space<vmem>>, %arg5: memref<2x64xf32, #tpu.memory_space<vmem>>) attributes {dimension_semantics = [#tpu.dimension_semantics<arbitrary>], iteration_bounds = array<i64: 1>, scalar_prefetch = 0 : i64, scratch_operands = 0 : i64, tpu.core_type = #tpu.core_type<tc>, window_params = [{pipeline_mode = #tpu.pipeline_mode<synchronous>, transform_indices = @transform_0, window_bounds = array<i64: 2, 32>}, {pipeline_mode = #tpu.pipeline_mode<synchronous>, transform_indices = @transform_1, window_bounds = array<i64: 1, 32>}, {pipeline_mode = #tpu.pipeline_mode<synchronous>, transform_indices = @transform_2, window_bounds = array<i64: 1, 32>}, {pipeline_mode = #tpu.pipeline_mode<synchronous>, transform_indices = @transform_3, window_bounds = array<i64: 32, 64>}, {pipeline_mode = #tpu.pipeline_mode<synchronous>, transform_indices = @transform_4, window_bounds = array<i64: 2, 64>}]} {
    %c0 = arith.constant 0 : index
    %c0_0 = arith.constant 0 : index
    %0 = vector.load %arg1[%c0, %c0_0] : memref<2x32xf32, #tpu.memory_space<vmem>>, vector<2x32xf32>
    %cst = arith.constant dense<0.000000e+00> : vector<2xf32>
    %1 = vector.multi_reduction <add>, %0, %cst [1] : vector<2x32xf32> to vector<2xf32>
    %2 = vector.shape_cast %1 : vector<2xf32> to vector<2x1xf32>
    %cst_1 = arith.constant 3.200000e+01 : f32
    %3 = vector.broadcast %cst_1 : f32 to vector<2x1xf32>
    %4 = arith.divf %2, %3 : vector<2x1xf32>
    %5 = vector.broadcast %4 : vector<2x1xf32> to vector<2x32xf32>
    %6 = arith.subf %0, %5 : vector<2x32xf32>
    %7 = arith.mulf %6, %6 : vector<2x32xf32>
    %cst_2 = arith.constant dense<0.000000e+00> : vector<2xf32>
    %8 = vector.multi_reduction <add>, %7, %cst_2 [1] : vector<2x32xf32> to vector<2xf32>
    %9 = vector.shape_cast %8 : vector<2xf32> to vector<2x1xf32>
    %cst_3 = arith.constant 3.200000e+01 : f32
    %10 = vector.broadcast %cst_3 : f32 to vector<2x1xf32>
    %11 = arith.divf %9, %10 : vector<2x1xf32>
    %cst_4 = arith.constant 9.99999974E-6 : f32
    %12 = vector.broadcast %cst_4 : f32 to vector<2x1xf32>
    %13 = arith.addf %11, %12 : vector<2x1xf32>
    %14 = math.rsqrt %13 : vector<2x1xf32>
    %15 = vector.broadcast %14 : vector<2x1xf32> to vector<2x32xf32>
    %16 = arith.mulf %6, %15 : vector<2x32xf32>
    %c0_5 = arith.constant 0 : index
    %c0_6 = arith.constant 0 : index
    %17 = vector.load %arg2[%c0_5, %c0_6] : memref<1x32xf32, #tpu.memory_space<vmem>>, vector<1x32xf32>
    %18 = vector.broadcast %17 : vector<1x32xf32> to vector<2x32xf32>
    %19 = arith.mulf %16, %18 : vector<2x32xf32>
    %c0_7 = arith.constant 0 : index
    %c0_8 = arith.constant 0 : index
    %20 = vector.load %arg3[%c0_7, %c0_8] : memref<1x32xf32, #tpu.memory_space<vmem>>, vector<1x32xf32>
    %21 = vector.broadcast %20 : vector<1x32xf32> to vector<2x32xf32>
    %22 = arith.addf %19, %21 : vector<2x32xf32>
    %23 = arith.truncf %22 : vector<2x32xf32> to vector<2x32xbf16>
    %c0_9 = arith.constant 0 : index
    %c0_10 = arith.constant 0 : index
    %24 = vector.load %arg4[%c0_9, %c0_10] : memref<32x64xbf16, #tpu.memory_space<vmem>>, vector<32x64xbf16>
    %cst_11 = arith.constant dense<0.000000e+00> : vector<2x64xf32>
    %25 = tpu.matmul %23, %24, %cst_11 {dimension_numbers = #tpu.dot_dimension_numbers<[1], [0], [0], [1], [0, 0, 1, 1], [], []>} : vector<2x32xbf16>, vector<32x64xbf16>, vector<2x64xf32> -> vector<2x64xf32>
    %c0_12 = arith.constant 0 : index
    %c0_13 = arith.constant 0 : index
    %26 = vector.load %arg5[%c0_12, %c0_13] : memref<2x64xf32, #tpu.memory_space<vmem>>, vector<2x64xf32>
    tpu.vector_store %arg5[%c0_12, %c0_13], %25 {strides = array<i32>} : memref<2x64xf32, #tpu.memory_space<vmem>>, vector<2x64xf32>,
    return
  }
  func.func @transform_0(%arg0: i32) -> (i32, i32) {
    %c0_i32 = arith.constant 0 : i32
    %c0_i32_0 = arith.constant 0 : i32
    %c0_i32_1 = arith.constant 0 : i32
    return %c0_i32, %c0_i32_0 : i32, i32
  }
  func.func @transform_1(%arg0: i32) -> (i32, i32) {
    %c0_i32 = arith.constant 0 : i32
    %c0_i32_0 = arith.constant 0 : i32
    %c0_i32_1 = arith.constant 0 : i32
    return %c0_i32, %c0_i32_0 : i32, i32
  }
  func.func @transform_2(%arg0: i32) -> (i32, i32) {
    %c0_i32 = arith.constant 0 : i32
    %c0_i32_0 = arith.constant 0 : i32
    %c0_i32_1 = arith.constant 0 : i32
    return %c0_i32, %c0_i32_0 : i32, i32
  }
  func.func @transform_3(%arg0: i32) -> (i32, i32) {
    %c0_i32 = arith.constant 0 : i32
    %c0_i32_0 = arith.constant 0 : i32
    %c0_i32_1 = arith.constant 0 : i32
    return %c0_i32, %c0_i32_0 : i32, i32
  }
  func.func @transform_4(%arg0: i32) -> (i32, i32) {
    %c0_i32 = arith.constant 0 : i32
    %c0_i32_0 = arith.constant 0 : i32
    %c0_i32_1 = arith.constant 0 : i32
    return %c0_i32, %c0_i32_0 : i32, i32
  }
}

</mosaic_0001>

<bundles_post_ra>
// kernel: _lambda_.15
= control target key start
LH: loop header
LB: loop body
LE: loop exit
PB: predicated region body
PF: predicated region fallthrough
CT: control target
= control target key end

     0   :  { %8 = vsyncpa [#allocation4], 0  ;;  %s554_s0 = inlined_call_operand.hbm [shape: f32[32,192], index: 0, kind: input, shape index: {}]   ;;  %s555_s1 = inlined_call_operand.hbm [shape: bf16[192,32], index: 1, kind: input, shape index: {}]   ;;  %s556_s2 = inlined_call_operand.hbm [shape: f32[1,32], index: 2, kind: input, shape index: {}]   ;;  %s557_s3 = inlined_call_operand.hbm [shape: f32[32,32], index: 3, kind: output, shape index: {}]  }
   0x1   :  { %9 = vsyncpa [#allocation7], 0 }
   0x2   :  { %10 = vsyncpa [#allocation5], 0  ;;  %s438_s12 = smov [#allocation6]   ;;  %s344_s16 = scalar_lea.hbm %s555_s1, 1536 }
   0x3   :  { %s28_s13 = sshll.u32 %s438_s12, 4  ;;  %p345_p0 = scmp.ne.s32.totalorder %s555_s1, %s344_s16  ;;  %s29_s13 = int_to_ptr.vmem [resolvable:$true] %s28_s13 }
   0x4   :  { %p348_p1 = scmp.lt.u32.totalorder %s344_s16, %s555_s1 }
   0x6   :  { %p350_p2 = pnand %p348_p1, %p345_p0 }
   0x8   :  { %353 = shalt.err (!%p350_p2)
}
   0x9   :  { %s354_s21 = scalar_lea.vmem %s29_s13, 1536  ;;  %p359_p4 = scmp.lt.s32.totalorder %s29_s13, %s29_s13 }
   0xa   :  { %p355_p3 = scmp.ne.s32.totalorder %s29_s13, %s354_s21  ;;  %p360_p5 = scmp.lt.s32.totalorder %s354_s21, %s354_s21 }
   0xc   :  { %p361_p6 = por %p360_p5, %p359_p4 }
   0xe   :  { %p362_p7 = pnand %p361_p6, %p355_p3 }
  0x10   :  { %365 = shalt.err (!%p362_p7)
}
  0x11   :  { %s439_s22 = smov 64   ;;  %s440_s23 = smov 4  }
  0x12   :  { %34 = dma.hbm_to_vmem [thread:$0]  %s555_s1, 1536, %s29_s13, [#allocation7], %s439_s22, %s439_s22, %s440_s23  }
  0x13   :  { %s441_s26 = smov [#allocation3]   ;;  %s366_s30 = scalar_lea.hbm %s554_s0, 1024 }
  0x14   :  { %s16_s27 = sshll.u32 %s441_s26, 4  ;;  %p367_p8 = scmp.ne.s32.totalorder %s554_s0, %s366_s30  ;;  %s17_s27 = int_to_ptr.vmem [resolvable:$true] %s16_s27 }
  0x15   :  { %p370_p9 = scmp.lt.u32.totalorder %s366_s30, %s554_s0 }
  0x17   :  { %p372_p10 = pnand %p370_p9, %p367_p8 }
  0x19   :  { %375 = shalt.err (!%p372_p10)
}
  0x1a   :  { %s376_s8 = scalar_lea.vmem %s17_s27, 1024  ;;  %p381_p12 = scmp.lt.s32.totalorder %s17_s27, %s17_s27 }
  0x1b   :  { %p377_p11 = scmp.ne.s32.totalorder %s17_s27, %s376_s8  ;;  %p382_p13 = scmp.lt.s32.totalorder %s376_s8, %s376_s8 }
  0x1d   :  { %p383_p0 = por %p382_p13, %p381_p12 }
  0x1f   :  { %p384_p1 = pnand %p383_p0, %p377_p11 }
  0x21   :  { %387 = shalt.err (!%p384_p1)
}
  0x22   :  { %s442_s1 = smov 256   ;;  %s443_s9 = smov 16  }
  0x23   :  { %22 = dma.hbm_to_vmem [thread:$0]  %s554_s0, 1024, %s17_s27, [#allocation4], %s442_s1, %s442_s1, %s443_s9  }
  0x24   :  { %s444_s12 = smov [#allocation8]   ;;  %s388_s16 = scalar_lea.hbm %s556_s2, 16 }
  0x25   :  { %s41_s13 = sshll.u32 %s444_s12, 4  ;;  %p389_p2 = scmp.ne.s32.totalorder %s556_s2, %s388_s16  ;;  %s42_s13 = int_to_ptr.vmem [resolvable:$true] %s41_s13 }
  0x26   :  { %p392_p3 = scmp.lt.u32.totalorder %s388_s16, %s556_s2 }
  0x28   :  { %p394_p4 = pnand %p392_p3, %p389_p2 }
  0x2a   :  { %397 = shalt.err (!%p394_p4)
}
  0x2b   :  { %s398_s21 = scalar_lea.vmem %s42_s13, 16  ;;  %s402_s0 = scalar_lea.vmem %s42_s13, 32 }
  0x2c   :  { %p399_p5 = scmp.ne.s32.totalorder %s42_s13, %s398_s21  ;;  %p403_p6 = scmp.lt.s32.totalorder %s42_s13, %s42_s13 }
  0x2d   :  { %p404_p7 = scmp.lt.s32.totalorder %s402_s0, %s398_s21 }
  0x2f   :  { %p405_p8 = por %p404_p7, %p403_p6 }
  0x31   :  { %p406_p9 = pnand %p405_p8, %p399_p5 }
  0x33   :  { %409 = shalt.err (!%p406_p9)
}
  0x34   :  { %44 = dma.hbm_to_vmem [thread:$0]  %s556_s2, 16, %s42_s13, [#allocation7]  }
  0x35   :  { %432 = dma.done.wait [#allocation4], 1024  }
  0x36   :  { %433 = vsyncadd [#allocation4], 4294966272 }
  0x37   :  { %434 = dma.done.wait [#allocation7], 1552  }
  0x38   :  { %435 = vsyncadd [#allocation7], 4294965744  ;;  %vm59_vm0 = vcmask 261120   ;;  %v445_v0 = vmov 0   ;;  %v446_v1 = vmov 0.0   ;;  %v332_v2 = vld [vmem:[#allocation6] sm:$0xff]  }
  0x39   :  { %183 = vmatprep.subr.bf16.mxu0 %v445_v0  ;;  %296 = vmatprep.subr.bf16.mxu1 %v445_v0  ;;  %60 = vst.msk [vmem:[#allocation2] sm:$0xff] %vm59_vm0, %v446_v1  ;;  %61 = vst.msk [vmem:[#allocation2 + $0x8] sm:$0xff] %vm59_vm0, %v446_v1  ;;  %v333_v3 = vld [vmem:[#allocation6 + $0x8] sm:$0xff]   ;;  %v334_v4 = vld [vmem:[#allocation6 + $0x10] sm:$0xff]   ;;  %vm176_vm1 = vcmask 523264   ;;  %s447_s2 = smov [#allocation9]  }
  0x3a   :  { %62 = vst.msk [vmem:[#allocation2 + $0x10] sm:$0xff] %vm59_vm0, %v446_v1  ;;  %63 = vst.msk [vmem:[#allocation2 + $0x18] sm:$0xff] %vm59_vm0, %v446_v1  ;;  %184 = vmatpush1.bf16.msra.mxu0 %v332_v2  ;;  %308 = vmatpush1.bf16.msra.mxu1 %v332_v2  ;;  %v335_v5 = vld [vmem:[#allocation6 + $0x18] sm:$0xff]   ;;  %v65_v6 = vld [vmem:[#allocation3 + $0x8] sm:$0xff]  ;;  %s268_s24 = sshll.u32 %s447_s2, 4  ;;  %s269_s24 = int_to_ptr.vmem [resolvable:$true] %s268_s24 }
  0x3b   :  { %185 = vmatprep.subr.bf16.mxu0 %v445_v0  ;;  %297 = vmatprep.subr.bf16.mxu1 %v445_v0  ;;  %v67_v7 = vld [vmem:[#allocation3 + $0x18] sm:$0xff]  ;;  %v69_v8 = vld [vmem:[#allocation3 + $0x28] sm:$0xff]  ;;  %v336_v11 = vld [vmem:[#allocation6 + $0x20] sm:$0xff]   ;;  %s410_s25 = scalar_lea.vmem %s269_s24, 512  ;;  %p415_p11 = scmp.lt.s32.totalorder %s269_s24, %s269_s24 }
  0x3c   :  { %v73_v9 = vpack.c.bf16 %v67_v7, %v65_v6  ;;  %v71_v10 = vld [vmem:[#allocation3 + $0x38] sm:$0xff]  ;;  %v337_v13 = vld [vmem:[#allocation6 + $0x28] sm:$0xff]   ;;  %v338_v14 = vld [vmem:[#allocation6 + $0x30] sm:$0xff]   ;;  %p411_p10 = scmp.ne.s32.totalorder %s269_s24, %s410_s25  ;;  %p416_p12 = scmp.lt.s32.totalorder %s410_s25, %s410_s25 }
  0x3d   :  { %v75_v12 = vpack.c.bf16 %v71_v10, %v69_v8  ;;  %v339_v15 = vld [vmem:[#allocation6 + $0x38] sm:$0xff]   ;;  %v340_v16 = vld [vmem:[#allocation6 + $0x40] sm:$0xff]   ;;  %v341_v17 = vld [vmem:[#allocation6 + $0x48] sm:$0xff]  }
  0x3e   :  { %186 = vmatpush1.bf16.msra.mxu0 %v333_v3  ;;  %309 = vmatpush1.bf16.msra.mxu1 %v333_v3  ;;  %v342_v18 = vld [vmem:[#allocation6 + $0x50] sm:$0xff]   ;;  %v343_v19 = vld [vmem:[#allocation6 + $0x58] sm:$0xff]   ;;  %v64_v20 = vld [vmem:[#allocation3] sm:$0xff]  ;;  %p417_p13 = por %p416_p12, %p415_p11 }
  0x3f   :  { %187 = vmatprep.subr.bf16.mxu0 %v445_v0  ;;  %298 = vmatprep.subr.bf16.mxu1 %v445_v0  ;;  %v66_v21 = vld [vmem:[#allocation3 + $0x10] sm:$0xff]  ;;  %v68_v22 = vld [vmem:[#allocation3 + $0x20] sm:$0xff] }
  0x40   :  { %293 = vmatprep.mubr.msk.bf16.mxu0 %vm176_vm1, %v73_v9  ;;  %294 = vmatprep.mubr.msk.bf16.mxu1 %vm176_vm1, %v75_v12  ;;  %v70_v23 = vld [vmem:[#allocation3 + $0x30] sm:$0xff]  ;;  %v72_v24 = vpack.c.bf16 %v66_v21, %v64_v20  ;;  %v76_v26 = vld [vmem:[#allocation2] sm:$0xff]  ;;  %v77_v30 = vld [vmem:[#allocation2 + $0x8] sm:$0xff]  ;;  %p418_p0 = pnand %p417_p13, %p411_p10 }
  0x41   :  { %v74_v25 = vpack.c.bf16 %v70_v23, %v68_v22  ;;  %v78_v27 = vld [vmem:[#allocation2 + $0x10] sm:$0xff]  ;;  %v79_v31 = vld [vmem:[#allocation2 + $0x18] sm:$0xff]  ;;  %v295_v42 = vld [vmem:[#allocation8] ss:$0 sm:$0xff] }
  0x42   :  { %188 = vmatpush1.bf16.msra.mxu0 %v334_v4  ;;  %310 = vmatpush1.bf16.msra.mxu1 %v334_v4 }
  0x43   :  { %189 = vmatprep.subr.bf16.mxu0 %v445_v0  ;;  %299 = vmatprep.subr.bf16.mxu1 %v445_v0 }
  0x46   :  { %190 = vmatpush1.bf16.msra.mxu0 %v335_v5  ;;  %311 = vmatpush1.bf16.msra.mxu1 %v335_v5 }
  0x47   :  { %191 = vmatprep.subr.bf16.mxu0 %v445_v0  ;;  %300 = vmatprep.subr.bf16.mxu1 %v445_v0 }
  0x4a   :  { %192 = vmatpush1.bf16.msra.mxu0 %v336_v11  ;;  %312 = vmatpush1.bf16.msra.mxu1 %v336_v11 }
  0x4b   :  { %193 = vmatprep.subr.bf16.mxu0 %v445_v0  ;;  %301 = vmatprep.subr.bf16.mxu1 %v445_v0 }
  0x4e   :  { %194 = vmatpush1.bf16.msra.mxu0 %v337_v13  ;;  %313 = vmatpush1.bf16.msra.mxu1 %v337_v13 }
  0x4f   :  { %195 = vmatprep.subr.bf16.mxu0 %v445_v0  ;;  %302 = vmatprep.subr.bf16.mxu1 %v445_v0 }
  0x52   :  { %196 = vmatpush1.bf16.msra.mxu0 %v338_v14  ;;  %314 = vmatpush1.bf16.msra.mxu1 %v338_v14 }
  0x53   :  { %197 = vmatprep.subr.bf16.mxu0 %v445_v0  ;;  %303 = vmatprep.subr.bf16.mxu1 %v445_v0 }
  0x56   :  { %198 = vmatpush1.bf16.msra.mxu0 %v339_v15  ;;  %315 = vmatpush1.bf16.msra.mxu1 %v339_v15 }
  0x57   :  { %199 = vmatprep.subr.bf16.mxu0 %v445_v0  ;;  %304 = vmatprep.subr.bf16.mxu1 %v445_v0 }
  0x5a   :  { %200 = vmatpush1.bf16.msra.mxu0 %v340_v16  ;;  %316 = vmatpush1.bf16.msra.mxu1 %v340_v16 }
  0x5b   :  { %201 = vmatprep.subr.bf16.mxu0 %v445_v0  ;;  %305 = vmatprep.subr.bf16.mxu1 %v445_v0 }
  0x5e   :  { %202 = vmatpush1.bf16.msra.mxu0 %v341_v17  ;;  %317 = vmatpush1.bf16.msra.mxu1 %v341_v17 }
  0x5f   :  { %203 = vmatprep.subr.bf16.mxu0 %v445_v0  ;;  %306 = vmatprep.subr.bf16.mxu1 %v445_v0 }
  0x62   :  { %204 = vmatpush1.bf16.msra.mxu0 %v342_v18  ;;  %318 = vmatpush1.bf16.msra.mxu1 %v342_v18 }
  0x63   :  { %205 = vmatprep.subr.bf16.mxu0 %v445_v0  ;;  %307 = vmatprep.subr.bf16.mxu1 %v445_v0 }
  0x66   :  { %206 = vmatpush1.bf16.msra.mxu0 %v343_v19  ;;  %319 = vmatpush1.bf16.msra.mxu1 %v343_v19 }
  0x69   :  { %216 = vmatmul.mubr.bf16.vlgmr.msra.gmra.mrb[0].mxu0 %v72_v24  ;;  %224 = vmatmul.mubr.bf16.vlgmr.msra.gmra.mrb[0].mxu1 %v74_v25 }
 0x13c   :  { %v217_v28 = vpop.f32.mrb[0].mxu0  ;;  %v225_v29 = vpop.f32.mrb[0].mxu1 }
 0x13d   :  { %v232_v32 = vadd.f32 %v217_v28, %v76_v26  ;;  %v234_v33 = vadd.f32 %v225_v29, %v78_v27  ;;  %v219_v34 = vpop.f32.mrb[1].mxu0  ;;  %v227_v35 = vpop.f32.mrb[1].mxu1 }
 0x13e   :  { %v220_v36 = vpop.f32.mrb[2].mxu0  ;;  %v228_v37 = vpop.f32.mrb[2].mxu1 }
 0x13f   :  { %237 = vst.msk [vmem:[#allocation2] sm:$0xff] %vm59_vm0, %v232_v32  ;;  %239 = vst.msk [vmem:[#allocation2 + $0x10] sm:$0xff] %vm59_vm0, %v234_v33  ;;  %v233_v38 = vadd.f32 %v220_v36, %v77_v30  ;;  %v235_v39 = vadd.f32 %v228_v37, %v79_v31  ;;  %v222_v40 = vpop.f32.mrb[3].mxu0  ;;  %v230_v41 = vpop.f32.mrb[3].mxu1 }
 0x141   :  { %238 = vst.msk [vmem:[#allocation2 + $0x8] sm:$0xff] %vm59_vm0, %v233_v38  ;;  %240 = vst.msk [vmem:[#allocation2 + $0x18] sm:$0xff] %vm59_vm0, %v235_v39 }
 0x146   :  { %v244_v43 = vld [vmem:[#allocation2] sm:$0xff]  ;;  %v246_v44 = vld [vmem:[#allocation2 + $0x10] sm:$0xff] }
 0x147   :  { %v255_v45 = vadd.f32 %v295_v42, %v244_v43  ;;  %v257_v46 = vadd.f32 %v295_v42, %v246_v44 }
 0x148   :  { %v245_v47 = vld [vmem:[#allocation2 + $0x8] sm:$0xff]  ;;  %v247_v48 = vld [vmem:[#allocation2 + $0x18] sm:$0xff] }
 0x149   :  { %v256_v49 = vadd.f32 %v295_v42, %v245_v47  ;;  %v258_v50 = vadd.f32 %v295_v42, %v247_v48  ;;  %259 = vst.msk [vmem:[#allocation9] sm:$0xff] %vm59_vm0, %v255_v45  ;;  %261 = vst.msk [vmem:[#allocation9 + $0x10] sm:$0xff] %vm59_vm0, %v257_v46 }
 0x14b   :  { %260 = vst.msk [vmem:[#allocation9 + $0x8] sm:$0xff] %vm59_vm0, %v256_v49  ;;  %262 = vst.msk [vmem:[#allocation9 + $0x18] sm:$0xff] %vm59_vm0, %v258_v50 }
 0x14c   :  { %421 = shalt.err (!%p418_p0)
}
 0x14d   :  { %s422_s28 = scalar_lea.hbm %s557_s3, 512 }
 0x14e   :  { %p423_p1 = scmp.ne.s32.totalorder %s557_s3, %s422_s28  ;;  %p426_p2 = scmp.lt.u32.totalorder %s422_s28, %s557_s3 }
 0x150   :  { %p428_p3 = pnand %p426_p2, %p423_p1 }
 0x152   :  { %431 = shalt.err (!%p428_p3)
}
 0x153   :  { %s448_s6 = smov 128   ;;  %s449_s7 = smov 8  }
 0x154   :  { %274 = dma.vmem_to_hbm [thread:$0]  %s269_s24, 512, %s557_s3, [#allocation5], %s448_s6, %s448_s6, %s449_s7  }
 0x155   :  { %436 = dma.done.wait [#allocation5], 512  }
 0x156   :  { %437 = vsyncadd [#allocation5], 4294966784 }
 0x157   :  { %278 = vsyncpa [#allocation4], 1 }
 0x158   :  { %279 = vsyncpa [#allocation7], 1 }
 0x159   :  { %280 = vsyncpa [#allocation5], 1 }

// kernel: _lambda_.14
= control target key start
LH: loop header
LB: loop body
LE: loop exit
PB: predicated region body
PF: predicated region fallthrough
CT: control target
= control target key end

     0   :  { %10 = vsyncpa [#allocation4], 0  ;;  %s1391_s0 = inlined_call_operand.vmem [shape: f32[3], index: 0, kind: input, shape index: {}]   ;;  %s1392_s1 = inlined_call_operand.vmem [shape: f32[3], index: 1, kind: input, shape index: {}]   ;;  %s1393_s2 = inlined_call_operand.hbm [shape: f32[2,3,16,16], index: 2, kind: input, shape index: {}]   ;;  %s1394_s3 = inlined_call_operand.vmem [shape: f32[32,16], index: 3, kind: input, shape index: {}, may-alias: {3,4}]   ;;  %s1395_s4 = inlined_call_operand.vmem [shape: f32[32,16], index: 4, kind: input, shape index: {}, may-alias: {3,4}]   ;;  %s1396_s5 = inlined_call_operand.vmem [shape: f32[2,3,32,32], index: 5, kind: output, shape index: {}]  }
   0x1   :  { %11 = vsyncpa [#allocation6], 0 }
   0x2   :  { %12 = vsyncpa [#allocation3], 0 }
   0x3   :  { %14 = vsyncpa [#allocation3 + $0x1], 0  ;;  %s1169_s18 = smov 0   ;;  %s1171_s19 = smov 0  }
   0x4   :  { %s1173_s20 = smov 0   ;;  %s1175_s21 = smov 0  }
   0x5 LB: > { %s1188_s22 = sadd.s32 4294967295, %s1132_s21   ;;  %s1191_s23 = sadd.s32 1, %s1132_s21   ;;  %s1132_s21 = sphi %s1175_s21, %s1416_s21   ;;  %s1128_s20 = sphi %s1173_s20, %s1415_s20   ;;  %s1124_s19 = sphi %s1171_s19, %s1414_s19   ;;  %s1120_s18 = sphi %s1169_s18, %s1413_s18  }
   0x6   : > { %s66_s24 = ssub.s32 %s1132_s21, %s1191_s23  ;;  %s69_s25 = sadd.s32 1, %s1128_s20 }
   0x7   : > { %p67_p0 = scmp.eq.s32.totalorder %s66_s24, 0  ;;  %p76_p1 = scmp.ne.s32.totalorder %s1128_s20, %s1124_s19 }
   0x8   : > { %p77_p2 = scmp.eq.s32.totalorder %s1132_s21, 0  ;;  %p82_p3 = scmp.ne.s32.totalorder %s1124_s19, %s1120_s18 }
   0x9   : > { %s1201_s26 = scalar_select %p67_p0, %s1128_s20, %s69_s25  }
   0xa   : > { %p1203_p4 = por %p77_p2, %p76_p1  ;;  %p1397_p5 = scmp.eq.s32.totalorder %s1188_s22, 0 }
   0xb   : > { %p820_p6 = scmp.ge.s32.totalorder %s1132_s21, 1  ;;  %p161_p7 = scmp.lt.s32.totalorder %s1132_s21, 3 }
   0xc   : > { %p1212_p8 = por %p1397_p5, %p82_p3  ;;  %s174_s7 = sshll.u32 %s1391_s0, 4  ;;  %s175_s7 = int_to_ptr.vmem [resolvable:$true] %s174_s7 }
   0xd   : > { %p1216_p9 = pnand %p820_p6, %p161_p7  ;;  %p991_p11 = scmp.lt.s32.totalorder %s1132_s21, 2 }
   0xe   : > { %s1402_s28 = scalar_select %p1212_p8, 1, 0 }
   0xf   : > { %s1403_s29 = scalar_select %p1216_p9, 1, 0 }
  0x10   : > { %p978_p10 = pneg %p1216_p9  ;;  %s185_s10 = sshll.u32 %s1392_s1, 4  ;;  %s186_s10 = int_to_ptr.vmem [resolvable:$true] %s185_s10 }
  0x11   : > { %p1237_p13 = pnand %p991_p11, %p1203_p4  ;;  %s202_s13 = sand.u32 1, %s1128_s20  }
  0x12   : > { %p1231_p12 = pnand %p978_p10, %p1397_p5  ;;  %s1030_s14 = scalar_lea.vmem %s175_s7, 16 }
  0x13   : > { %s1405_s12 = scalar_select %p1237_p13, 1, 0 }
  0x14   : > { %p1031_p0 = scmp.ne.s32.totalorder %s175_s7, %s1030_s14  ;;  %p1032_p1 = pneg %p1231_p12 }
  0x15   : > { %p1038_p6 = scmp.lt.s32.totalorder %s175_s7, %s175_s7  ;;  %p1039_p7 = scmp.lt.s32.totalorder %s1030_s14, %s1030_s14 }
  0x16   : > { %p1033_p2 = pnand %p1032_p1, %p1031_p0 }
  0x17   : > { %p1040_p10 = por %p1039_p7, %p1038_p6 }
  0x18   : > { %p1034_p3 = pneg %p1033_p2 }
  0x1a   : > { %p1041_p5 = pnand %p1040_p10, %p1034_p3 }
  0x1c   : > { %1044 = shalt.err (!%p1041_p5)
}
  0x1d   : > { %s1134_s15 = smov [#allocation2]   ;;  %s1045_s16 = scalar_lea.vmem %s186_s10, 16 }
  0x1e   : > { %981 = dma.vmem_to_smem (!%p1231_p12), %s175_s7, 16, %s1134_s15, [#allocation4]  }
  0x1f   : > { %p1046_p4 = scmp.ne.s32.totalorder %s186_s10, %s1045_s16  ;;  %p1053_p9 = scmp.lt.s32.totalorder %s186_s10, %s186_s10 }
  0x20   : > { %p1054_p13 = scmp.lt.s32.totalorder %s1045_s16, %s1045_s16 }
  0x21   : > { %p1048_p11 = pnand %p1046_p4, %p1032_p1 }
  0x22   : > { %p1055_p0 = por %p1054_p13, %p1053_p9 }
  0x23   : > { %p1049_p8 = pneg %p1048_p11 }
  0x25   : > { %p1056_p2 = pnand %p1055_p0, %p1049_p8 }
  0x27   : > { %1059 = shalt.err (!%p1056_p2)
}
  0x28   : > { %s1135_s17 = smov [#allocation5]   ;;  %s964_s18 = smul.u32 48, %s202_s13 }
  0x29   : > { %984 = dma.vmem_to_smem (!%p1231_p12), %s186_s10, 16, %s1135_s17, [#allocation6]  }
  0x2a   : > { %s965_s24 = smul.u32 768, %s1132_s21  ;;  %s206_s6 = scalar_lea.vmem [#allocation7], %s964_s18 }
  0x2b   : > { %s213_s7 = sshll.u32 %s206_s6, 4  ;;  %s1260_s8 = scalar_lea.sflag [#allocation3], %s202_s13  ;;  %s1256_s7 = int_to_ptr.vmem [resolvable:$true] %s213_s7 }
  0x2c   : > { %s1254_s30 = scalar_lea.hbm %s1393_s2, %s965_s24  ;;  %p1406_p8 = scmp.ne.s32.totalorder %s1405_s12, 0 }
  0x2d   : > { %s1060_s9 = scalar_lea.hbm %s1254_s30, 768  ;;  %s1065_s11 = scalar_lea.hbm %s1393_s2, 1536 }
  0x2e   : > { %p1061_p5 = scmp.ne.s32.totalorder %s1254_s30, %s1060_s9  ;;  %p1062_p9 = pneg %p1406_p8 }
  0x2f   : > { %p1066_p1 = scmp.lt.u32.totalorder %s1254_s30, %s1393_s2  ;;  %p1067_p3 = scmp.lt.u32.totalorder %s1065_s11, %s1060_s9 }
  0x30   : > { %p1063_p12 = pnand %p1062_p9, %p1061_p5  ;;  %p1069_p7 = scmp.lt.u32.totalorder %s1060_s9, %s1254_s30 }
  0x31   : > { %p1068_p6 = por %p1067_p3, %p1066_p1 }
  0x32   : > { %p1064_p13 = pneg %p1063_p12 }
  0x33   : > { %p1070_p10 = por %p1069_p7, %p1068_p6 }
  0x35   : > { %p1071_p4 = pnand %p1070_p10, %p1064_p13 }
  0x37   : > { %1074 = shalt.err (!%p1071_p4)
}
  0x38   : > { %s1075_s13 = scalar_lea.vmem %s1256_s7, 768  ;;  %s1136_s16 = smov [#allocation7]  }
  0x39   : > { %p1076_p11 = scmp.ne.s32.totalorder %s1256_s7, %s1075_s13  ;;  %s1080_s17 = sshll.u32 %s1136_s16, 4  ;;  %s1081_s17 = int_to_ptr.vmem [resolvable:$false] %s1080_s17 }
  0x3a   : > { %s1082_s18 = scalar_lea.vmem %s1081_s17, 1536  ;;  %p1083_p5 = scmp.lt.s32.totalorder %s1256_s7, %s1081_s17 }
  0x3b   : > { %p1078_p0 = pnand %p1076_p11, %p1062_p9  ;;  %p1084_p12 = scmp.lt.s32.totalorder %s1082_s18, %s1075_s13 }
  0x3d   : > { %p1079_p2 = pneg %p1078_p0  ;;  %p1085_p1 = por %p1084_p12, %p1083_p5 }
  0x3f   : > { %p1086_p3 = pnand %p1085_p1, %p1079_p2 }
  0x41   : > { %1089 = shalt.err (!%p1086_p3)
}
  0x42   : > { %s1137_s24 = smov 128   ;;  %s1138_s25 = smov 8  }
  0x43   : > { %988 = dma.hbm_to_vmem [thread:$0]  (!%p1406_p8), %s1254_s30, 768, %s1256_s7, %s1260_s8, %s1137_s24, %s1137_s24, %s1138_s25  }
  0x44   : > { %p1407_p9 = scmp.ne.s32.totalorder %s1403_s29, 0 }
  0x45   : > { %p1408_p13 = scmp.eq.s32.totalorder (!%p1407_p9), %s1188_s22, 0 }
  0x46   : > { %225 = sbr.rel (%p1407_p9) target bundleno = 565 (0x235), region = 40 }
  0x4d   : > { %1107 = dma.done.wait (%p1408_p13), [#allocation4], 16   ;;  %p1409_p6 = pmov %p1408_p13 }
  0x4f   : > { %1109 = vsyncadd (%p1409_p6), [#allocation4], 4294967280  ;;  %p1410_p7 = pmov %p1409_p6 }
  0x50   : > { %p1411_p10 = pmov %p1409_p6 }
  0x51   : > { %1111 = dma.done.wait (%p1410_p7), [#allocation6], 16  }
  0x52   : > { %1113 = vsyncadd (%p1411_p10), [#allocation6], 4294967280  ;;  %s235_s27 = sand.u32 1, %s1124_s19   ;;  %p1412_p8 = scmp.ne.s32.totalorder %s1402_s28, 0 }
  0x53   : > { %s966_s12 = smul.u32 48, %s235_s27  ;;  %s236_s30 = scalar_lea.sflag [#allocation3], %s235_s27 }
  0x55   : > { %s239_s6 = scalar_lea.vmem [#allocation7], %s966_s12 }
  0x56   : > { %1115 = dma.done.wait (%p1412_p8), %s236_s30, 768  }
  0x57   : > { %1117 = vsyncadd (%p1412_p8), %s236_s30, 4294966528 }
  0x58   : > { %244 = sfence }
  0x59   : > { %v276_v0 = vld [vmem:[%s1395_s4] sm:$0xff]  ;;  %v277_v1 = vld [vmem:[%s1395_s4 + $0x8] sm:$0xff]  ;;  %vm286_vm0 = vcmask 130048   ;;  %v278_v2 = vld [vmem:[%s1395_s4 + $0x10] sm:$0xff]  ;;  %p267_p4 = scmp.lt.s32.totalorder %s1188_s22, 1  ;;  %s509_s27 = sld [smem:[#allocation2]] }
  0x5a   : > { %v940_v3 = vpack.c.bf16 %v277_v1, %v276_v0  ;;  %vm941_vm1 = vmpackc.low %vm286_vm0, %vm286_vm0  ;;  %v279_v4 = vld [vmem:[%s1395_s4 + $0x18] sm:$0xff]  ;;  %v280_v5 = vld [vmem:[%s239_s6] sm:$0xff]  ;;  %s515_s12 = sld [smem:[#allocation5]]  ;;  %s848_s29 = sld [smem:[#allocation5 + $0x1]]  ;;  %vm521_vm2 = vcmask 261120  }
  0x5b   : > { %v946_v6 = vpack.c.bf16 %v279_v4, %v278_v2  ;;  %901 = vmatprep.mubr.msk.f32.mxu0 %vm286_vm0, %v280_v5  ;;  %v281_v7 = vld [vmem:[%s239_s6 + $0x8] sm:$0xff]  ;;  %v282_v8 = vld [vmem:[%s239_s6 + $0x10] sm:$0xff]  ;;  %v283_v9 = vld [vmem:[%s239_s6 + $0x18] sm:$0xff]  ;;  %s1418_s22 = smov (!%p267_p4, %s1188_s22), 1  ;;  %s858_s21 = sld [smem:[#allocation5 + $0x2]] }
  0x5c   : > { %942 = vmatprep.subr.msk.bf16.mxu0 %vm941_vm1, %v940_v3  ;;  %v284_v10 = vld [vmem:[%s239_s6 + $0x20] sm:$0xff]  ;;  %v285_v11 = vld [vmem:[%s239_s6 + $0x28] sm:$0xff]  ;;  %s967_s30 = smul.u32 96, %s1418_s22  ;;  %s847_s6 = sld [smem:[#allocation2 + $0x1]] }
  0x5d   : > { %945 = vmatpush3.bf16.xpose.msk.msra.mxu0 %vm941_vm1, %v940_v3  ;;  %v272_v12 = vld [vmem:[%s1394_s3] sm:$0xff]  ;;  %v273_v18 = vld [vmem:[%s1394_s3 + $0x8] sm:$0xff]  ;;  %v274_v20 = vld [vmem:[%s1394_s3 + $0x10] sm:$0xff]  ;;  %s857_s22 = sld [smem:[#allocation2 + $0x2]] }
  0x5e   : > { %948 = vmatprep.subr.msk.bf16.mxu0 %vm941_vm1, %v946_v6  ;;  %914 = vmatprep.mubr.msk.f32.mxu1 %vm286_vm0, %v272_v12  ;;  %v275_v23 = vld [vmem:[%s1394_s3 + $0x18] sm:$0xff]  ;;  %s1352_s9 = scalar_lea.vmem %s1396_s5, %s967_s30 }
  0x5f   : > { %v510_v25 = vstv %s509_s27 }
  0x60   : > { %v516_v27 = vstv %s515_s12  ;;  %v618_v41 = vstv %s848_s29 }
  0x61   : > { %v720_v55 = vstv %s858_s21 }
  0x62   : > { %v612_v37 = vstv %s847_s6 }
  0x63   : > { %v714_v51 = vstv %s857_s22 }
  0x65   : > { %951 = vmatpush3.bf16.xpose.msk.msra.mxu0 %vm941_vm1, %v946_v6 }
  0x6c   : > { %902 = vmatmul.mubr.msk.f32.vlgmr.msra.gmra.mrb[0].mxu0 %vm286_vm0, %v281_v7 }
  0x6d   : > { %904 = vmatprep.mubr.msk.f32.mxu0 %vm286_vm0, %v282_v8 }
  0x70   : > { %905 = vmatmul.mubr.msk.f32.gmra.mrb[2].mxu0 %vm286_vm0, %v283_v9 }
  0x71   : > { %907 = vmatprep.mubr.msk.f32.mxu0 %vm286_vm0, %v284_v10 }
  0x74   : > { %908 = vmatmul.mubr.msk.f32.gmra.mrb[4].mxu0 %vm286_vm0, %v285_v11 }
 0x13f   : > { %v903_v13 = vpop.f32.mrb[0].mxu0 }
 0x140   : > { %v383_v14 = vpop.f32.mrb[1].mxu0 }
 0x141   : > { %v952_v15 = vpack.c.bf16 %v903_v13, %v383_v14 }
 0x143   : > { %v906_v16 = vpop.f32.mrb[2].mxu0  ;;  %953 = vmatprep.subr.bf16.mxu1 %v952_v15 }
 0x144   : > { %v393_v17 = vpop.f32.mrb[3].mxu0  ;;  %955 = vmatpush3.bf16.msra.mxu1 %v952_v15 }
 0x145   : > { %v956_v19 = vpack.c.bf16 %v906_v16, %v393_v17 }
 0x147   : > { %915 = vmatmul.mubr.msk.f32.vlgmr.msra.gmra.mrb[0].mxu1 %vm286_vm0, %v273_v18  ;;  %957 = vmatprep.subr.bf16.mxu1 %v956_v19  ;;  %v909_v21 = vpop.f32.mrb[4].mxu0 }
 0x148   : > { %959 = vmatpush3.bf16.msra.mxu1 %v956_v19  ;;  %917 = vmatprep.mubr.msk.f32.mxu1 %vm286_vm0, %v274_v20  ;;  %v403_v22 = vpop.f32.mrb[5].mxu0 }
 0x149   : > { %v960_v24 = vpack.c.bf16 %v909_v21, %v403_v22 }
 0x14b   : > { %918 = vmatmul.mubr.msk.f32.gmra.mrb[2].mxu1 %vm286_vm0, %v275_v23  ;;  %961 = vmatprep.subr.bf16.mxu1 %v960_v24 }
 0x14c   : > { %924 = vmatprep.mubr.msk.f32.mxu1 %vm286_vm0, %v272_v12 }
 0x14f   : > { %925 = vmatmul.mubr.msk.f32.vlgmr.msra.gmra.mrb[4].mxu1 %vm286_vm0, %v273_v18 }
 0x150   : > { %963 = vmatpush3.bf16.msra.mxu1 %v960_v24  ;;  %927 = vmatprep.mubr.msk.f32.mxu1 %vm286_vm0, %v274_v20 }
 0x153   : > { %928 = vmatmul.mubr.msk.f32.gmra.mrb[6].mxu1 %vm286_vm0, %v275_v23 }
 0x154   : > { %934 = vmatprep.mubr.msk.f32.mxu1 %vm286_vm0, %v272_v12 }
 0x157   : > { %935 = vmatmul.mubr.msk.f32.vlgmr.msra.gmra.mrb[8].mxu1 %vm286_vm0, %v273_v18 }
 0x158   : > { %937 = vmatprep.mubr.msk.f32.mxu1 %vm286_vm0, %v274_v20 }
 0x15b   : > { %938 = vmatmul.mubr.msk.f32.gmra.mrb[10].mxu1 %vm286_vm0, %v275_v23 }
 0x21a   : > { %v916_v26 = vpop.f32.mrb[0].mxu1 }
 0x21b   : > { %v512_v28 = vmul.f32 %v916_v26, %v510_v25  ;;  %v490_v29 = vpop.f32.mrb[1].mxu1 }
 0x21c   : > { %v511_v30 = vmul.f32 %v510_v25, %v490_v29 }
 0x21d   : > { %v518_v31 = vadd.f32 %v516_v27, %v512_v28 }
 0x21e   : > { %v517_v32 = vadd.f32 %v516_v27, %v511_v30  ;;  %v919_v33 = vpop.f32.mrb[2].mxu1 }
 0x21f   : > { %523 = vst.msk [vmem:[%s1352_s9 + $0x8] sm:$0xff] %vm521_vm2, %v518_v31  ;;  %v514_v34 = vmul.f32 %v919_v33, %v510_v25  ;;  %v500_v35 = vpop.f32.mrb[3].mxu1 }
 0x220   : > { %522 = vst.msk [vmem:[%s1352_s9] sm:$0xff] %vm521_vm2, %v517_v32  ;;  %v513_v36 = vmul.f32 %v510_v25, %v500_v35 }
 0x221   : > { %v520_v38 = vadd.f32 %v516_v27, %v514_v34 }
 0x222   : > { %v519_v39 = vadd.f32 %v516_v27, %v513_v36  ;;  %v926_v40 = vpop.f32.mrb[4].mxu1 }
 0x223   : > { %525 = vst.msk [vmem:[%s1352_s9 + $0x18] sm:$0xff] %vm521_vm2, %v520_v38  ;;  %v614_v42 = vmul.f32 %v926_v40, %v612_v37  ;;  %v592_v43 = vpop.f32.mrb[5].mxu1 }
 0x224   : > { %524 = vst.msk [vmem:[%s1352_s9 + $0x10] sm:$0xff] %vm521_vm2, %v519_v39  ;;  %v613_v44 = vmul.f32 %v612_v37, %v592_v43 }
 0x225   : > { %v620_v45 = vadd.f32 %v618_v41, %v614_v42 }
 0x226   : > { %v619_v46 = vadd.f32 %v618_v41, %v613_v44  ;;  %v929_v47 = vpop.f32.mrb[6].mxu1 }
 0x227   : > { %850 = vst.msk [vmem:[%s1352_s9 + $0x28] sm:$0xff] %vm521_vm2, %v620_v45  ;;  %v616_v48 = vmul.f32 %v929_v47, %v612_v37  ;;  %v602_v49 = vpop.f32.mrb[7].mxu1 }
 0x228   : > { %849 = vst.msk [vmem:[%s1352_s9 + $0x20] sm:$0xff] %vm521_vm2, %v619_v46  ;;  %v615_v50 = vmul.f32 %v612_v37, %v602_v49 }
 0x229   : > { %v622_v52 = vadd.f32 %v618_v41, %v616_v48 }
 0x22a   : > { %v621_v53 = vadd.f32 %v618_v41, %v615_v50  ;;  %v936_v54 = vpop.f32.mrb[8].mxu1 }
 0x22b   : > { %852 = vst.msk [vmem:[%s1352_s9 + $0x38] sm:$0xff] %vm521_vm2, %v622_v52  ;;  %v716_v56 = vmul.f32 %v936_v54, %v714_v51  ;;  %v694_v57 = vpop.f32.mrb[9].mxu1 }
 0x22c   : > { %851 = vst.msk [vmem:[%s1352_s9 + $0x30] sm:$0xff] %vm521_vm2, %v621_v53  ;;  %v715_v58 = vmul.f32 %v714_v51, %v694_v57 }
 0x22d   : > { %v722_v59 = vadd.f32 %v720_v55, %v716_v56 }
 0x22e   : > { %v721_v60 = vadd.f32 %v720_v55, %v715_v58  ;;  %v939_v61 = vpop.f32.mrb[10].mxu1 }
 0x22f   : > { %860 = vst.msk [vmem:[%s1352_s9 + $0x48] sm:$0xff] %vm521_vm2, %v722_v59  ;;  %v718_v62 = vmul.f32 %v939_v61, %v714_v51  ;;  %v704_v63 = vpop.f32.mrb[11].mxu1 }
 0x230   : > { %859 = vst.msk [vmem:[%s1352_s9 + $0x40] sm:$0xff] %vm521_vm2, %v721_v60  ;;  %v717_v0 = vmul.f32 %v714_v51, %v704_v63 }
 0x231   : > { %v724_v1 = vadd.f32 %v720_v55, %v718_v62 }
 0x232   : > { %v723_v2 = vadd.f32 %v720_v55, %v717_v0 }
 0x233   : > { %862 = vst.msk [vmem:[%s1352_s9 + $0x58] sm:$0xff] %vm521_vm2, %v724_v1 }
 0x234   : > { %861 = vst.msk [vmem:[%s1352_s9 + $0x50] sm:$0xff] %vm521_vm2, %v723_v2 }
 0x235 PF: > { %p17_p11 = scmp.ge.s32.totalorder %s1191_s23, 4   ;;  %s1413_s18 = smov %s1124_s19 }
 0x236   : > { %s1414_s19 = smov %s1128_s20  ;;  %s1415_s20 = smov %s1201_s26 }
 0x237   : > { %s1416_s21 = smov %s1191_s23  ;;  %19 = sbr.rel (!%p17_p11) target bundleno = 5 (0x5), region = 91 }
 0x23e   :  { %751 = vsyncpa [#allocation3], 1 }
 0x23f   :  { %753 = vsyncpa [#allocation3 + $0x1], 1 }
 0x240   :  { %754 = vsyncpa [#allocation4], 1 }
 0x241   :  { %756 = vsyncpa [#allocation4 + $0x1], 1 }
 0x242   :  { %757 = vsyncpa [#allocation6], 1 }

// kernel: _lambda_.16
= control target key start
LH: loop header
LB: loop body
LE: loop exit
PB: predicated region body
PF: predicated region fallthrough
CT: control target
= control target key end

     0   :  { %9 = vsyncpa [#allocation3], 0  ;;  %s624_s0 = inlined_call_operand.vmem [shape: f32[2,24,32], index: 0, kind: input, shape index: {}]   ;;  %s625_s1 = inlined_call_operand.vmem [shape: f32[24,32], index: 1, kind: input, shape index: {}]   ;;  %s626_s2 = inlined_call_operand.vmem [shape: f32[1,32], index: 2, kind: input, shape index: {}]   ;;  %s627_s3 = inlined_call_operand.vmem [shape: f32[1,32], index: 3, kind: input, shape index: {}]   ;;  %s628_s4 = inlined_call_operand.hbm [shape: f32[2,24,32], index: 4, kind: output, shape index: {}]  }
   0x1   :  { %11 = vsyncpa [#allocation3 + $0x1], 0  ;;  %s497_s15 = smov 0   ;;  %s499_s16 = smov 0  }
   0x2   :  { %s501_s17 = smov 0   ;;  %s503_s18 = smov 0  }
   0x3 LB: > { %s518_s19 = sadd.s32 4294967295, %s467_s18   ;;  %s345_s20 = sadd.s32 4294967294, %s467_s18   ;;  %s467_s18 = sphi %s503_s18, %s634_s18   ;;  %s463_s17 = sphi %s501_s17, %s633_s17   ;;  %s459_s16 = sphi %s499_s16, %s632_s16   ;;  %s455_s15 = sphi %s497_s15, %s631_s15  }
   0x4   : > { %s522_s21 = sadd.s32 1, %s467_s18   ;;  %s113_s22 = sadd.s32 1, %s463_s17 }
   0x5   : > { %s110_s23 = ssub.s32 %s467_s18, %s522_s21  ;;  %p123_p0 = scmp.ne.s32.totalorder %s463_s17, %s459_s16 }
   0x6   : > { %p111_p1 = scmp.eq.s32.totalorder %s110_s23, 0  ;;  %p124_p2 = scmp.eq.s32.totalorder %s518_s19, 1 }
   0x7   : > { %p129_p3 = scmp.ne.s32.totalorder %s459_s16, %s455_s15  ;;  %p130_p4 = scmp.eq.s32.totalorder %s345_s20, 1 }
   0x8   : > { %s533_s24 = scalar_select %p111_p1, %s463_s17, %s113_s22  }
   0x9   : > { %p535_p5 = por %p124_p2, %p123_p0  ;;  %p539_p6 = por %p130_p4, %p129_p3 }
   0xa   : > { %p348_p7 = scmp.ge.s32.totalorder %s467_s18, 1  ;;  %p165_p8 = scmp.lt.s32.totalorder %s467_s18, 3 }
   0xc   : > { %p166_p9 = pnand %p348_p7, %p165_p8 }
   0xd   : > { %p191_p10 = scmp.lt.s32.totalorder (!%p166_p9), %s518_s19, 1  ;;  %v199_v0 = vld [vmem:[%s625_s1] sm:$0xff] (!%p166_p9)  ;;  %v201_v1 = vld [vmem:[%s625_s1 + $0x10] sm:$0xff] (!%p166_p9)  ;;  %v200_v2 = vld [vmem:[%s625_s1 + $0x8] sm:$0xff] (!%p166_p9)  ;;  %vm205_vm0 = vcmask (!%p166_p9), 261120   ;;  %s188_s12 = sand.u32 (!%p166_p9), 1, %s459_s16  }
   0xe   : > { %169 = sbr.rel (%p166_p9) target bundleno = 362 (0x16a), region = 36  ;;  %v350_v37 = vld [vmem:[%s626_s2] ss:$0 sm:$0xff] (!%p166_p9)  ;;  %s469_s8 = smov (!%p166_p9), [#allocation2]  }
   0xf   : > { %s355_s20 = smul.u32 (!%p166_p9), 24, %s188_s12  ;;  %v351_v39 = vld [vmem:[%s627_s3] ss:$0 sm:$0xff] (!%p166_p9)  ;;  %s409_s9 = sshll.u32 (!%p166_p9), %s469_s8, 4  ;;  %s410_s9 = int_to_ptr.vmem [resolvable:$false] %s409_s9 }
  0x10   : > { %s411_s10 = scalar_lea.vmem (!%p166_p9), %s410_s9, 768 }
  0x15   : > { %s192_s27 = scalar_select %p191_p10, %s518_s19, 1 }
  0x17   : > { %s356_s28 = smul.u32 24, %s192_s27 }
  0x18   : > { %s357_s27 = smul.u32 384, %s518_s19  ;;  %s583_s19 = scalar_lea.sflag [#allocation3], %s188_s12 }
  0x19   : > { %s195_s11 = scalar_lea.vmem %s624_s0, %s356_s28  ;;  %s190_s28 = scalar_lea.vmem [#allocation2], %s355_s20 }
  0x1a   : > { %v196_v3 = vld [vmem:[%s195_s11] sm:$0xff]  ;;  %v198_v4 = vld [vmem:[%s195_s11 + $0x10] sm:$0xff]  ;;  %v197_v5 = vld [vmem:[%s195_s11 + $0x8] sm:$0xff]  ;;  %s283_s29 = sshll.u32 %s190_s28, 4  ;;  %s577_s6 = scalar_lea.hbm %s628_s4, %s357_s27  ;;  %s579_s29 = int_to_ptr.vmem [resolvable:$true] %s283_s29 }
  0x1b   : > { %v202_v6 = vadd.f32 %v199_v0, %v196_v3  ;;  %v204_v7 = vadd.f32 %v201_v1, %v198_v4  ;;  %v203_v8 = vadd.f32 %v200_v2, %v197_v5  ;;  %s405_s7 = scalar_lea.vmem %s579_s29, 384  ;;  %p412_p0 = scmp.lt.s32.totalorder %s579_s29, %s410_s9 }
  0x1c   : > { %p406_p11 = scmp.ne.s32.totalorder %s579_s29, %s405_s7  ;;  %p413_p1 = scmp.lt.s32.totalorder %s411_s10, %s405_s7 }
  0x1d   : > { %v206_v9 = vsel %vm205_vm0, %v202_v6, 0.0  ;;  %v212_v10 = vsel %vm205_vm0, %v204_v7, 0.0  ;;  %v209_v11 = vsel %vm205_vm0, %v203_v8, 0.0 }
  0x1e   : > { %207 = vadd.xlane.f32.xlu0 %v206_v9  ;;  %213 = vadd.xlane.f32.xlu1 %v212_v10  ;;  %p407_p12 = pnand %p406_p11, %p535_p5  ;;  %p414_p2 = por %p413_p1, %p412_p0 }
  0x20   : > { %p408_p13 = pneg %p407_p12 }
  0x22   : > { %210 = vadd.xlane.f32.xlu0 %v209_v11  ;;  %p415_p3 = pnand %p414_p2, %p408_p13 }
  0xab   : > { %v208_v12 = vpop.xlane.xlu0 %207  ;;  %v214_v13 = vpop.xlane.xlu1 %213 }
  0xac   : > { %v216_v14 = vmul.f32 0.03125, %v208_v12  ;;  %v218_v15 = vmul.f32 0.03125, %v214_v13 }
  0xae   : > { %v219_v16 = vsub.f32 %v202_v6, %v216_v14  ;;  %v221_v17 = vsub.f32 %v204_v7, %v218_v15 }
  0xaf   : > { %v211_v18 = vpop.xlane.xlu0 %210 }
  0xb0   : > { %v217_v19 = vmul.f32 0.03125, %v211_v18  ;;  %v222_v20 = vmul.f32 %v219_v16, %v219_v16  ;;  %v224_v21 = vmul.f32 %v221_v17, %v221_v17 }
  0xb2   : > { %v220_v22 = vsub.f32 %v203_v8, %v217_v19  ;;  %v225_v23 = vsel %vm205_vm0, %v222_v20, 0.0  ;;  %v231_v24 = vsel %vm205_vm0, %v224_v21, 0.0 }
  0xb3   : > { %226 = vadd.xlane.f32.xlu1 %v225_v23 }
  0xb4   : > { %v223_v25 = vmul.f32 %v220_v22, %v220_v22 }
  0xb6   : > { %v228_v26 = vsel %vm205_vm0, %v223_v25, 0.0 }
  0xb7   : > { %232 = vadd.xlane.f32.xlu1 %v231_v24  ;;  %229 = vadd.xlane.f32.xlu0 %v228_v26 }
 0x140   : > { %v227_v27 = vpop.xlane.xlu1 %226 }
 0x141   : > { %v234_v28 = vmul.f32 0.03125, %v227_v27 }
 0x143   : > { %v237_v29 = vadd.f32 1e-05, %v234_v28 }
 0x144   : > { %v233_v30 = vpop.xlane.xlu1 %232  ;;  %v230_v31 = vpop.xlane.xlu0 %229 }
 0x145   : > { %399 = vrsqrt.f32 %v237_v29  ;;  %v236_v32 = vmul.f32 0.03125, %v233_v30  ;;  %v235_v33 = vmul.f32 0.03125, %v230_v31 }
 0x147   : > { %v239_v34 = vadd.f32 1e-05, %v236_v32  ;;  %v238_v35 = vadd.f32 1e-05, %v235_v33 }
 0x149   : > { %401 = vrsqrt.f32 %v239_v34 }
 0x14a   : > { %403 = vrsqrt.f32 %v238_v35 }
 0x14f   : > { %v400_v36 = vpop.eup %399 }
 0x150   : > { %v243_v38 = vmul.f32 %v400_v36, %v219_v16 }
 0x152   : > { %v253_v40 = vmul.f32 %v350_v37, %v243_v38 }
 0x153   : > { %v402_v41 = vpop.eup %401 }
 0x154   : > { %v404_v42 = vpop.eup %403  ;;  %v263_v43 = vadd.f32 %v351_v39, %v253_v40  ;;  %v245_v44 = vmul.f32 %v402_v41, %v221_v17 }
 0x155   : > { %v244_v45 = vmul.f32 %v404_v42, %v220_v22 }
 0x156   : > { %v255_v46 = vmul.f32 %v350_v37, %v245_v44  ;;  %266 = vst.msk [vmem:[%s190_s28] sm:$0xff] %vm205_vm0, %v263_v43 }
 0x157   : > { %v254_v47 = vmul.f32 %v350_v37, %v244_v45 }
 0x158   : > { %v265_v48 = vadd.f32 %v351_v39, %v255_v46 }
 0x159   : > { %v264_v49 = vadd.f32 %v351_v39, %v254_v47 }
 0x15a   : > { %268 = vst.msk [vmem:[%s190_s28 + $0x10] sm:$0xff] %vm205_vm0, %v265_v48 }
 0x15b   : > { %267 = vst.msk [vmem:[%s190_s28 + $0x8] sm:$0xff] %vm205_vm0, %v264_v49 }
 0x15c   : > { %418 = shalt.err (!%p415_p3)
}
 0x15d   : > { %s419_s11 = scalar_lea.hbm %s577_s6, 384  ;;  %s423_s14 = scalar_lea.hbm %s628_s4, 768 }
 0x15e   : > { %p420_p4 = scmp.ne.s32.totalorder %s577_s6, %s419_s11  ;;  %p424_p9 = scmp.lt.u32.totalorder %s577_s6, %s628_s4 }
 0x15f   : > { %p425_p10 = scmp.lt.u32.totalorder %s423_s14, %s419_s11  ;;  %p427_p12 = scmp.lt.u32.totalorder %s419_s11, %s577_s6 }
 0x160   : > { %p421_p7 = pnand %p420_p4, %p535_p5 }
 0x161   : > { %p426_p11 = por %p425_p10, %p424_p9 }
 0x162   : > { %p422_p8 = pneg %p421_p7 }
 0x163   : > { %p428_p13 = por %p427_p12, %p426_p11 }
 0x165   : > { %p429_p0 = pnand %p428_p13, %p422_p8 }
 0x167   : > { %432 = shalt.err (!%p429_p0)
}
 0x168   : > { %s470_s23 = smov 128   ;;  %s471_s27 = smov 8  }
 0x169   : > { %358 = dma.vmem_to_hbm [thread:$0]  (%p535_p5), %s579_s29, 384, %s577_s6, %s583_s19, %s470_s23, %s470_s23, %s471_s27  }
 0x16a PF: > { %p364_p1 = scmp.ge.s32.totalorder %s467_s18, 2  ;;  %s298_s28 = sand.u32 1, %s455_s15  }
 0x16b   : > { %s299_s30 = scalar_lea.sflag [#allocation3], %s298_s28 }
 0x16c   : > { %p361_p2 = pnand %p364_p1, %p539_p6 }
 0x16e   : > { %450 = dma.done.wait (!%p361_p2), %s299_s30, 384  }
 0x16f   : > { %452 = vsyncadd (!%p361_p2), %s299_s30, 4294966912  ;;  %p14_p3 = scmp.ge.s32.totalorder %s522_s21, 4   ;;  %s631_s15 = smov %s459_s16 }
 0x170   : > { %s632_s16 = smov %s463_s17  ;;  %s633_s17 = smov %s533_s24 }
 0x171   : > { %s634_s18 = smov %s522_s21  ;;  %16 = sbr.rel (!%p14_p3) target bundleno = 3 (0x3), region = 71 }
 0x178   :  { %304 = vsyncpa [#allocation3], 1 }
 0x179   :  { %306 = vsyncpa [#allocation3 + $0x1], 1 }

// kernel: _lambda_.17
= control target key start
LH: loop header
LB: loop body
LE: loop exit
PB: predicated region body
PF: predicated region fallthrough
CT: control target
= control target key end

     0   :  { %10 = vsyncpa [#allocation4], 0  ;;  %s751_s0 = inlined_call_operand.hbm [shape: f32[48,32], index: 0, kind: input, shape index: {}]   ;;  %s752_s1 = inlined_call_operand.hbm [shape: f32[1,32], index: 1, kind: input, shape index: {}]   ;;  %s753_s2 = inlined_call_operand.hbm [shape: f32[1,32], index: 2, kind: input, shape index: {}]   ;;  %s754_s3 = inlined_call_operand.hbm [shape: bf16[32,96], index: 3, kind: input, shape index: {}]   ;;  %s755_s4 = inlined_call_operand.hbm [shape: f32[1,96], index: 4, kind: input, shape index: {}]   ;;  %s756_s5 = inlined_call_operand.hbm [shape: bf16[48,96], index: 5, kind: output, shape index: {}]  }
   0x1   :  { %11 = vsyncpa [#allocation7], 0 }
   0x2   :  { %12 = vsyncpa [#allocation10], 0 }
   0x3   :  { %13 = vsyncpa [#allocation5], 0  ;;  %s560_s18 = smov [#allocation6]   ;;  %s561_s20 = smov [#allocation9]  }
   0x4   :  { %s32_s19 = sshll.u32 %s560_s18, 4  ;;  %s51_s21 = sshll.u32 %s561_s20, 4  ;;  %s33_s19 = int_to_ptr.vmem [resolvable:$true] %s32_s19  ;;  %s602_s21 = int_to_ptr.vmem [resolvable:$true] %s51_s21 }
   0x5   :  { %s420_s24 = scalar_lea.hbm %s752_s1, 16 }
   0x6   :  { %p421_p0 = scmp.ne.s32.totalorder %s752_s1, %s420_s24  ;;  %p424_p1 = scmp.lt.u32.totalorder %s420_s24, %s752_s1 }
   0x8   :  { %p426_p2 = pnand %p424_p1, %p421_p0 }
   0xa   :  { %429 = shalt.err (!%p426_p2)
}
   0xb   :  { %s430_s29 = scalar_lea.vmem %s33_s19, 16  ;;  %s434_s30 = scalar_lea.vmem %s33_s19, 32 }
   0xc   :  { %p431_p3 = scmp.ne.s32.totalorder %s33_s19, %s430_s29  ;;  %p435_p4 = scmp.lt.s32.totalorder %s33_s19, %s33_s19 }
   0xd   :  { %p436_p5 = scmp.lt.s32.totalorder %s434_s30, %s430_s29 }
   0xf   :  { %p437_p6 = por %p436_p5, %p435_p4 }
  0x11   :  { %p438_p7 = pnand %p437_p6, %p431_p3 }
  0x13   :  { %441 = shalt.err (!%p438_p7)
}
  0x14   :  { %35 = dma.hbm_to_vmem [thread:$0]  %s752_s1, 16, %s33_s19, [#allocation7]  }
  0x15   :  { %s442_s10 = scalar_lea.hbm %s754_s3, 256 }
  0x16   :  { %p443_p8 = scmp.ne.s32.totalorder %s754_s3, %s442_s10  ;;  %p446_p9 = scmp.lt.u32.totalorder %s442_s10, %s754_s3 }
  0x18   :  { %p448_p10 = pnand %p446_p9, %p443_p8 }
  0x1a   :  { %451 = shalt.err (!%p448_p10)
}
  0x1b   :  { %s452_s15 = scalar_lea.vmem %s602_s21, 256  ;;  %p457_p12 = scmp.lt.s32.totalorder %s602_s21, %s602_s21 }
  0x1c   :  { %p453_p11 = scmp.ne.s32.totalorder %s602_s21, %s452_s15  ;;  %p458_p13 = scmp.lt.s32.totalorder %s452_s15, %s452_s15 }
  0x1e   :  { %p459_p0 = por %p458_p13, %p457_p12 }
  0x20   :  { %p460_p1 = pnand %p459_p0, %p453_p11 }
  0x22   :  { %463 = shalt.err (!%p460_p1)
}
  0x23   :  { %s562_s1 = smov 64   ;;  %s563_s16 = smov 4  }
  0x24   :  { %57 = dma.hbm_to_vmem [thread:$0]  %s754_s3, 256, %s602_s21, [#allocation10], %s562_s1, %s562_s1, %s563_s16  }
  0x25   :  { %s564_s19 = smov [#allocation3]   ;;  %s464_s24 = scalar_lea.hbm %s751_s0, 768 }
  0x26   :  { %s19_s20 = sshll.u32 %s564_s19, 4  ;;  %p465_p2 = scmp.ne.s32.totalorder %s751_s0, %s464_s24  ;;  %s20_s20 = int_to_ptr.vmem [resolvable:$true] %s19_s20 }
  0x27   :  { %p468_p3 = scmp.lt.u32.totalorder %s464_s24, %s751_s0 }
  0x29   :  { %p470_p4 = pnand %p468_p3, %p465_p2 }
  0x2b   :  { %473 = shalt.err (!%p470_p4)
}
  0x2c   :  { %s474_s29 = scalar_lea.vmem %s20_s20, 768  ;;  %p479_p6 = scmp.lt.s32.totalorder %s20_s20, %s20_s20 }
  0x2d   :  { %p475_p5 = scmp.ne.s32.totalorder %s20_s20, %s474_s29  ;;  %p480_p7 = scmp.lt.s32.totalorder %s474_s29, %s474_s29 }
  0x2f   :  { %p481_p8 = por %p480_p7, %p479_p6 }
  0x31   :  { %p482_p9 = pnand %p481_p8, %p475_p5 }
  0x33   :  { %485 = shalt.err (!%p482_p9)
}
  0x34   :  { %s565_s3 = smov 128   ;;  %s566_s21 = smov 8  }
  0x35   :  { %25 = dma.hbm_to_vmem [thread:$0]  %s751_s0, 768, %s20_s20, [#allocation4], %s565_s3, %s565_s3, %s566_s21  }
  0x36   :  { %s567_s7 = smov [#allocation8]   ;;  %s568_s9 = smov [#allocation11]  }
  0x37   :  { %s42_s8 = sshll.u32 %s567_s7, 4  ;;  %s64_s10 = sshll.u32 %s568_s9, 4  ;;  %s43_s8 = int_to_ptr.vmem [resolvable:$true] %s42_s8  ;;  %s65_s10 = int_to_ptr.vmem [resolvable:$true] %s64_s10 }
  0x38   :  { %s486_s13 = scalar_lea.hbm %s753_s2, 16 }
  0x39   :  { %p487_p10 = scmp.ne.s32.totalorder %s753_s2, %s486_s13  ;;  %p490_p11 = scmp.lt.u32.totalorder %s486_s13, %s753_s2 }
  0x3b   :  { %p492_p12 = pnand %p490_p11, %p487_p10 }
  0x3d   :  { %495 = shalt.err (!%p492_p12)
}
  0x3e   :  { %s496_s0 = scalar_lea.vmem %s43_s8, 16  ;;  %s500_s19 = scalar_lea.vmem %s43_s8, 32 }
  0x3f   :  { %p497_p13 = scmp.ne.s32.totalorder %s43_s8, %s496_s0  ;;  %p501_p0 = scmp.lt.s32.totalorder %s43_s8, %s43_s8 }
  0x40   :  { %p502_p1 = scmp.lt.s32.totalorder %s500_s19, %s496_s0 }
  0x42   :  { %p503_p2 = por %p502_p1, %p501_p0 }
  0x44   :  { %p504_p3 = pnand %p503_p2, %p497_p13 }
  0x46   :  { %507 = shalt.err (!%p504_p3)
}
  0x47   :  { %45 = dma.hbm_to_vmem [thread:$0]  %s753_s2, 16, %s43_s8, [#allocation7]  }
  0x48   :  { %s508_s25 = scalar_lea.hbm %s755_s4, 16 }
  0x49   :  { %p509_p4 = scmp.ne.s32.totalorder %s755_s4, %s508_s25  ;;  %p512_p5 = scmp.lt.u32.totalorder %s508_s25, %s755_s4 }
  0x4b   :  { %p514_p6 = pnand %p512_p5, %p509_p4 }
  0x4d   :  { %517 = shalt.err (!%p514_p6)
}
  0x4e   :  { %s518_s3 = scalar_lea.vmem %s65_s10, 16  ;;  %s522_s21 = scalar_lea.vmem %s65_s10, 32 }
  0x4f   :  { %p519_p7 = scmp.ne.s32.totalorder %s65_s10, %s518_s3  ;;  %p523_p8 = scmp.lt.s32.totalorder %s65_s10, %s65_s10 }
  0x50   :  { %p524_p9 = scmp.lt.s32.totalorder %s522_s21, %s518_s3 }
  0x52   :  { %p525_p10 = por %p524_p9, %p523_p8 }
  0x54   :  { %p526_p11 = pnand %p525_p10, %p519_p7 }
  0x56   :  { %529 = shalt.err (!%p526_p11)
}
  0x57   :  { %67 = dma.hbm_to_vmem [thread:$0]  %s755_s4, 16, %s65_s10, [#allocation10]  }
  0x58   :  { %552 = dma.done.wait [#allocation4], 768  }
  0x59   :  { %553 = vsyncadd [#allocation4], 4294966528 }
  0x5a   :  { %554 = dma.done.wait [#allocation7], 32  }
  0x5b   :  { %555 = vsyncadd [#allocation7], 4294967264 }
  0x5c   :  { %556 = dma.done.wait [#allocation10], 272  }
  0x5d   :  { %557 = vsyncadd [#allocation10], 4294967024  ;;  %vm94_vm0 = vcmask 261120   ;;  %v90_v0 = vld [vmem:[#allocation3 + $0x10] sm:$0xff]  ;;  %v91_v1 = vld [vmem:[#allocation3 + $0x18] sm:$0xff]  ;;  %v569_v43 = vmov 0.0  }
  0x5e   :  { %v88_v2 = vld [vmem:[#allocation3] sm:$0xff]  ;;  %v101_v3 = vsel %vm94_vm0, %v90_v0, 0.0  ;;  %v89_v5 = vld [vmem:[#allocation3 + $0x8] sm:$0xff]  ;;  %v104_v6 = vsel %vm94_vm0, %v91_v1, 0.0  ;;  %v406_v42 = vld [vmem:[#allocation9] sm:$0xff]   ;;  %390 = vmatprep.subr.bf16.mxu1 %v569_v43  ;;  %374 = vmatprep.subr.bf16.mxu0 %v569_v43  ;;  %vm570_vm1 = vmmov 0  }
  0x5f   :  { %v95_v4 = vsel %vm94_vm0, %v88_v2, 0.0  ;;  %102 = vadd.xlane.f32.xlu0 %v101_v3  ;;  %v98_v7 = vsel %vm94_vm0, %v89_v5, 0.0  ;;  %v92_v8 = vld [vmem:[#allocation3 + $0x20] sm:$0xff]  ;;  %v93_v9 = vld [vmem:[#allocation3 + $0x28] sm:$0xff]  ;;  %392 = vmatpush3.bf16.msra.mxu1 %v406_v42  ;;  %vm323_vm2 = vcmask 781312   ;;  %s571_s4 = smov [#allocation12]  }
  0x60   :  { %96 = vadd.xlane.f32.xlu1 %v95_v4  ;;  %v107_v10 = vsel %vm94_vm0, %v92_v8, 0.0  ;;  %v110_v11 = vsel %vm94_vm0, %v93_v9, 0.0  ;;  %375 = vmatpush3.bf16.msra.mxu0 %v406_v42  ;;  %v407_v44 = vld [vmem:[#allocation9 + $0x8] sm:$0xff]   ;;  %s335_s6 = sshll.u32 %s571_s4, 4  ;;  %s336_s6 = int_to_ptr.vmem [resolvable:$true] %s335_s6 }
  0x61   :  { %391 = vmatprep.subr.bf16.mxu1 %v569_v43  ;;  %376 = vmatprep.subr.bf16.mxu0 %v569_v43  ;;  %s530_s7 = scalar_lea.vmem %s336_s6, 384  ;;  %p535_p13 = scmp.lt.s32.totalorder %s336_s6, %s336_s6 }
  0x62   :  { %382 = vmatprep.mubr.msk.bf16.mxu1 %vm570_vm1, %v569_v43  ;;  %378 = vmatprep.mubr.msk.bf16.mxu0 %vm570_vm1, %v569_v43  ;;  %p531_p12 = scmp.ne.s32.totalorder %s336_s6, %s530_s7  ;;  %p536_p0 = scmp.lt.s32.totalorder %s530_s7, %s530_s7 }
  0x63   :  { %105 = vadd.xlane.f32.xlu0 %v104_v6  ;;  %393 = vmatpush3.bf16.msra.mxu1 %v407_v44 }
  0x64   :  { %99 = vadd.xlane.f32.xlu1 %v98_v7  ;;  %377 = vmatpush3.bf16.msra.mxu0 %v407_v44  ;;  %v350_v7 = vld [vmem:[#allocation8] ss:$0 sm:$0xff]  ;;  %p537_p1 = por %p536_p0, %p535_p13 }
  0x66   :  { %p538_p2 = pnand %p537_p1, %p531_p12 }
  0x67   :  { %108 = vadd.xlane.f32.xlu0 %v107_v10 }
  0x68   :  { %111 = vadd.xlane.f32.xlu1 %v110_v11 }
  0xec   :  { %v103_v12 = vpop.xlane.xlu0 %102 }
  0xed   :  { %v97_v13 = vpop.xlane.xlu1 %96  ;;  %v116_v14 = vmul.f32 0.03125, %v103_v12 }
  0xee   :  { %v114_v15 = vmul.f32 0.03125, %v97_v13 }
  0xef   :  { %v678_v16 = vsub.f32 %v90_v0, %v116_v14 }
  0xf0   :  { %v680_v17 = vsub.f32 %v88_v2, %v114_v15  ;;  %v106_v18 = vpop.xlane.xlu0 %105 }
  0xf1   :  { %v100_v19 = vpop.xlane.xlu1 %99  ;;  %v117_v20 = vmul.f32 0.03125, %v106_v18  ;;  %v128_v21 = vmul.f32 %v678_v16, %v678_v16 }
  0xf2   :  { %v115_v22 = vmul.f32 0.03125, %v100_v19  ;;  %v126_v23 = vmul.f32 %v680_v17, %v680_v17 }
  0xf3   :  { %v686_v24 = vsub.f32 %v91_v1, %v117_v20  ;;  %v138_v25 = vsel %vm94_vm0, %v128_v21, 0.0  ;;  %v349_v1 = vld [vmem:[#allocation6] ss:$0 sm:$0xff] }
  0xf4   :  { %v689_v26 = vsub.f32 %v89_v5, %v115_v22  ;;  %139 = vadd.xlane.f32.xlu0 %v138_v25  ;;  %v109_v27 = vpop.xlane.xlu0 %108  ;;  %v132_v28 = vsel %vm94_vm0, %v126_v23, 0.0 }
  0xf5   :  { %v112_v29 = vpop.xlane.xlu1 %111  ;;  %v118_v30 = vmul.f32 0.03125, %v109_v27  ;;  %v129_v31 = vmul.f32 %v686_v24, %v686_v24 }
  0xf6   :  { %v119_v32 = vmul.f32 0.03125, %v112_v29  ;;  %v127_v33 = vmul.f32 %v689_v26, %v689_v26 }
  0xf7   :  { %v696_v34 = vsub.f32 %v92_v8, %v118_v30  ;;  %v141_v35 = vsel %vm94_vm0, %v129_v31, 0.0  ;;  %v351_v31 = vld [vmem:[#allocation11] ss:$0 sm:$0xff] }
  0xf8   :  { %v699_v36 = vsub.f32 %v93_v9, %v119_v32  ;;  %142 = vadd.xlane.f32.xlu1 %v141_v35  ;;  %133 = vadd.xlane.f32.xlu0 %v132_v28  ;;  %v135_v38 = vsel %vm94_vm0, %v127_v33, 0.0 }
  0xf9   :  { %v130_v37 = vmul.f32 %v696_v34, %v696_v34 }
  0xfa   :  { %v131_v39 = vmul.f32 %v699_v36, %v699_v36 }
  0xfb   :  { %v144_v40 = vsel %vm94_vm0, %v130_v37, 0.0 }
  0xfc   :  { %145 = vadd.xlane.f32.xlu0 %v144_v40  ;;  %136 = vadd.xlane.f32.xlu1 %v135_v38  ;;  %v147_v41 = vsel %vm94_vm0, %v131_v39, 0.0 }
 0x100   :  { %148 = vadd.xlane.f32.xlu1 %v147_v41 }
 0x181   :  { %v140_v45 = vpop.xlane.xlu0 %139 }
 0x182   :  { %v152_v46 = vmul.f32 0.03125, %v140_v45 }
 0x184   :  { %v158_v47 = vadd.f32 1e-05, %v152_v46 }
 0x185   :  { %v134_v48 = vpop.xlane.xlu0 %133  ;;  %v143_v49 = vpop.xlane.xlu1 %142 }
 0x186   :  { %408 = vrsqrt.f32 %v158_v47  ;;  %v150_v50 = vmul.f32 0.03125, %v134_v48  ;;  %v153_v51 = vmul.f32 0.03125, %v143_v49 }
 0x188   :  { %v156_v52 = vadd.f32 1e-05, %v150_v50  ;;  %v159_v53 = vadd.f32 1e-05, %v153_v51 }
 0x189   :  { %v146_v54 = vpop.xlane.xlu0 %145  ;;  %v137_v55 = vpop.xlane.xlu1 %136 }
 0x18a   :  { %410 = vrsqrt.f32 %v156_v52  ;;  %v154_v56 = vmul.f32 0.03125, %v146_v54  ;;  %v151_v57 = vmul.f32 0.03125, %v137_v55 }
 0x18b   :  { %412 = vrsqrt.f32 %v159_v53 }
 0x18c   :  { %v160_v58 = vadd.f32 1e-05, %v154_v56  ;;  %v157_v59 = vadd.f32 1e-05, %v151_v57 }
 0x18d   :  { %v149_v60 = vpop.xlane.xlu1 %148 }
 0x18e   :  { %414 = vrsqrt.f32 %v160_v58  ;;  %v155_v61 = vmul.f32 0.03125, %v149_v60 }
 0x18f   :  { %416 = vrsqrt.f32 %v157_v59 }
 0x190   :  { %v409_v62 = vpop.eup %408  ;;  %v161_v63 = vadd.f32 1e-05, %v155_v61 }
 0x191   :  { %v170_v0 = vmul.f32 %v409_v62, %v678_v16 }
 0x192   :  { %418 = vrsqrt.f32 %v161_v63 }
 0x193   :  { %v183_v4 = vmul.f32 %v349_v1, %v170_v0 }
 0x194   :  { %v411_v2 = vpop.eup %410 }
 0x195   :  { %v413_v3 = vpop.eup %412  ;;  %v168_v5 = vmul.f32 %v411_v2, %v680_v17  ;;  %v196_v12 = vadd.f32 %v350_v7, %v183_v4 }
 0x196   :  { %v171_v6 = vmul.f32 %v413_v3, %v686_v24 }
 0x197   :  { %v181_v13 = vmul.f32 %v349_v1, %v168_v5 }
 0x198   :  { %v415_v8 = vpop.eup %414  ;;  %v184_v9 = vmul.f32 %v349_v1, %v171_v6 }
 0x199   :  { %v417_v10 = vpop.eup %416  ;;  %v172_v11 = vmul.f32 %v415_v8, %v696_v34  ;;  %v194_v17 = vadd.f32 %v350_v7, %v181_v13 }
 0x19a   :  { %v197_v14 = vadd.f32 %v350_v7, %v184_v9  ;;  %v169_v15 = vmul.f32 %v417_v10, %v689_v26 }
 0x19b   :  { %v185_v20 = vmul.f32 %v349_v1, %v172_v11 }
 0x19c   :  { %v419_v16 = vpop.eup %418  ;;  %v201_v18 = vpack.c.bf16 %v197_v14, %v196_v12  ;;  %v182_v19 = vmul.f32 %v349_v1, %v169_v15 }
 0x19d   :  { %v173_v21 = vmul.f32 %v419_v16, %v699_v36  ;;  %v198_v25 = vadd.f32 %v350_v7, %v185_v20 }
 0x19e   :  { %204 = vst.msk [vmem:[#allocation2 + $0x8] sm:$0xff] %vm94_vm0, %v201_v18  ;;  %v195_v22 = vadd.f32 %v350_v7, %v182_v19 }
 0x19f   :  { %v186_v23 = vmul.f32 %v349_v1, %v173_v21 }
 0x1a0   :  { %v200_v24 = vpack.c.bf16 %v195_v22, %v194_v17 }
 0x1a1   :  { %v199_v27 = vadd.f32 %v350_v7, %v186_v23 }
 0x1a2   :  { %203 = vst.msk [vmem:[#allocation2] sm:$0xff] %vm94_vm0, %v200_v24 }
 0x1a3   :  { %v202_v28 = vpack.c.bf16 %v199_v27, %v198_v25 }
 0x1a5   :  { %205 = vst.msk [vmem:[#allocation2 + $0x10] sm:$0xff] %vm94_vm0, %v202_v28  ;;  %v207_v26 = vld [vmem:[#allocation2 + $0x8] sm:$0xff] }
 0x1a6   :  { %383 = vmatmul.mubr.msk.bf16.vlgmr.msra.gmra.mrb[0].mxu1 %vm94_vm0, %v207_v26 }
 0x1a7   :  { %386 = vmatprep.mubr.msk.bf16.mxu1 %vm570_vm1, %v569_v43 }
 0x1a9   :  { %v206_v29 = vld [vmem:[#allocation2] sm:$0xff] }
 0x1aa   :  { %379 = vmatmul.mubr.msk.bf16.vlgmr.msra.gmra.mrb[0].mxu0 %vm94_vm0, %v206_v29 }
 0x1ac   :  { %v208_v30 = vld [vmem:[#allocation2 + $0x10] sm:$0xff] }
 0x1ae   :  { %387 = vmatmul.mubr.msk.bf16.gmra.mrb[4].mxu1 %vm94_vm0, %v208_v30 }
 0x279   :  { %v284_v32 = vpop.f32.mrb[0].mxu1 }
 0x27a   :  { %v285_v33 = vadd.f32 %v351_v31, %v284_v32  ;;  %v384_v34 = vpop.f32.mrb[1].mxu1 }
 0x27b   :  { %v287_v35 = vpop.f32.mrb[2].mxu1 }
 0x27c   :  { %v365_v36 = vpack.c.bf16 %v285_v33, %v285_v33  ;;  %v288_v37 = vadd.f32 %v351_v31, %v287_v35  ;;  %v385_v38 = vpop.f32.mrb[3].mxu1 }
 0x27d   :  { %v276_v39 = vpop.f32.mrb[0].mxu0 }
 0x27e   :  { %326 = vst.msk [vmem:[#allocation12 + $0x8] sm:$0xf] %vm323_vm2, %v365_v36  ;;  %v366_v40 = vpack.c.bf16 %v288_v37, %v288_v37  ;;  %v277_v41 = vadd.f32 %v351_v31, %v276_v39  ;;  %v380_v42 = vpop.f32.mrb[1].mxu0 }
 0x27f   :  { %v279_v43 = vpop.f32.mrb[2].mxu0 }
 0x280   :  { %327 = vst.msk [vmem:[#allocation12 + $0xc] sm:$0xf] %vm323_vm2, %v366_v40  ;;  %v363_v44 = vpack.c.bf16 %v277_v41, %v277_v41  ;;  %v280_v45 = vadd.f32 %v351_v31, %v279_v43  ;;  %v381_v46 = vpop.f32.mrb[3].mxu0 }
 0x281   :  { %v292_v47 = vpop.f32.mrb[4].mxu1 }
 0x282   :  { %324 = vst.msk [vmem:[#allocation12] sm:$0xf] %vm323_vm2, %v363_v44  ;;  %v364_v48 = vpack.c.bf16 %v280_v45, %v280_v45  ;;  %v293_v49 = vadd.f32 %v351_v31, %v292_v47  ;;  %v388_v50 = vpop.f32.mrb[5].mxu1 }
 0x283   :  { %v295_v51 = vpop.f32.mrb[6].mxu1 }
 0x284   :  { %325 = vst.msk [vmem:[#allocation12 + $0x4] sm:$0xf] %vm323_vm2, %v364_v48  ;;  %v367_v52 = vpack.c.bf16 %v293_v49, %v293_v49  ;;  %v296_v53 = vadd.f32 %v351_v31, %v295_v51  ;;  %v389_v54 = vpop.f32.mrb[7].mxu1 }
 0x286   :  { %328 = vst.msk [vmem:[#allocation12 + $0x10] sm:$0xf] %vm323_vm2, %v367_v52  ;;  %v368_v55 = vpack.c.bf16 %v296_v53, %v296_v53 }
 0x288   :  { %329 = vst.msk [vmem:[#allocation12 + $0x14] sm:$0xf] %vm323_vm2, %v368_v55 }
 0x289   :  { %541 = shalt.err (!%p538_p2)
}
 0x28a   :  { %s542_s10 = scalar_lea.hbm %s756_s5, 384 }
 0x28b   :  { %p543_p3 = scmp.ne.s32.totalorder %s756_s5, %s542_s10  ;;  %p546_p4 = scmp.lt.u32.totalorder %s542_s10, %s756_s5 }
 0x28d   :  { %p548_p5 = pnand %p546_p4, %p543_p3 }
 0x28f   :  { %551 = shalt.err (!%p548_p5)
}
 0x290   :  { %341 = dma.vmem_to_hbm [thread:$0]  %s336_s6, 384, %s756_s5, [#allocation5], %s562_s1, %s562_s1, %s563_s16  }
 0x291   :  { %558 = dma.done.wait [#allocation5], 384  }
 0x292   :  { %559 = vsyncadd [#allocation5], 4294966912 }
 0x293   :  { %345 = vsyncpa [#allocation4], 1 }
 0x294   :  { %346 = vsyncpa [#allocation7], 1 }
 0x295   :  { %347 = vsyncpa [#allocation10], 1 }
 0x296   :  { %348 = vsyncpa [#allocation5], 1 }

// kernel: _lambda_.19
= control target key start
LH: loop header
LB: loop body
LE: loop exit
PB: predicated region body
PF: predicated region fallthrough
CT: control target
= control target key end

     0   :  { %9 = vsyncpa [#allocation4], 0  ;;  %s569_s0 = inlined_call_operand.hbm [shape: bf16[48,32], index: 0, kind: input, shape index: {}]   ;;  %s570_s1 = inlined_call_operand.hbm [shape: bf16[32,32], index: 1, kind: input, shape index: {}]   ;;  %s571_s2 = inlined_call_operand.hbm [shape: f32[1,32], index: 2, kind: input, shape index: {}]   ;;  %s572_s3 = inlined_call_operand.hbm [shape: f32[48,32], index: 3, kind: input, shape index: {}]   ;;  %s573_s4 = inlined_call_operand.hbm [shape: f32[48,32], index: 4, kind: output, shape index: {}]  }
   0x1   :  { %10 = vsyncpa [#allocation7], 0 }
   0x2   :  { %11 = vsyncpa [#allocation10], 0 }
   0x3   :  { %12 = vsyncpa [#allocation5], 0  ;;  %s432_s15 = smov [#allocation6]   ;;  %s433_s17 = smov [#allocation3]  }
   0x4   :  { %s30_s16 = sshll.u32 %s432_s15, 4  ;;  %s18_s18 = sshll.u32 %s433_s17, 4  ;;  %s31_s16 = int_to_ptr.vmem [resolvable:$true] %s30_s16  ;;  %s468_s18 = int_to_ptr.vmem [resolvable:$true] %s18_s18 }
   0x5   :  { %s314_s21 = scalar_lea.hbm %s570_s1, 256 }
   0x6   :  { %p315_p0 = scmp.ne.s32.totalorder %s570_s1, %s314_s21  ;;  %p318_p1 = scmp.lt.u32.totalorder %s314_s21, %s570_s1 }
   0x8   :  { %p320_p2 = pnand %p318_p1, %p315_p0 }
   0xa   :  { %323 = shalt.err (!%p320_p2)
}
   0xb   :  { %s324_s26 = scalar_lea.vmem %s31_s16, 256  ;;  %p329_p4 = scmp.lt.s32.totalorder %s31_s16, %s31_s16 }
   0xc   :  { %p325_p3 = scmp.ne.s32.totalorder %s31_s16, %s324_s26  ;;  %p330_p5 = scmp.lt.s32.totalorder %s324_s26, %s324_s26 }
   0xe   :  { %p331_p6 = por %p330_p5, %p329_p4 }
  0x10   :  { %p332_p7 = pnand %p331_p6, %p325_p3 }
  0x12   :  { %335 = shalt.err (!%p332_p7)
}
  0x13   :  { %s434_s27 = smov 64   ;;  %s435_s28 = smov 4  }
  0x14   :  { %36 = dma.hbm_to_vmem [thread:$0]  %s570_s1, 256, %s31_s16, [#allocation7], %s434_s27, %s434_s27, %s435_s28  }
  0x15   :  { %s336_s7 = scalar_lea.hbm %s569_s0, 384 }
  0x16   :  { %p337_p8 = scmp.ne.s32.totalorder %s569_s0, %s336_s7  ;;  %p340_p9 = scmp.lt.u32.totalorder %s336_s7, %s569_s0 }
  0x18   :  { %p342_p10 = pnand %p340_p9, %p337_p8 }
  0x1a   :  { %345 = shalt.err (!%p342_p10)
}
  0x1b   :  { %s346_s12 = scalar_lea.vmem %s468_s18, 384  ;;  %p351_p12 = scmp.lt.s32.totalorder %s468_s18, %s468_s18 }
  0x1c   :  { %p347_p11 = scmp.ne.s32.totalorder %s468_s18, %s346_s12  ;;  %p352_p13 = scmp.lt.s32.totalorder %s346_s12, %s346_s12 }
  0x1e   :  { %p353_p0 = por %p352_p13, %p351_p12 }
  0x20   :  { %p354_p1 = pnand %p353_p0, %p347_p11 }
  0x22   :  { %357 = shalt.err (!%p354_p1)
}
  0x23   :  { %24 = dma.hbm_to_vmem [thread:$0]  %s569_s0, 384, %s468_s18, [#allocation4], %s434_s27, %s434_s27, %s435_s28  }
  0x24   :  { %s436_s14 = smov [#allocation8]   ;;  %s437_s16 = smov [#allocation9]  }
  0x25   :  { %s43_s15 = sshll.u32 %s436_s14, 4  ;;  %s52_s17 = sshll.u32 %s437_s16, 4  ;;  %s44_s15 = int_to_ptr.vmem [resolvable:$true] %s43_s15  ;;  %s499_s17 = int_to_ptr.vmem [resolvable:$true] %s52_s17 }
  0x26   :  { %s358_s21 = scalar_lea.hbm %s571_s2, 16 }
  0x27   :  { %p359_p2 = scmp.ne.s32.totalorder %s571_s2, %s358_s21  ;;  %p362_p3 = scmp.lt.u32.totalorder %s358_s21, %s571_s2 }
  0x29   :  { %p364_p4 = pnand %p362_p3, %p359_p2 }
  0x2b   :  { %367 = shalt.err (!%p364_p4)
}
  0x2c   :  { %s368_s0 = scalar_lea.vmem %s44_s15, 16  ;;  %s372_s18 = scalar_lea.vmem %s44_s15, 32 }
  0x2d   :  { %p369_p5 = scmp.ne.s32.totalorder %s44_s15, %s368_s0  ;;  %p373_p6 = scmp.lt.s32.totalorder %s44_s15, %s44_s15 }
  0x2e   :  { %p374_p7 = scmp.lt.s32.totalorder %s372_s18, %s368_s0 }
  0x30   :  { %p375_p8 = por %p374_p7, %p373_p6 }
  0x32   :  { %p376_p9 = pnand %p375_p8, %p369_p5 }
  0x34   :  { %379 = shalt.err (!%p376_p9)
}
  0x35   :  { %46 = dma.hbm_to_vmem [thread:$0]  %s571_s2, 16, %s44_s15, [#allocation7]  }
  0x36   :  { %s380_s30 = scalar_lea.hbm %s572_s3, 768 }
  0x37   :  { %p381_p10 = scmp.ne.s32.totalorder %s572_s3, %s380_s30  ;;  %p384_p11 = scmp.lt.u32.totalorder %s380_s30, %s572_s3 }
  0x39   :  { %p386_p12 = pnand %p384_p11, %p381_p10 }
  0x3b   :  { %389 = shalt.err (!%p386_p12)
}
  0x3c   :  { %s390_s9 = scalar_lea.vmem %s499_s17, 768  ;;  %p395_p0 = scmp.lt.s32.totalorder %s499_s17, %s499_s17 }
  0x3d   :  { %p391_p13 = scmp.ne.s32.totalorder %s499_s17, %s390_s9  ;;  %p396_p1 = scmp.lt.s32.totalorder %s390_s9, %s390_s9 }
  0x3f   :  { %p397_p2 = por %p396_p1, %p395_p0 }
  0x41   :  { %p398_p3 = pnand %p397_p2, %p391_p13 }
  0x43   :  { %401 = shalt.err (!%p398_p3)
}
  0x44   :  { %s438_s2 = smov 128   ;;  %s439_s10 = smov 8  }
  0x45   :  { %58 = dma.hbm_to_vmem [thread:$0]  %s572_s3, 768, %s499_s17, [#allocation10], %s438_s2, %s438_s2, %s439_s10  }
  0x46   :  { %424 = dma.done.wait [#allocation4], 384  }
  0x47   :  { %425 = vsyncadd [#allocation4], 4294966912 }
  0x48   :  { %426 = dma.done.wait [#allocation7], 272  }
  0x49   :  { %427 = vsyncadd [#allocation7], 4294967024 }
  0x4a   :  { %428 = dma.done.wait [#allocation10], 768  }
  0x4b   :  { %429 = vsyncadd [#allocation10], 4294966528  ;;  %vm76_vm0 = vcmask 261120   ;;  %v440_v0 = vmov 0.0   ;;  %vm441_vm1 = vmmov 0   ;;  %v309_v1 = vld [vmem:[#allocation6] sm:$0xff]  }
  0x4c   :  { %294 = vmatprep.subr.bf16.mxu1 %v440_v0  ;;  %278 = vmatprep.subr.bf16.mxu0 %v440_v0  ;;  %77 = vst.msk [vmem:[#allocation2] sm:$0xff] %vm76_vm0, %v440_v0  ;;  %78 = vst.msk [vmem:[#allocation2 + $0x8] sm:$0xff] %vm76_vm0, %v440_v0  ;;  %v310_v2 = vld [vmem:[#allocation6 + $0x8] sm:$0xff]   ;;  %v311_v3 = vld [vmem:[#allocation3 + $0x8] sm:$0xff]   ;;  %s442_s3 = smov [#allocation11]  }
  0x4d   :  { %79 = vst.msk [vmem:[#allocation2 + $0x10] sm:$0xff] %vm76_vm0, %v440_v0  ;;  %80 = vst.msk [vmem:[#allocation2 + $0x18] sm:$0xff] %vm76_vm0, %v440_v0  ;;  %286 = vmatprep.mubr.msk.bf16.mxu1 %vm441_vm1, %v440_v0  ;;  %282 = vmatprep.mubr.msk.bf16.mxu0 %vm441_vm1, %v440_v0  ;;  %v312_v4 = vld [vmem:[#allocation3] sm:$0xff]   ;;  %v313_v5 = vld [vmem:[#allocation3 + $0x10] sm:$0xff]   ;;  %s250_s1 = sshll.u32 %s442_s3, 4  ;;  %s251_s1 = int_to_ptr.vmem [resolvable:$true] %s250_s1 }
  0x4e   :  { %81 = vst.msk [vmem:[#allocation2 + $0x20] sm:$0xff] %vm76_vm0, %v440_v0  ;;  %82 = vst.msk [vmem:[#allocation2 + $0x28] sm:$0xff] %vm76_vm0, %v440_v0  ;;  %296 = vmatpush3.bf16.msra.mxu1 %v309_v1  ;;  %279 = vmatpush3.bf16.msra.mxu0 %v309_v1  ;;  %v272_v25 = vld [vmem:[#allocation8] ss:$0 sm:$0xff]  ;;  %v229_v28 = vld [vmem:[#allocation9 + $0x10] sm:$0xff]  ;;  %s402_s13 = scalar_lea.vmem %s251_s1, 768  ;;  %p407_p5 = scmp.lt.s32.totalorder %s251_s1, %s251_s1 }
  0x4f   :  { %295 = vmatprep.subr.bf16.mxu1 %v440_v0  ;;  %280 = vmatprep.subr.bf16.mxu0 %v440_v0  ;;  %v227_v32 = vld [vmem:[#allocation9] sm:$0xff]  ;;  %v230_v37 = vld [vmem:[#allocation9 + $0x18] sm:$0xff]  ;;  %v228_v40 = vld [vmem:[#allocation9 + $0x8] sm:$0xff]  ;;  %p403_p4 = scmp.ne.s32.totalorder %s251_s1, %s402_s13  ;;  %p408_p6 = scmp.lt.s32.totalorder %s402_s13, %s402_s13 }
  0x50   :  { %v231_v48 = vld [vmem:[#allocation9 + $0x20] sm:$0xff]  ;;  %v232_v51 = vld [vmem:[#allocation9 + $0x28] sm:$0xff] }
  0x51   :  { %p409_p7 = por %p408_p6, %p407_p5 }
  0x52   :  { %297 = vmatpush3.bf16.msra.mxu1 %v310_v2  ;;  %281 = vmatpush3.bf16.msra.mxu0 %v310_v2 }
  0x53   :  { %v89_v7 = vld [vmem:[#allocation2] sm:$0xff]  ;;  %v90_v11 = vld [vmem:[#allocation2 + $0x8] sm:$0xff]  ;;  %p410_p8 = pnand %p409_p7, %p403_p4 }
  0x54   :  { %v91_v6 = vld [vmem:[#allocation2 + $0x10] sm:$0xff]  ;;  %v92_v9 = vld [vmem:[#allocation2 + $0x18] sm:$0xff] }
  0x55   :  { %287 = vmatmul.mubr.msk.bf16.vlgmr.msra.gmra.mrb[0].mxu1 %vm76_vm0, %v311_v3  ;;  %283 = vmatmul.mubr.msk.bf16.vlgmr.msra.gmra.mrb[0].mxu0 %vm76_vm0, %v312_v4  ;;  %v93_v22 = vld [vmem:[#allocation2 + $0x20] sm:$0xff]  ;;  %v94_v24 = vld [vmem:[#allocation2 + $0x28] sm:$0xff] }
  0x56   :  { %290 = vmatprep.mubr.msk.bf16.mxu1 %vm441_vm1, %v440_v0 }
  0x5d   :  { %291 = vmatmul.mubr.msk.bf16.gmra.mrb[4].mxu1 %vm76_vm0, %v313_v5 }
 0x128   :  { %v178_v8 = vpop.f32.mrb[0].mxu1  ;;  %v170_v10 = vpop.f32.mrb[0].mxu0 }
 0x129   :  { %v195_v12 = vadd.f32 %v178_v8, %v91_v6  ;;  %v288_v13 = vpop.f32.mrb[1].mxu1  ;;  %v193_v14 = vadd.f32 %v170_v10, %v89_v7  ;;  %v284_v15 = vpop.f32.mrb[1].mxu0 }
 0x12a   :  { %v181_v16 = vpop.f32.mrb[2].mxu1  ;;  %v173_v17 = vpop.f32.mrb[2].mxu0 }
 0x12b   :  { %201 = vst.msk [vmem:[#allocation2 + $0x10] sm:$0xff] %vm76_vm0, %v195_v12  ;;  %v196_v18 = vadd.f32 %v181_v16, %v92_v9  ;;  %v289_v19 = vpop.f32.mrb[3].mxu1  ;;  %199 = vst.msk [vmem:[#allocation2] sm:$0xff] %vm76_vm0, %v193_v14  ;;  %v194_v20 = vadd.f32 %v173_v17, %v90_v11  ;;  %v285_v21 = vpop.f32.mrb[3].mxu0 }
 0x12d   :  { %202 = vst.msk [vmem:[#allocation2 + $0x18] sm:$0xff] %vm76_vm0, %v196_v18  ;;  %200 = vst.msk [vmem:[#allocation2 + $0x8] sm:$0xff] %vm76_vm0, %v194_v20 }
 0x130   :  { %v186_v23 = vpop.f32.mrb[4].mxu1 }
 0x131   :  { %v197_v26 = vadd.f32 %v186_v23, %v93_v22  ;;  %v292_v27 = vpop.f32.mrb[5].mxu1 }
 0x132   :  { %v189_v29 = vpop.f32.mrb[6].mxu1  ;;  %v208_v30 = vld [vmem:[#allocation2] sm:$0xff]  ;;  %v210_v31 = vld [vmem:[#allocation2 + $0x10] sm:$0xff] }
 0x133   :  { %203 = vst.msk [vmem:[#allocation2 + $0x20] sm:$0xff] %vm76_vm0, %v197_v26  ;;  %v198_v33 = vadd.f32 %v189_v29, %v94_v24  ;;  %v293_v34 = vpop.f32.mrb[7].mxu1  ;;  %v221_v35 = vadd.f32 %v272_v25, %v208_v30  ;;  %v223_v36 = vadd.f32 %v272_v25, %v210_v31 }
 0x134   :  { %v209_v38 = vld [vmem:[#allocation2 + $0x8] sm:$0xff]  ;;  %v211_v39 = vld [vmem:[#allocation2 + $0x18] sm:$0xff] }
 0x135   :  { %204 = vst.msk [vmem:[#allocation2 + $0x28] sm:$0xff] %vm76_vm0, %v198_v33  ;;  %v222_v41 = vadd.f32 %v272_v25, %v209_v38  ;;  %v224_v42 = vadd.f32 %v272_v25, %v211_v39  ;;  %v233_v43 = vadd.f32 %v227_v32, %v221_v35  ;;  %v235_v44 = vadd.f32 %v229_v28, %v223_v36 }
 0x137   :  { %v234_v45 = vadd.f32 %v228_v40, %v222_v41  ;;  %v236_v46 = vadd.f32 %v230_v37, %v224_v42  ;;  %239 = vst.msk [vmem:[#allocation11] sm:$0xff] %vm76_vm0, %v233_v43  ;;  %241 = vst.msk [vmem:[#allocation11 + $0x10] sm:$0xff] %vm76_vm0, %v235_v44 }
 0x139   :  { %240 = vst.msk [vmem:[#allocation11 + $0x8] sm:$0xff] %vm76_vm0, %v234_v45  ;;  %242 = vst.msk [vmem:[#allocation11 + $0x18] sm:$0xff] %vm76_vm0, %v236_v46 }
 0x13a   :  { %v212_v47 = vld [vmem:[#allocation2 + $0x20] sm:$0xff] }
 0x13b   :  { %v225_v49 = vadd.f32 %v272_v25, %v212_v47 }
 0x13c   :  { %v213_v50 = vld [vmem:[#allocation2 + $0x28] sm:$0xff] }
 0x13d   :  { %v226_v52 = vadd.f32 %v272_v25, %v213_v50  ;;  %v237_v53 = vadd.f32 %v231_v48, %v225_v49 }
 0x13f   :  { %v238_v54 = vadd.f32 %v232_v51, %v226_v52  ;;  %243 = vst.msk [vmem:[#allocation11 + $0x20] sm:$0xff] %vm76_vm0, %v237_v53 }
 0x141   :  { %244 = vst.msk [vmem:[#allocation11 + $0x28] sm:$0xff] %vm76_vm0, %v238_v54 }
 0x142   :  { %413 = shalt.err (!%p410_p8)
}
 0x143   :  { %s414_s16 = scalar_lea.hbm %s573_s4, 768 }
 0x144   :  { %p415_p9 = scmp.ne.s32.totalorder %s573_s4, %s414_s16  ;;  %p418_p10 = scmp.lt.u32.totalorder %s414_s16, %s573_s4 }
 0x146   :  { %p420_p11 = pnand %p418_p10, %p415_p9 }
 0x148   :  { %423 = shalt.err (!%p420_p11)
}
 0x149   :  { %256 = dma.vmem_to_hbm [thread:$0]  %s251_s1, 768, %s573_s4, [#allocation5], %s438_s2, %s438_s2, %s439_s10  }
 0x14a   :  { %430 = dma.done.wait [#allocation5], 768  }
 0x14b   :  { %431 = vsyncadd [#allocation5], 4294966528 }
 0x14c   :  { %260 = vsyncpa [#allocation4], 1 }
 0x14d   :  { %261 = vsyncpa [#allocation7], 1 }
 0x14e   :  { %262 = vsyncpa [#allocation10], 1 }
 0x14f   :  { %263 = vsyncpa [#allocation5], 1 }

// kernel: _lambda_.20
= control target key start
LH: loop header
LB: loop body
LE: loop exit
PB: predicated region body
PF: predicated region fallthrough
CT: control target
= control target key end

     0   :  { %10 = vsyncpa [#allocation4], 0  ;;  %s839_s0 = inlined_call_operand.hbm [shape: f32[48,32], index: 0, kind: input, shape index: {}]   ;;  %s840_s1 = inlined_call_operand.hbm [shape: f32[1,32], index: 1, kind: input, shape index: {}]   ;;  %s841_s2 = inlined_call_operand.hbm [shape: f32[1,32], index: 2, kind: input, shape index: {}]   ;;  %s842_s3 = inlined_call_operand.hbm [shape: bf16[32,128], index: 3, kind: input, shape index: {}]   ;;  %s843_s4 = inlined_call_operand.hbm [shape: f32[1,128], index: 4, kind: input, shape index: {}]   ;;  %s844_s5 = inlined_call_operand.hbm [shape: bf16[48,128], index: 5, kind: output, shape index: {}]  }
   0x1   :  { %11 = vsyncpa [#allocation7], 0 }
   0x2   :  { %12 = vsyncpa [#allocation10], 0 }
   0x3   :  { %13 = vsyncpa [#allocation5], 0  ;;  %s654_s18 = smov [#allocation6]   ;;  %s655_s20 = smov [#allocation9]  }
   0x4   :  { %s32_s19 = sshll.u32 %s654_s18, 4  ;;  %s51_s21 = sshll.u32 %s655_s20, 4  ;;  %s33_s19 = int_to_ptr.vmem [resolvable:$true] %s32_s19  ;;  %s696_s21 = int_to_ptr.vmem [resolvable:$true] %s51_s21 }
   0x5   :  { %s514_s24 = scalar_lea.hbm %s840_s1, 16 }
   0x6   :  { %p515_p0 = scmp.ne.s32.totalorder %s840_s1, %s514_s24  ;;  %p518_p1 = scmp.lt.u32.totalorder %s514_s24, %s840_s1 }
   0x8   :  { %p520_p2 = pnand %p518_p1, %p515_p0 }
   0xa   :  { %523 = shalt.err (!%p520_p2)
}
   0xb   :  { %s524_s29 = scalar_lea.vmem %s33_s19, 16  ;;  %s528_s30 = scalar_lea.vmem %s33_s19, 32 }
   0xc   :  { %p525_p3 = scmp.ne.s32.totalorder %s33_s19, %s524_s29  ;;  %p529_p4 = scmp.lt.s32.totalorder %s33_s19, %s33_s19 }
   0xd   :  { %p530_p5 = scmp.lt.s32.totalorder %s528_s30, %s524_s29 }
   0xf   :  { %p531_p6 = por %p530_p5, %p529_p4 }
  0x11   :  { %p532_p7 = pnand %p531_p6, %p525_p3 }
  0x13   :  { %535 = shalt.err (!%p532_p7)
}
  0x14   :  { %35 = dma.hbm_to_vmem [thread:$0]  %s840_s1, 16, %s33_s19, [#allocation7]  }
  0x15   :  { %s536_s10 = scalar_lea.hbm %s842_s3, 256 }
  0x16   :  { %p537_p8 = scmp.ne.s32.totalorder %s842_s3, %s536_s10  ;;  %p540_p9 = scmp.lt.u32.totalorder %s536_s10, %s842_s3 }
  0x18   :  { %p542_p10 = pnand %p540_p9, %p537_p8 }
  0x1a   :  { %545 = shalt.err (!%p542_p10)
}
  0x1b   :  { %s546_s15 = scalar_lea.vmem %s696_s21, 256  ;;  %p551_p12 = scmp.lt.s32.totalorder %s696_s21, %s696_s21 }
  0x1c   :  { %p547_p11 = scmp.ne.s32.totalorder %s696_s21, %s546_s15  ;;  %p552_p13 = scmp.lt.s32.totalorder %s546_s15, %s546_s15 }
  0x1e   :  { %p553_p0 = por %p552_p13, %p551_p12 }
  0x20   :  { %p554_p1 = pnand %p553_p0, %p547_p11 }
  0x22   :  { %557 = shalt.err (!%p554_p1)
}
  0x23   :  { %s656_s1 = smov 64   ;;  %s657_s16 = smov 4  }
  0x24   :  { %57 = dma.hbm_to_vmem [thread:$0]  %s842_s3, 256, %s696_s21, [#allocation10], %s656_s1, %s656_s1, %s657_s16  }
  0x25   :  { %s658_s19 = smov [#allocation3]   ;;  %s558_s24 = scalar_lea.hbm %s839_s0, 768 }
  0x26   :  { %s19_s20 = sshll.u32 %s658_s19, 4  ;;  %p559_p2 = scmp.ne.s32.totalorder %s839_s0, %s558_s24  ;;  %s20_s20 = int_to_ptr.vmem [resolvable:$true] %s19_s20 }
  0x27   :  { %p562_p3 = scmp.lt.u32.totalorder %s558_s24, %s839_s0 }
  0x29   :  { %p564_p4 = pnand %p562_p3, %p559_p2 }
  0x2b   :  { %567 = shalt.err (!%p564_p4)
}
  0x2c   :  { %s568_s29 = scalar_lea.vmem %s20_s20, 768  ;;  %p573_p6 = scmp.lt.s32.totalorder %s20_s20, %s20_s20 }
  0x2d   :  { %p569_p5 = scmp.ne.s32.totalorder %s20_s20, %s568_s29  ;;  %p574_p7 = scmp.lt.s32.totalorder %s568_s29, %s568_s29 }
  0x2f   :  { %p575_p8 = por %p574_p7, %p573_p6 }
  0x31   :  { %p576_p9 = pnand %p575_p8, %p569_p5 }
  0x33   :  { %579 = shalt.err (!%p576_p9)
}
  0x34   :  { %s659_s3 = smov 128   ;;  %s660_s21 = smov 8  }
  0x35   :  { %25 = dma.hbm_to_vmem [thread:$0]  %s839_s0, 768, %s20_s20, [#allocation4], %s659_s3, %s659_s3, %s660_s21  }
  0x36   :  { %s661_s7 = smov [#allocation8]   ;;  %s662_s9 = smov [#allocation11]  }
  0x37   :  { %s42_s8 = sshll.u32 %s661_s7, 4  ;;  %s64_s10 = sshll.u32 %s662_s9, 4  ;;  %s43_s8 = int_to_ptr.vmem [resolvable:$true] %s42_s8  ;;  %s65_s10 = int_to_ptr.vmem [resolvable:$true] %s64_s10 }
  0x38   :  { %s580_s13 = scalar_lea.hbm %s841_s2, 16 }
  0x39   :  { %p581_p10 = scmp.ne.s32.totalorder %s841_s2, %s580_s13  ;;  %p584_p11 = scmp.lt.u32.totalorder %s580_s13, %s841_s2 }
  0x3b   :  { %p586_p12 = pnand %p584_p11, %p581_p10 }
  0x3d   :  { %589 = shalt.err (!%p586_p12)
}
  0x3e   :  { %s590_s0 = scalar_lea.vmem %s43_s8, 16  ;;  %s594_s19 = scalar_lea.vmem %s43_s8, 32 }
  0x3f   :  { %p591_p13 = scmp.ne.s32.totalorder %s43_s8, %s590_s0  ;;  %p595_p0 = scmp.lt.s32.totalorder %s43_s8, %s43_s8 }
  0x40   :  { %p596_p1 = scmp.lt.s32.totalorder %s594_s19, %s590_s0 }
  0x42   :  { %p597_p2 = por %p596_p1, %p595_p0 }
  0x44   :  { %p598_p3 = pnand %p597_p2, %p591_p13 }
  0x46   :  { %601 = shalt.err (!%p598_p3)
}
  0x47   :  { %45 = dma.hbm_to_vmem [thread:$0]  %s841_s2, 16, %s43_s8, [#allocation7]  }
  0x48   :  { %s602_s25 = scalar_lea.hbm %s843_s4, 16 }
  0x49   :  { %p603_p4 = scmp.ne.s32.totalorder %s843_s4, %s602_s25  ;;  %p606_p5 = scmp.lt.u32.totalorder %s602_s25, %s843_s4 }
  0x4b   :  { %p608_p6 = pnand %p606_p5, %p603_p4 }
  0x4d   :  { %611 = shalt.err (!%p608_p6)
}
  0x4e   :  { %s612_s3 = scalar_lea.vmem %s65_s10, 16  ;;  %s616_s21 = scalar_lea.vmem %s65_s10, 32 }
  0x4f   :  { %p613_p7 = scmp.ne.s32.totalorder %s65_s10, %s612_s3  ;;  %p617_p8 = scmp.lt.s32.totalorder %s65_s10, %s65_s10 }
  0x50   :  { %p618_p9 = scmp.lt.s32.totalorder %s616_s21, %s612_s3 }
  0x52   :  { %p619_p10 = por %p618_p9, %p617_p8 }
  0x54   :  { %p620_p11 = pnand %p619_p10, %p613_p7 }
  0x56   :  { %623 = shalt.err (!%p620_p11)
}
  0x57   :  { %67 = dma.hbm_to_vmem [thread:$0]  %s843_s4, 16, %s65_s10, [#allocation10]  }
  0x58   :  { %646 = dma.done.wait [#allocation4], 768  }
  0x59   :  { %647 = vsyncadd [#allocation4], 4294966528 }
  0x5a   :  { %648 = dma.done.wait [#allocation7], 32  }
  0x5b   :  { %649 = vsyncadd [#allocation7], 4294967264 }
  0x5c   :  { %650 = dma.done.wait [#allocation10], 272  }
  0x5d   :  { %651 = vsyncadd [#allocation10], 4294967024  ;;  %vm94_vm0 = vcmask 261120   ;;  %v90_v0 = vld [vmem:[#allocation3 + $0x10] sm:$0xff]  ;;  %v91_v1 = vld [vmem:[#allocation3 + $0x18] sm:$0xff]  ;;  %v663_v43 = vmov 0.0  }
  0x5e   :  { %v88_v2 = vld [vmem:[#allocation3] sm:$0xff]  ;;  %v101_v3 = vsel %vm94_vm0, %v90_v0, 0.0  ;;  %v89_v5 = vld [vmem:[#allocation3 + $0x8] sm:$0xff]  ;;  %v104_v6 = vsel %vm94_vm0, %v91_v1, 0.0  ;;  %v476_v42 = vld [vmem:[#allocation9] sm:$0xff]   ;;  %460 = vmatprep.subr.bf16.mxu1 %v663_v43  ;;  %444 = vmatprep.subr.bf16.mxu0 %v663_v43  ;;  %vm664_vm1 = vmmov 0  }
  0x5f   :  { %v95_v4 = vsel %vm94_vm0, %v88_v2, 0.0  ;;  %102 = vadd.xlane.f32.xlu0 %v101_v3  ;;  %v98_v7 = vsel %vm94_vm0, %v89_v5, 0.0  ;;  %v92_v8 = vld [vmem:[#allocation3 + $0x20] sm:$0xff]  ;;  %v93_v9 = vld [vmem:[#allocation3 + $0x28] sm:$0xff]  ;;  %462 = vmatpush3.bf16.msra.mxu1 %v476_v42  ;;  %s665_s4 = smov [#allocation12]  }
  0x60   :  { %96 = vadd.xlane.f32.xlu1 %v95_v4  ;;  %v107_v10 = vsel %vm94_vm0, %v92_v8, 0.0  ;;  %v110_v11 = vsel %vm94_vm0, %v93_v9, 0.0  ;;  %445 = vmatpush3.bf16.msra.mxu0 %v476_v42  ;;  %v477_v44 = vld [vmem:[#allocation9 + $0x8] sm:$0xff]   ;;  %s382_s6 = sshll.u32 %s665_s4, 4  ;;  %s383_s6 = int_to_ptr.vmem [resolvable:$true] %s382_s6 }
  0x61   :  { %461 = vmatprep.subr.bf16.mxu1 %v663_v43  ;;  %446 = vmatprep.subr.bf16.mxu0 %v663_v43  ;;  %s624_s7 = scalar_lea.vmem %s383_s6, 384  ;;  %p629_p13 = scmp.lt.s32.totalorder %s383_s6, %s383_s6 }
  0x62   :  { %452 = vmatprep.mubr.msk.bf16.mxu1 %vm664_vm1, %v663_v43  ;;  %448 = vmatprep.mubr.msk.bf16.mxu0 %vm664_vm1, %v663_v43  ;;  %p625_p12 = scmp.ne.s32.totalorder %s383_s6, %s624_s7  ;;  %p630_p0 = scmp.lt.s32.totalorder %s624_s7, %s624_s7 }
  0x63   :  { %105 = vadd.xlane.f32.xlu0 %v104_v6  ;;  %463 = vmatpush3.bf16.msra.mxu1 %v477_v44 }
  0x64   :  { %99 = vadd.xlane.f32.xlu1 %v98_v7  ;;  %447 = vmatpush3.bf16.msra.mxu0 %v477_v44  ;;  %v397_v7 = vld [vmem:[#allocation8] ss:$0 sm:$0xff]  ;;  %p631_p1 = por %p630_p0, %p629_p13 }
  0x66   :  { %p632_p2 = pnand %p631_p1, %p625_p12 }
  0x67   :  { %108 = vadd.xlane.f32.xlu0 %v107_v10 }
  0x68   :  { %111 = vadd.xlane.f32.xlu1 %v110_v11 }
  0xec   :  { %v103_v12 = vpop.xlane.xlu0 %102 }
  0xed   :  { %v97_v13 = vpop.xlane.xlu1 %96  ;;  %v116_v14 = vmul.f32 0.03125, %v103_v12 }
  0xee   :  { %v114_v15 = vmul.f32 0.03125, %v97_v13 }
  0xef   :  { %v772_v16 = vsub.f32 %v90_v0, %v116_v14 }
  0xf0   :  { %v774_v17 = vsub.f32 %v88_v2, %v114_v15  ;;  %v106_v18 = vpop.xlane.xlu0 %105 }
  0xf1   :  { %v100_v19 = vpop.xlane.xlu1 %99  ;;  %v117_v20 = vmul.f32 0.03125, %v106_v18  ;;  %v128_v21 = vmul.f32 %v772_v16, %v772_v16 }
  0xf2   :  { %v115_v22 = vmul.f32 0.03125, %v100_v19  ;;  %v126_v23 = vmul.f32 %v774_v17, %v774_v17 }
  0xf3   :  { %v780_v24 = vsub.f32 %v91_v1, %v117_v20  ;;  %v138_v25 = vsel %vm94_vm0, %v128_v21, 0.0  ;;  %v396_v1 = vld [vmem:[#allocation6] ss:$0 sm:$0xff] }
  0xf4   :  { %v783_v26 = vsub.f32 %v89_v5, %v115_v22  ;;  %139 = vadd.xlane.f32.xlu0 %v138_v25  ;;  %v109_v27 = vpop.xlane.xlu0 %108  ;;  %v132_v28 = vsel %vm94_vm0, %v126_v23, 0.0 }
  0xf5   :  { %v112_v29 = vpop.xlane.xlu1 %111  ;;  %v118_v30 = vmul.f32 0.03125, %v109_v27  ;;  %v129_v31 = vmul.f32 %v780_v24, %v780_v24 }
  0xf6   :  { %v119_v32 = vmul.f32 0.03125, %v112_v29  ;;  %v127_v33 = vmul.f32 %v783_v26, %v783_v26 }
  0xf7   :  { %v790_v34 = vsub.f32 %v92_v8, %v118_v30  ;;  %v141_v35 = vsel %vm94_vm0, %v129_v31, 0.0  ;;  %v398_v31 = vld [vmem:[#allocation11] ss:$0 sm:$0xff] }
  0xf8   :  { %v793_v36 = vsub.f32 %v93_v9, %v119_v32  ;;  %142 = vadd.xlane.f32.xlu1 %v141_v35  ;;  %133 = vadd.xlane.f32.xlu0 %v132_v28  ;;  %v135_v38 = vsel %vm94_vm0, %v127_v33, 0.0 }
  0xf9   :  { %v130_v37 = vmul.f32 %v790_v34, %v790_v34 }
  0xfa   :  { %v131_v39 = vmul.f32 %v793_v36, %v793_v36 }
  0xfb   :  { %v144_v40 = vsel %vm94_vm0, %v130_v37, 0.0 }
  0xfc   :  { %145 = vadd.xlane.f32.xlu0 %v144_v40  ;;  %136 = vadd.xlane.f32.xlu1 %v135_v38  ;;  %v147_v41 = vsel %vm94_vm0, %v131_v39, 0.0 }
 0x100   :  { %148 = vadd.xlane.f32.xlu1 %v147_v41 }
 0x181   :  { %v140_v45 = vpop.xlane.xlu0 %139 }
 0x182   :  { %v152_v46 = vmul.f32 0.03125, %v140_v45 }
 0x184   :  { %v158_v47 = vadd.f32 1e-05, %v152_v46 }
 0x185   :  { %v134_v48 = vpop.xlane.xlu0 %133  ;;  %v143_v49 = vpop.xlane.xlu1 %142 }
 0x186   :  { %478 = vrsqrt.f32 %v158_v47  ;;  %v150_v50 = vmul.f32 0.03125, %v134_v48  ;;  %v153_v51 = vmul.f32 0.03125, %v143_v49 }
 0x188   :  { %v156_v52 = vadd.f32 1e-05, %v150_v50  ;;  %v159_v53 = vadd.f32 1e-05, %v153_v51 }
 0x189   :  { %v146_v54 = vpop.xlane.xlu0 %145  ;;  %v137_v55 = vpop.xlane.xlu1 %136 }
 0x18a   :  { %480 = vrsqrt.f32 %v156_v52  ;;  %v154_v56 = vmul.f32 0.03125, %v146_v54  ;;  %v151_v57 = vmul.f32 0.03125, %v137_v55 }
 0x18b   :  { %482 = vrsqrt.f32 %v159_v53 }
 0x18c   :  { %v160_v58 = vadd.f32 1e-05, %v154_v56  ;;  %v157_v59 = vadd.f32 1e-05, %v151_v57 }
 0x18d   :  { %v149_v60 = vpop.xlane.xlu1 %148 }
 0x18e   :  { %484 = vrsqrt.f32 %v160_v58  ;;  %v155_v61 = vmul.f32 0.03125, %v149_v60 }
 0x18f   :  { %486 = vrsqrt.f32 %v157_v59 }
 0x190   :  { %v479_v62 = vpop.eup %478  ;;  %v161_v63 = vadd.f32 1e-05, %v155_v61 }
 0x191   :  { %v170_v0 = vmul.f32 %v479_v62, %v772_v16 }
 0x192   :  { %488 = vrsqrt.f32 %v161_v63 }
 0x193   :  { %v183_v4 = vmul.f32 %v396_v1, %v170_v0 }
 0x194   :  { %v481_v2 = vpop.eup %480 }
 0x195   :  { %v483_v3 = vpop.eup %482  ;;  %v168_v5 = vmul.f32 %v481_v2, %v774_v17  ;;  %v196_v12 = vadd.f32 %v397_v7, %v183_v4 }
 0x196   :  { %v171_v6 = vmul.f32 %v483_v3, %v780_v24 }
 0x197   :  { %v181_v13 = vmul.f32 %v396_v1, %v168_v5 }
 0x198   :  { %v485_v8 = vpop.eup %484  ;;  %v184_v9 = vmul.f32 %v396_v1, %v171_v6 }
 0x199   :  { %v487_v10 = vpop.eup %486  ;;  %v172_v11 = vmul.f32 %v485_v8, %v790_v34  ;;  %v194_v17 = vadd.f32 %v397_v7, %v181_v13 }
 0x19a   :  { %v197_v14 = vadd.f32 %v397_v7, %v184_v9  ;;  %v169_v15 = vmul.f32 %v487_v10, %v783_v26 }
 0x19b   :  { %v185_v20 = vmul.f32 %v396_v1, %v172_v11 }
 0x19c   :  { %v489_v16 = vpop.eup %488  ;;  %v201_v18 = vpack.c.bf16 %v197_v14, %v196_v12  ;;  %v182_v19 = vmul.f32 %v396_v1, %v169_v15 }
 0x19d   :  { %v173_v21 = vmul.f32 %v489_v16, %v793_v36  ;;  %v198_v25 = vadd.f32 %v397_v7, %v185_v20 }
 0x19e   :  { %204 = vst.msk [vmem:[#allocation2 + $0x8] sm:$0xff] %vm94_vm0, %v201_v18  ;;  %v195_v22 = vadd.f32 %v397_v7, %v182_v19 }
 0x19f   :  { %v186_v23 = vmul.f32 %v396_v1, %v173_v21 }
 0x1a0   :  { %v200_v24 = vpack.c.bf16 %v195_v22, %v194_v17 }
 0x1a1   :  { %v199_v27 = vadd.f32 %v397_v7, %v186_v23 }
 0x1a2   :  { %203 = vst.msk [vmem:[#allocation2] sm:$0xff] %vm94_vm0, %v200_v24 }
 0x1a3   :  { %v202_v28 = vpack.c.bf16 %v199_v27, %v198_v25 }
 0x1a5   :  { %205 = vst.msk [vmem:[#allocation2 + $0x10] sm:$0xff] %vm94_vm0, %v202_v28  ;;  %v207_v26 = vld [vmem:[#allocation2 + $0x8] sm:$0xff] }
 0x1a6   :  { %453 = vmatmul.mubr.msk.bf16.vlgmr.msra.gmra.mrb[0].mxu1 %vm94_vm0, %v207_v26 }
 0x1a7   :  { %456 = vmatprep.mubr.msk.bf16.mxu1 %vm664_vm1, %v663_v43 }
 0x1a9   :  { %v206_v29 = vld [vmem:[#allocation2] sm:$0xff] }
 0x1aa   :  { %449 = vmatmul.mubr.msk.bf16.vlgmr.msra.gmra.mrb[0].mxu0 %vm94_vm0, %v206_v29 }
 0x1ac   :  { %v208_v30 = vld [vmem:[#allocation2 + $0x10] sm:$0xff] }
 0x1ae   :  { %457 = vmatmul.mubr.msk.bf16.gmra.mrb[4].mxu1 %vm94_vm0, %v208_v30 }
 0x279   :  { %v284_v32 = vpop.f32.mrb[0].mxu1 }
 0x27a   :  { %v285_v33 = vadd.f32 %v398_v31, %v284_v32  ;;  %v454_v34 = vpop.f32.mrb[1].mxu1 }
 0x27b   :  { %v287_v35 = vpop.f32.mrb[2].mxu1 }
 0x27c   :  { %v406_v36 = vmul.f32 -1.702, %v285_v33  ;;  %v288_v37 = vadd.f32 %v398_v31, %v287_v35  ;;  %v455_v38 = vpop.f32.mrb[3].mxu1 }
 0x27d   :  { %v276_v39 = vpop.f32.mrb[0].mxu0 }
 0x27e   :  { %v315_v40 = vmul.f32 1.442695, %v406_v36  ;;  %v407_v41 = vmul.f32 -1.702, %v288_v37  ;;  %v277_v42 = vadd.f32 %v398_v31, %v276_v39  ;;  %v450_v44 = vpop.f32.mrb[1].mxu0 }
 0x27f   :  { %v279_v43 = vpop.f32.mrb[2].mxu0 }
 0x280   :  { %490 = vpow2.f32 %v315_v40  ;;  %v317_v45 = vmul.f32 1.442695, %v407_v41  ;;  %v404_v46 = vmul.f32 -1.702, %v277_v42  ;;  %v280_v47 = vadd.f32 %v398_v31, %v279_v43  ;;  %v451_v48 = vpop.f32.mrb[3].mxu0 }
 0x281   :  { %v292_v49 = vpop.f32.mrb[4].mxu1 }
 0x282   :  { %492 = vpow2.f32 %v317_v45  ;;  %v311_v50 = vmul.f32 1.442695, %v404_v46  ;;  %v405_v51 = vmul.f32 -1.702, %v280_v47  ;;  %v293_v52 = vadd.f32 %v398_v31, %v292_v49  ;;  %v458_v53 = vpop.f32.mrb[5].mxu1 }
 0x283   :  { %v295_v54 = vpop.f32.mrb[6].mxu1 }
 0x284   :  { %494 = vpow2.f32 %v311_v50  ;;  %v313_v55 = vmul.f32 1.442695, %v405_v51  ;;  %v408_v56 = vmul.f32 -1.702, %v293_v52  ;;  %v296_v57 = vadd.f32 %v398_v31, %v295_v54  ;;  %v459_v58 = vpop.f32.mrb[7].mxu1 }
 0x286   :  { %496 = vpow2.f32 %v313_v55  ;;  %v319_v59 = vmul.f32 1.442695, %v408_v56  ;;  %v409_v60 = vmul.f32 -1.702, %v296_v57 }
 0x288   :  { %498 = vpow2.f32 %v319_v59  ;;  %v321_v61 = vmul.f32 1.442695, %v409_v60 }
 0x28a   :  { %v491_v62 = vpop.eup %490  ;;  %500 = vpow2.f32 %v321_v61 }
 0x28b   :  { %v325_v63 = vadd.f32 1.0, %v491_v62 }
 0x28c   :  { %v493_v0 = vpop.eup %492 }
 0x28d   :  { %502 = vrcp.f32 %v325_v63  ;;  %v326_v1 = vadd.f32 1.0, %v493_v0 }
 0x28e   :  { %v495_v2 = vpop.eup %494 }
 0x28f   :  { %504 = vrcp.f32 %v326_v1  ;;  %v323_v3 = vadd.f32 1.0, %v495_v2 }
 0x290   :  { %v497_v4 = vpop.eup %496 }
 0x291   :  { %506 = vrcp.f32 %v323_v3  ;;  %v324_v5 = vadd.f32 1.0, %v497_v4 }
 0x292   :  { %v499_v6 = vpop.eup %498 }
 0x293   :  { %508 = vrcp.f32 %v324_v5  ;;  %v327_v7 = vadd.f32 1.0, %v499_v6 }
 0x294   :  { %v501_v8 = vpop.eup %500 }
 0x295   :  { %510 = vrcp.f32 %v327_v7  ;;  %v328_v9 = vadd.f32 1.0, %v501_v8 }
 0x297   :  { %v503_v10 = vpop.eup %502  ;;  %512 = vrcp.f32 %v328_v9 }
 0x298   :  { %v343_v12 = vmul.f32 %v503_v10, %v285_v33 }
 0x299   :  { %v505_v11 = vpop.eup %504 }
 0x29a   :  { %v344_v13 = vmul.f32 %v505_v11, %v288_v37 }
 0x29b   :  { %v507_v14 = vpop.eup %506 }
 0x29c   :  { %v430_v15 = vpack.c.bf16 %v344_v13, %v343_v12  ;;  %v341_v18 = vmul.f32 %v507_v14, %v277_v42 }
 0x29d   :  { %v509_v16 = vpop.eup %508 }
 0x29e   :  { %437 = vst [vmem:[#allocation12 + $0x8] sm:$0xff] %v430_v15   ;;  %v342_v19 = vmul.f32 %v509_v16, %v280_v47 }
 0x29f   :  { %v511_v20 = vpop.eup %510 }
 0x2a0   :  { %v425_v21 = vpack.c.bf16 %v342_v19, %v341_v18  ;;  %v345_v22 = vmul.f32 %v511_v20, %v293_v52 }
 0x2a1   :  { %v513_v17 = vpop.eup %512 }
 0x2a2   :  { %426 = vst [vmem:[#allocation12] sm:$0xff] %v425_v21   ;;  %v346_v23 = vmul.f32 %v513_v17, %v296_v57 }
 0x2a4   :  { %v435_v24 = vpack.c.bf16 %v346_v23, %v345_v22 }
 0x2a6   :  { %438 = vst [vmem:[#allocation12 + $0x10] sm:$0xff] %v435_v24  }
 0x2a7   :  { %635 = shalt.err (!%p632_p2)
}
 0x2a8   :  { %s636_s10 = scalar_lea.hbm %s844_s5, 384 }
 0x2a9   :  { %p637_p3 = scmp.ne.s32.totalorder %s844_s5, %s636_s10  ;;  %p640_p4 = scmp.lt.u32.totalorder %s636_s10, %s844_s5 }
 0x2ab   :  { %p642_p5 = pnand %p640_p4, %p637_p3 }
 0x2ad   :  { %645 = shalt.err (!%p642_p5)
}
 0x2ae   :  { %388 = dma.vmem_to_hbm [thread:$0]  %s383_s6, 384, %s844_s5, [#allocation5], %s656_s1, %s656_s1, %s657_s16  }
 0x2af   :  { %652 = dma.done.wait [#allocation5], 384  }
 0x2b0   :  { %653 = vsyncadd [#allocation5], 4294966912 }
 0x2b1   :  { %392 = vsyncpa [#allocation4], 1 }
 0x2b2   :  { %393 = vsyncpa [#allocation7], 1 }
 0x2b3   :  { %394 = vsyncpa [#allocation10], 1 }
 0x2b4   :  { %395 = vsyncpa [#allocation5], 1 }

// kernel: _lambda_.18
= control target key start
LH: loop header
LB: loop body
LE: loop exit
PB: predicated region body
PF: predicated region fallthrough
CT: control target
= control target key end

     0   :  { %s2312_s0 = inlined_call_operand.hbm [shape: bf16[2,24,32], index: 0, kind: input, shape index: {}]   ;;  %s2313_s1 = inlined_call_operand.hbm [shape: bf16[2,24,32], index: 1, kind: input, shape index: {}]   ;;  %s2314_s2 = inlined_call_operand.hbm [shape: bf16[2,24,32], index: 2, kind: input, shape index: {}]   ;;  %s2315_s3 = inlined_call_operand.hbm [shape: bf16[2,24,32], index: 3, kind: output, shape index: {}]  }
   0x1   :  { %2325 = sst [smem:[#allocation15_spill]] %s2313_s1 }
   0x2   :  { %8 = vsyncpa [#allocation3], 0 }
   0x3   :  { %10 = vsyncpa [#allocation3 + $0x1], 0 }
   0x4   :  { %11 = vsyncpa [#allocation6], 0 }
   0x5   :  { %13 = vsyncpa [#allocation6 + $0x1], 0 }
   0x6   :  { %14 = vsyncpa [#allocation4], 0 }
   0x7   :  { %16 = vsyncpa [#allocation4 + $0x1], 0  ;;  %s1869_s12 = smov 0   ;;  %s1871_s13 = smov 0  }
   0x8   :  { %s1873_s14 = smov 0   ;;  %s1875_s15 = smov 0  }
   0x9   :  { %s1877_s16 = smov 0   ;;  %s1879_s17 = smov 0  }
   0xa LB: > { %2326 = sst [smem:[#allocation12_spill]] %s1828_s16  ;;  %s1900_s18 = sadd.s32 4294967295, %s1832_s17   ;;  %s1832_s17 = sphi %s1879_s17, %s22_s17   ;;  %s1828_s16 = sphi %s1877_s16, %s2349_s16   ;;  %s1824_s15 = sphi %s1875_s15, %s2348_s15   ;;  %s1820_s14 = sphi %s1873_s14, %s2352_s14   ;;  %s1816_s13 = sphi %s1871_s13, %s2351_s13   ;;  %s1812_s12 = sphi %s1869_s12, %s2350_s12  }
   0xb   : > { %s1311_s19 = sadd.s32 4294967294, %s1832_s17   ;;  %s34_s20 = sadd.s32 1, %s1828_s16 }
   0xc   : > { %s43_s21 = sadd.s32 1, %s1820_s14  ;;  %p36_p0 = scmp.ge.s32.totalorder %s34_s20, 2 }
   0xd   : > { %p50_p1 = scmp.ne.s32.totalorder %s1820_s14, %s1816_s13  ;;  %p51_p2 = scmp.eq.s32.totalorder %s1832_s17, 0 }
   0xe   : > { %p56_p3 = scmp.ne.s32.totalorder %s1816_s13, %s1812_s12  ;;  %s2354_s20 = smov (%p36_p0, %s34_s20), 0 }
   0xf   : > { %2327 = sst [smem:[#allocation13_spill]] %s2354_s20  ;;  %p1912_p4 = por %p51_p2, %p50_p1 }
  0x10   : > { %p57_p5 = scmp.eq.s32.totalorder %s1900_s18, 0  ;;  %s38_s23 = ssub.s32 %s1828_s16, %s2354_s20 }
  0x11   : > { %p138_p6 = scmp.eq.s32.totalorder %s1900_s18, 1  ;;  %p41_p7 = scmp.eq.s32.totalorder %s38_s23, 0 }
  0x12   : > { %p1920_p8 = por %p57_p5, %p56_p3  ;;  %p144_p10 = scmp.eq.s32.totalorder %s1311_s19, 1 }
  0x13   : > { %p1924_p9 = por %p138_p6, %p50_p1  ;;  %p1523_p13 = scmp.lt.s32.totalorder %s1832_s17, 2 }
  0x14   : > { %s2329_s24 = scalar_select %p1920_p8, 1, 0 }
  0x15   : > { %s2330_s25 = scalar_select %p1924_p9, 1, 0 }
  0x16   : > { %s1929_s26 = scalar_select %p41_p7, %s1820_s14, %s43_s21  }
  0x17   : > { %p1931_p11 = por %p144_p10, %p56_p3  ;;  %s2318_s28 = sand.u32 1, %s1820_s14  }
  0x18   : > { %2331 = sst [smem:[#allocation14_spill]] %s1929_s26  ;;  %s1940_s29 = smul.u32 12, %s2318_s28 }
  0x19   : > { %s2332_s27 = scalar_select %p1931_p11, 1, 0 }
  0x1a   : > { %s1943_s30 = smul.u32 192, %s1828_s16  ;;  %p1947_p0 = pnand %p1523_p13, %p1912_p4 }
  0x1b   : > { %s186_s5 = sand.u32 1, %s1832_s17   ;;  %s2334_s1 = sld [smem:[#allocation15_spill]] }
  0x1c   : > { %s190_s9 = scalar_lea.vmem [#allocation5], %s1940_s29  ;;  %s1963_s11 = scalar_lea.sflag [#allocation6], %s186_s5 }
  0x1d   : > { %s198_s10 = sshll.u32 %s190_s9, 4  ;;  %p1969_p4 = pneg %p1947_p0  ;;  %s1960_s10 = int_to_ptr.vmem [resolvable:$true] %s198_s10 }
  0x21   : > { %s1956_s8 = scalar_lea.hbm %s2334_s1, %s1943_s30  ;;  %s1661_s6 = scalar_lea.hbm %s2334_s1, 384 }
  0x22   : > { %s1656_s19 = scalar_lea.hbm %s1956_s8, 192  ;;  %p1662_p7 = scmp.lt.u32.totalorder %s1956_s8, %s2334_s1 }
  0x23   : > { %p1657_p3 = scmp.ne.s32.totalorder %s1956_s8, %s1656_s19  ;;  %p1663_p10 = scmp.lt.u32.totalorder %s1661_s6, %s1656_s19 }
  0x24   : > { %p1665_p12 = scmp.lt.u32.totalorder %s1656_s19, %s1956_s8 }
  0x25   : > { %p1659_p5 = pnand %p1969_p4, %p1657_p3  ;;  %p1664_p13 = por %p1663_p10, %p1662_p7 }
  0x27   : > { %p1660_p6 = pneg %p1659_p5  ;;  %p1666_p1 = por %p1665_p12, %p1664_p13 }
  0x29   : > { %p1667_p2 = pnand %p1666_p1, %p1660_p6 }
  0x2b   : > { %1670 = shalt.err (!%p1667_p2)
}
  0x2c   : > { %s1671_s5 = scalar_lea.vmem %s1960_s10, 192  ;;  %s1834_s22 = smov [#allocation5]  }
  0x2d   : > { %p1672_p3 = scmp.ne.s32.totalorder %s1960_s10, %s1671_s5  ;;  %s1676_s23 = sshll.u32 %s1834_s22, 4  ;;  %s1677_s23 = int_to_ptr.vmem [resolvable:$false] %s1676_s23 }
  0x2e   : > { %s1678_s7 = scalar_lea.vmem %s1677_s23, 384  ;;  %p1679_p9 = scmp.lt.s32.totalorder %s1960_s10, %s1677_s23 }
  0x2f   : > { %p1674_p5 = pnand %p1672_p3, %p1969_p4  ;;  %p1680_p8 = scmp.lt.s32.totalorder %s1678_s7, %s1671_s5 }
  0x31   : > { %p1675_p11 = pneg %p1674_p5  ;;  %p1681_p7 = por %p1680_p8, %p1679_p9 }
  0x33   : > { %p1682_p10 = pnand %p1681_p7, %p1675_p11 }
  0x35   : > { %1685 = shalt.err (!%p1682_p10)
}
  0x36   : > { %s2319_s19 = smov 64   ;;  %s2321_s6 = smov 4  }
  0x37   : > { %1515 = dma.hbm_to_vmem [thread:$0]  (!%p1947_p0), %s1956_s8, 192, %s1960_s10, %s1963_s11, %s2319_s19, %s2319_s19, %s2321_s6  }
  0x38   : > { %p2336_p8 = scmp.lt.s32.totalorder %s1832_s17, 3  ;;  %p2337_p9 = scmp.ge.s32.totalorder %s1832_s17, 1 }
  0x39   : > { %s2008_s23 = scalar_lea.hbm %s2312_s0, %s1943_s30  ;;  %s168_s7 = scalar_lea.vmem [#allocation2], %s1940_s29 }
  0x3a   : > { %p2000_p11 = pnand %p2337_p9, %p2336_p8  ;;  %s176_s28 = sshll.u32 %s168_s7, 4  ;;  %s2011_s28 = int_to_ptr.vmem [resolvable:$true] %s176_s28 }
  0x3b   : > { %s2017_s19 = scalar_lea.hbm %s2314_s2, %s1943_s30  ;;  %s2339_s6 = sand.u32 1, %s1820_s14  }
  0x3c   : > { %s2338_s9 = scalar_select %p2000_p11, 1, 0 }
  0x3d   : > { %s2021_s1 = scalar_lea.sflag [#allocation3], %s2339_s6  ;;  %s1686_s20 = scalar_lea.hbm %s2008_s23, 192 }
  0x3e   : > { %p1687_p12 = scmp.ne.s32.totalorder %s2008_s23, %s1686_s20  ;;  %s1691_s16 = scalar_lea.hbm %s2312_s0, 384 }
  0x3f   : > { %p1692_p6 = scmp.lt.u32.totalorder %s2008_s23, %s2312_s0  ;;  %p1693_p13 = scmp.lt.u32.totalorder %s1691_s16, %s1686_s20 }
  0x40   : > { %p1689_p1 = pnand %p1687_p12, %p1969_p4  ;;  %p1695_p5 = scmp.lt.u32.totalorder %s1686_s20, %s2008_s23 }
  0x41   : > { %p1694_p3 = por %p1693_p13, %p1692_p6 }
  0x42   : > { %p1690_p2 = pneg %p1689_p1 }
  0x43   : > { %p1696_p7 = por %p1695_p5, %p1694_p3 }
  0x45   : > { %p1697_p10 = pnand %p1696_p7, %p1690_p2 }
  0x47   : > { %1700 = shalt.err (!%p1697_p10)
}
  0x48   : > { %s1701_s30 = scalar_lea.vmem %s2011_s28, 192  ;;  %s1837_s6 = smov [#allocation2]  }
  0x49   : > { %p1702_p8 = scmp.ne.s32.totalorder %s2011_s28, %s1701_s30  ;;  %s1706_s8 = sshll.u32 %s1837_s6, 4  ;;  %s1707_s8 = int_to_ptr.vmem [resolvable:$false] %s1706_s8 }
  0x4a   : > { %s1708_s26 = scalar_lea.vmem %s1707_s8, 384  ;;  %p1709_p1 = scmp.lt.s32.totalorder %s2011_s28, %s1707_s8 }
  0x4b   : > { %p1704_p9 = pnand %p1702_p8, %p1969_p4  ;;  %p1710_p11 = scmp.lt.s32.totalorder %s1708_s26, %s1701_s30 }
  0x4d   : > { %p1705_p12 = pneg %p1704_p9  ;;  %p1711_p6 = por %p1710_p11, %p1709_p1 }
  0x4f   : > { %p1712_p13 = pnand %p1711_p6, %p1705_p12 }
  0x51   : > { %1715 = shalt.err (!%p1712_p13)
}
  0x52   : > { %s2340_s16 = smov 4   ;;  %s2341_s20 = smov 64  }
  0x53   : > { %1512 = dma.hbm_to_vmem [thread:$0]  (!%p1947_p0), %s2008_s23, 192, %s2011_s28, %s2021_s1, %s2341_s20, %s2341_s20, %s2340_s16  }
  0x54   : > { %s212_s10 = scalar_lea.vmem [#allocation7], %s1940_s29  ;;  %s1716_s22 = scalar_lea.hbm %s2017_s19, 192 }
  0x55   : > { %s220_s5 = sshll.u32 %s212_s10, 4  ;;  %p1717_p11 = scmp.ne.s32.totalorder %s2017_s19, %s1716_s22  ;;  %s2049_s5 = int_to_ptr.vmem [resolvable:$true] %s220_s5 }
  0x56   : > { %s1721_s6 = scalar_lea.hbm %s2314_s2, 384  ;;  %p1722_p5 = scmp.lt.u32.totalorder %s2017_s19, %s2314_s2 }
  0x57   : > { %p1719_p2 = pnand %p1717_p11, %p1969_p4  ;;  %p1723_p7 = scmp.lt.u32.totalorder %s1721_s6, %s1716_s22 }
  0x58   : > { %p1725_p8 = scmp.lt.u32.totalorder %s1716_s22, %s2017_s19 }
  0x59   : > { %p1720_p3 = pneg %p1719_p2  ;;  %p1724_p10 = por %p1723_p7, %p1722_p5 }
  0x5b   : > { %p1726_p9 = por %p1725_p8, %p1724_p10 }
  0x5d   : > { %p1727_p12 = pnand %p1726_p9, %p1720_p3 }
  0x5f   : > { %1730 = shalt.err (!%p1727_p12)
}
  0x60   : > { %s1731_s1 = scalar_lea.vmem %s2049_s5, 192  ;;  %s1838_s28 = smov [#allocation7]  }
  0x61   : > { %p1732_p1 = scmp.ne.s32.totalorder %s2049_s5, %s1731_s1  ;;  %s1736_s29 = sshll.u32 %s1838_s28, 4  ;;  %s1737_s29 = int_to_ptr.vmem [resolvable:$false] %s1736_s29 }
  0x62   : > { %s1738_s23 = scalar_lea.vmem %s1737_s29, 384  ;;  %p1739_p11 = scmp.lt.s32.totalorder %s2049_s5, %s1737_s29 }
  0x63   : > { %p1734_p6 = pnand %p1732_p1, %p1969_p4  ;;  %p1740_p2 = scmp.lt.s32.totalorder %s1738_s23, %s1731_s1 }
  0x65   : > { %p1735_p13 = pneg %p1734_p6  ;;  %p1741_p5 = por %p1740_p2, %p1739_p11 }
  0x67   : > { %p1742_p7 = pnand %p1741_p5, %p1735_p13 }
  0x69   : > { %1745 = shalt.err (!%p1742_p7)
}
  0x6a   : > { %1518 = dma.hbm_to_vmem [thread:$0]  (!%p1947_p0), %s2017_s19, 192, %s2049_s5, %s1963_s11, %s2341_s20, %s2341_s20, %s2340_s16  }
  0x6b   : > { %p2342_p4 = scmp.ne.s32.totalorder %s2338_s9, 0 }
  0x6c   : > { %s2079_s21 = sand.u32 (!%p2342_p4), 1, %s1816_s13   ;;  %p2343_p3 = scmp.ne.s32.totalorder (!%p2342_p4), %s2329_s24, 0 }
  0x6d   : > { %232 = sbr.rel (%p2342_p4) target bundleno = 2682 (0xa7a), region = 32  ;;  %s235_s4 = scalar_lea.sflag (!%p2342_p4), [#allocation3], %s2079_s21 }
  0x6e   : > { %s2082_s10 = smul.u32 (!%p2342_p4), 12, %s2079_s21 }
  0x70   : > { %s2086_s22 = scalar_lea.vmem (!%p2342_p4), [#allocation2], %s2082_s10 }
  0x74   : > { %1799 = dma.done.wait (%p2343_p3), %s235_s4, 192  }
  0x75   : > { %1801 = vsyncadd (%p2343_p3), %s235_s4, 4294967104  ;;  %s243_s11 = sand.u32 1, %s1900_s18   ;;  %s2094_s9 = scalar_lea.vmem [#allocation5], %s2082_s10 }
  0x76   : > { %s244_s19 = scalar_lea.sflag [#allocation6], %s243_s11 }
  0x77   : > { %1803 = dma.done.wait (%p2343_p3), %s244_s19, 384  }
  0x78   : > { %1805 = vsyncadd (%p2343_p3), %s244_s19, 4294966912  ;;  %vm319_vm0 = vcmask 64512   ;;  %v1584_v0 = vld [vmem:[%s2094_s9] sm:$0xff]   ;;  %v1585_v1 = vld [vmem:[%s2094_s9 + $0x8] ss:$0 sps:$4 sm:$0xff]   ;;  %v290_v6 = vlaneseq  ;;  %vm380_vm2 = vcmask 195584  }
  0x79   : > { %1481 = vmatprep.subr.msk.bf16.mxu0 %vm319_vm0, %v1584_v0  ;;  %v327_v2 = vsel %vm319_vm0, %v1584_v0, 0  ;;  %v1586_v3 = vld [vmem:[%s2086_s22] sm:$0xff]   ;;  %v330_v4 = vsel %vm319_vm0, %v1585_v1, 0  ;;  %v1587_v5 = vld [vmem:[%s2086_s22 + $0x8] ss:$0 sps:$4 sm:$0xff]   ;;  %s2124_s18 = scalar_lea.vmem [#allocation7], %s2082_s10 }
  0x7a   : > { %1418 = vmatpush3.bf16.xpose.msra.mxu0 %v327_v2  ;;  %1421 = vmatprep.mubr.msk.bf16.mxu0 %vm319_vm0, %v1586_v3  ;;  %v291_v7 = vand.u32 127, %v290_v6  ;;  %v1839_v8 = vmov -1e+09   ;;  %v1589_v35 = vld [vmem:[%s2094_s9 + $0x8] ss:$0 sps:$4 sm:$0xff]   ;;  %v1592_v37 = vld [vmem:[%s2124_s18] sm:$0xff]  }
  0x7b   : > { %1482 = vmatprep.subr.msk.bf16.mxu0 %vm319_vm0, %v1585_v1  ;;  %v1590_v36 = vld [vmem:[%s2086_s22] sm:$0xff]   ;;  %vm431_vm3 = vcmask 1043456   ;;  %v1593_v38 = vld [vmem:[%s2124_s18 + $0x8] ss:$0 sps:$4 sm:$0xff]   ;;  %s1840_s24 = smov 120   ;;  %1425 = vmatprep.subr.bf16.mxu1 %v1592_v37  ;;  %vm496_vm4 = vcmask 60416  }
  0x7c   : > { %vm292_vm1 = vcmp.lt.s32.totalorder %v291_v7, 17  ;;  %v1588_v39 = vld [vmem:[%s2094_s9] sm:$0xff]   ;;  %1426 = vmatpush3.bf16.msra.mxu1 %v1592_v37  ;;  %v433_v40 = vsel %vm431_vm3, %v1593_v38, 0  ;;  %v1591_v41 = vld [vmem:[%s2086_s22 + $0x8] ss:$0 sps:$4 sm:$0xff]   ;;  %s2145_s16 = scalar_lea.vmem [#allocation8], %s2082_s10 }
  0x7d   : > { %v2110_v9 = vsel %vm292_vm1, 0.0, %v1839_v8  ;;  %1483 = vmatprep.subr.msk.bf16.mxu1 %vm431_vm3, %v1593_v38  ;;  %s1841_s20 = smov 112   ;;  %s1842_s5 = smov 104   ;;  %vm717_vm5 = vcmask 126016   ;;  %vm938_vm6 = vcmask 191616   ;;  %vm1159_vm7 = vcmask 257216  }
  0x7e   : > { %s1843_s7 = smov 8   ;;  %s1844_s30 = smov 16  }
  0x7f   : > { %s1845_s6 = smov 24   ;;  %s1500_s8 = smul.u32 192, %s1824_s15 }
  0x80   : > { %1428 = vmatpush3.bf16.msra.mxu1 %v433_v40  ;;  %s1178_s26 = sshll.u32 %s2145_s16, 4  ;;  %s1164_s23 = scalar_lea.sflag [#allocation4], %s2079_s21  ;;  %s2261_s26 = int_to_ptr.vmem [resolvable:$true] %s1178_s26 }
  0x81   : > { %s2259_s29 = scalar_lea.hbm %s2315_s3, %s1500_s8  ;;  %s1746_s10 = scalar_lea.vmem %s2261_s26, 192 }
  0x82   : > { %1420 = vmatpush3.bf16.xpose.msra.mxu0 %v330_v4  ;;  %p1747_p0 = scmp.ne.s32.totalorder %s2261_s26, %s1746_s10  ;;  %p2344_p10 = scmp.ne.s32.totalorder %s2330_s25, 0 }
  0x83   : > { %s1846_s15 = smov [#allocation8]  }
  0x84   : > { %p1748_p8 = pnand %p1747_p0, %p2344_p10  ;;  %s1750_s4 = sshll.u32 %s1846_s15, 4  ;;  %s1751_s4 = int_to_ptr.vmem [resolvable:$false] %s1750_s4 }
  0x85   : > { %p1753_p12 = scmp.lt.s32.totalorder %s2261_s26, %s1751_s4 }
  0x86   : > { %p1749_p9 = pneg %p1748_p8 }
  0x89   : > { %1422 = vmatmul.mubr.msk.bf16.vlgmr.msra.gmra.mrb[0].mxu0 %vm319_vm0, %v1587_v5 }
 0x15c   : > { %v1423_v10 = vpop.f32.mrb[0].mxu0 }
 0x15d   : > { %v375_v11 = vadd.f32 %v1423_v10, %v2110_v9  ;;  %v366_v12 = vpop.f32.mrb[1].mxu0 }
 0x15e   : > { %v367_v13 = vadd.f32 %v366_v12, %v2110_v9  ;;  %v1424_v14 = vpop.f32.mrb[2].mxu0 }
 0x15f   : > { %v369_v15 = vpop.f32.mrb[3].mxu0  ;;  %v387_v16 = vsel %vm380_vm2, %v375_v11, -inf }
 0x160   : > { %v370_v17 = vadd.f32 %v369_v15, %v2110_v9  ;;  %388 = vmax.xlane.f32.xlu1 %v387_v16  ;;  %v381_v18 = vsel %vm380_vm2, %v367_v13, -inf }
 0x161   : > { %382 = vmax.xlane.f32.xlu0 %v381_v18 }
 0x162   : > { %v384_v19 = vsel %vm380_vm2, %v370_v17, -inf }
 0x165   : > { %385 = vmax.xlane.f32.xlu0 %v384_v19 }
 0x1ed   : > { %v389_v20 = vpop.xlane.xlu1 %388 }
 0x1ee   : > { %v392_v21 = vsub.f32 %v375_v11, %v389_v20  ;;  %v383_v22 = vpop.xlane.xlu0 %382 }
 0x1ef   : > { %v390_v23 = vsub.f32 %v367_v13, %v383_v22 }
 0x1f0   : > { %v397_v24 = vmul.f32 1.442695, %v392_v21 }
 0x1f1   : > { %v393_v25 = vmul.f32 1.442695, %v390_v23 }
 0x1f2   : > { %v386_v26 = vpop.xlane.xlu0 %385 }
 0x1f3   : > { %1608 = vpow2.f32 %v393_v25  ;;  %v391_v27 = vsub.f32 %v370_v17, %v386_v26 }
 0x1f4   : > { %1610 = vpow2.f32 %v397_v24 }
 0x1f5   : > { %v395_v28 = vmul.f32 1.442695, %v391_v27 }
 0x1f7   : > { %1612 = vpow2.f32 %v395_v28  ;;  %v1595_v28 = vld [vmem:[%s2124_s18 + $0x8] ss:$0 sps:$4 sm:$0xff]  }
 0x1fd   : > { %v1609_v29 = vpop.eup %1608 }
 0x1fe   : > { %v399_v30 = vsel %vm380_vm2, %v1609_v29, 0.0  ;;  %v1611_v31 = vpop.eup %1610 }
 0x1ff   : > { %400 = vadd.xlane.f32.xlu1 %v399_v30  ;;  %v405_v33 = vsel %vm380_vm2, %v1611_v31, 0.0  ;;  %v1594_v30 = vld [vmem:[%s2124_s18] sm:$0xff]  }
 0x201   : > { %v1613_v32 = vpop.eup %1612 }
 0x202   : > { %v402_v34 = vsel %vm380_vm2, %v1613_v32, 0.0 }
 0x203   : > { %406 = vadd.xlane.f32.xlu1 %v405_v33  ;;  %403 = vadd.xlane.f32.xlu0 %v402_v34  ;;  %v1599_v33 = vld [vmem:[%s2086_s22 + $0x8] ss:$0 sps:$4 sm:$0xff]  }
 0x214   : > { %531 = vrot.lane.b32.xlu1 %v1589_v35, %s1840_s24 }
 0x218   : > { %517 = vrot.lane.b32.xlu1 %v1590_v36, %s1840_s24 }
 0x219   : > { %529 = vrot.lane.b32.xlu0 %v1588_v39, %s1840_s24 }
 0x21c   : > { %519 = vrot.lane.b32.xlu1 %v1591_v41, %s1840_s24 }
 0x28c   : > { %v401_v42 = vpop.xlane.xlu1 %400 }
 0x28d   : > { %1614 = vrcp.f32 %v401_v42 }
 0x290   : > { %v407_v43 = vpop.xlane.xlu1 %406  ;;  %v404_v44 = vpop.xlane.xlu0 %403 }
 0x291   : > { %1616 = vrcp.f32 %v407_v43 }
 0x292   : > { %1618 = vrcp.f32 %v404_v44 }
 0x294   : > { %v530_v45 = vpop.permute.xlu0 %529  ;;  %v532_v47 = vpop.permute.xlu1 %531 }
 0x295   : > { %1484 = vmatprep.subr.msk.bf16.mxu1 %vm319_vm0, %v530_v45  ;;  %v540_v55 = vsel %vm319_vm0, %v530_v45, 0  ;;  %v543_v57 = vsel %vm319_vm0, %v532_v47, 0 }
 0x297   : > { %v1615_v46 = vpop.eup %1614 }
 0x298   : > { %v411_v51 = vmul.f32 %v1615_v46, %v1609_v29  ;;  %v518_v56 = vpop.permute.xlu1 %517  ;;  %v1596_v29 = vld [vmem:[%s2094_s9] sm:$0xff]  }
 0x29b   : > { %v1617_v48 = vpop.eup %1616 }
 0x29c   : > { %v1619_v49 = vpop.eup %1618  ;;  %v413_v50 = vmul.f32 %v1617_v48, %v1611_v31  ;;  %v520_v58 = vpop.permute.xlu1 %519  ;;  %v1597_v31 = vld [vmem:[%s2094_s9 + $0x8] ss:$0 sps:$4 sm:$0xff]  }
 0x29d   : > { %v412_v52 = vmul.f32 %v1619_v49, %v1613_v32  ;;  %v1598_v32 = vld [vmem:[%s2086_s22] sm:$0xff]  }
 0x29e   : > { %v415_v53 = vpack.c.bf16 %v413_v50, %v413_v50 }
 0x29f   : > { %v414_v54 = vpack.c.bf16 %v412_v52, %v411_v51 }
 0x2a1   : > { %1429 = vmatprep.mubr.msk.bf16.mxu1 %vm380_vm2, %v414_v54 }
 0x2a2   : > { %1430 = vmatmul.mubr.msk.bf16.vlgmr.msra.gmra.mrb[0].mxu1 %vm380_vm2, %v415_v53 }
 0x2a3   : > { %1434 = vmatpush3.bf16.xpose.msra.mxu1 %v540_v55  ;;  %1437 = vmatprep.mubr.msk.bf16.mxu1 %vm319_vm0, %v518_v56 }
 0x2a4   : > { %1485 = vmatprep.subr.msk.bf16.mxu1 %vm319_vm0, %v532_v47 }
 0x2ab   : > { %1436 = vmatpush3.bf16.xpose.msra.mxu1 %v543_v57 }
 0x2b2   : > { %1438 = vmatmul.mubr.msk.bf16.vlgmr.msra.gmra.mrb[4].mxu1 %vm319_vm0, %v520_v58 }
 0x375   : > { %v1431_v59 = vpop.f32.mrb[0].mxu1 }
 0x376   : > { %v1375_v60 = vpack.c.bf16 %v1431_v59, %v1431_v59  ;;  %v469_v61 = vpop.f32.mrb[1].mxu1 }
 0x377   : > { %v1373_v62 = vpack.c.bf16 %v469_v61, %v469_v61  ;;  %v1432_v63 = vpop.f32.mrb[2].mxu1 }
 0x378   : > { %499 = vst.msk [vmem:[%s2145_s16 + $0x8] sm:$0xf] %vm496_vm4, %v1375_v60  ;;  %v472_v0 = vpop.f32.mrb[3].mxu1 }
 0x379   : > { %497 = vst.msk [vmem:[%s2145_s16] sm:$0xf] %vm496_vm4, %v1373_v62  ;;  %v1374_v1 = vpack.c.bf16 %v472_v0, %v472_v0 }
 0x37b   : > { %498 = vst.msk [vmem:[%s2145_s16 + $0x4] sm:$0xf] %vm496_vm4, %v1374_v1 }
 0x385   : > { %v1439_v2 = vpop.f32.mrb[4].mxu1 }
 0x386   : > { %v579_v3 = vpop.f32.mrb[5].mxu1  ;;  %v588_v7 = vadd.f32 %v1439_v2, %v2110_v9 }
 0x387   : > { %v580_v4 = vadd.f32 %v579_v3, %v2110_v9  ;;  %v1440_v5 = vpop.f32.mrb[6].mxu1 }
 0x388   : > { %v582_v6 = vpop.f32.mrb[7].mxu1  ;;  %v599_v12 = vsel %vm380_vm2, %v588_v7, -inf }
 0x389   : > { %v583_v8 = vadd.f32 %v582_v6, %v2110_v9  ;;  %v593_v10 = vsel %vm380_vm2, %v580_v4, -inf }
 0x38a   : > { %594 = vmax.xlane.f32.xlu0 %v593_v10 }
 0x38b   : > { %v596_v11 = vsel %vm380_vm2, %v583_v8, -inf }
 0x38c   : > { %597 = vmax.xlane.f32.xlu1 %v596_v11 }
 0x38e   : > { %600 = vmax.xlane.f32.xlu0 %v599_v12 }
 0x417   : > { %v595_v13 = vpop.xlane.xlu0 %594 }
 0x418   : > { %v602_v14 = vsub.f32 %v580_v4, %v595_v13 }
 0x419   : > { %v598_v15 = vpop.xlane.xlu1 %597 }
 0x41a   : > { %v605_v16 = vmul.f32 1.442695, %v602_v14  ;;  %v603_v17 = vsub.f32 %v583_v8, %v598_v15 }
 0x41b   : > { %v601_v18 = vpop.xlane.xlu0 %600 }
 0x41c   : > { %1620 = vpow2.f32 %v605_v16  ;;  %v607_v19 = vmul.f32 1.442695, %v603_v17  ;;  %v604_v20 = vsub.f32 %v588_v7, %v601_v18 }
 0x41e   : > { %1622 = vpow2.f32 %v607_v19  ;;  %v609_v21 = vmul.f32 1.442695, %v604_v20  ;;  %v1601_v20 = vld [vmem:[%s2124_s18 + $0x8] ss:$0 sps:$4 sm:$0xff]  }
 0x420   : > { %1624 = vpow2.f32 %v609_v21  ;;  %v1602_v21 = vld [vmem:[%s2094_s9] sm:$0xff]  }
 0x426   : > { %v1621_v22 = vpop.eup %1620 }
 0x427   : > { %v611_v23 = vsel %vm380_vm2, %v1621_v22, 0.0 }
 0x428   : > { %v1623_v24 = vpop.eup %1622  ;;  %612 = vadd.xlane.f32.xlu0 %v611_v23  ;;  %v1603_v23 = vld [vmem:[%s2094_s9 + $0x8] ss:$0 sps:$4 sm:$0xff]  }
 0x429   : > { %v614_v26 = vsel %vm380_vm2, %v1623_v24, 0.0 }
 0x42a   : > { %v1625_v25 = vpop.eup %1624 }
 0x42b   : > { %v617_v27 = vsel %vm380_vm2, %v1625_v25, 0.0 }
 0x42c   : > { %615 = vadd.xlane.f32.xlu0 %v614_v26  ;;  %618 = vadd.xlane.f32.xlu1 %v617_v27 }
 0x43d   : > { %638 = vrot.lane.b32.xlu1 %v1595_v28, %s1840_s24 }
 0x441   : > { %750 = vrot.lane.b32.xlu1 %v1596_v29, %s1841_s20 }
 0x442   : > { %636 = vrot.lane.b32.xlu0 %v1594_v30, %s1840_s24 }
 0x445   : > { %752 = vrot.lane.b32.xlu1 %v1597_v31, %s1841_s20 }
 0x446   : > { %738 = vrot.lane.b32.xlu0 %v1598_v32, %s1841_s20 }
 0x449   : > { %740 = vrot.lane.b32.xlu1 %v1599_v33, %s1841_s20 }
 0x4b5   : > { %v613_v34 = vpop.xlane.xlu0 %612 }
 0x4b6   : > { %1626 = vrcp.f32 %v613_v34 }
 0x4b9   : > { %v619_v35 = vpop.xlane.xlu1 %618  ;;  %v616_v36 = vpop.xlane.xlu0 %615 }
 0x4ba   : > { %1628 = vrcp.f32 %v619_v35 }
 0x4bb   : > { %1630 = vrcp.f32 %v616_v36 }
 0x4bd   : > { %v637_v37 = vpop.permute.xlu0 %636  ;;  %v639_v38 = vpop.permute.xlu1 %638 }
 0x4be   : > { %1441 = vmatprep.subr.bf16.mxu0 %v637_v37  ;;  %v648_v39 = vsel %vm431_vm3, %v639_v38, 0 }
 0x4bf   : > { %1442 = vmatpush3.bf16.msra.mxu0 %v637_v37 }
 0x4c0   : > { %1486 = vmatprep.subr.msk.bf16.mxu0 %vm431_vm3, %v639_v38  ;;  %v1627_v41 = vpop.eup %1626 }
 0x4c1   : > { %v751_v40 = vpop.permute.xlu1 %750  ;;  %v623_v45 = vmul.f32 %v1627_v41, %v1621_v22  ;;  %v739_v50 = vpop.permute.xlu0 %738  ;;  %v1600_v22 = vld [vmem:[%s2124_s18] sm:$0xff]  }
 0x4c2   : > { %v761_v49 = vsel %vm319_vm0, %v751_v40, 0 }
 0x4c3   : > { %1444 = vmatpush3.bf16.msra.mxu0 %v648_v39 }
 0x4c4   : > { %v1629_v42 = vpop.eup %1628  ;;  %1487 = vmatprep.subr.msk.bf16.mxu0 %vm319_vm0, %v751_v40 }
 0x4c5   : > { %v1631_v43 = vpop.eup %1630  ;;  %v625_v44 = vmul.f32 %v1629_v42, %v1625_v25  ;;  %v753_v51 = vpop.permute.xlu1 %752  ;;  %v1605_v25 = vld [vmem:[%s2086_s22 + $0x8] ss:$0 sps:$4 sm:$0xff]  }
 0x4c6   : > { %v624_v46 = vmul.f32 %v1631_v43, %v1623_v24  ;;  %v764_v52 = vsel %vm319_vm0, %v753_v51, 0  ;;  %v1604_v24 = vld [vmem:[%s2086_s22] sm:$0xff]   ;;  %s1752_s22 = scalar_lea.vmem %s1751_s4, 384 }
 0x4c7   : > { %v627_v47 = vpack.c.bf16 %v625_v44, %v625_v44  ;;  %p1754_p1 = scmp.lt.s32.totalorder %s1752_s22, %s1746_s10 }
 0x4c8   : > { %v626_v48 = vpack.c.bf16 %v624_v46, %v623_v45 }
 0x4c9   : > { %v741_v53 = vpop.permute.xlu1 %740  ;;  %p1755_p6 = por %p1754_p1, %p1753_p12 }
 0x4ca   : > { %1445 = vmatprep.mubr.msk.bf16.mxu0 %vm380_vm2, %v626_v48 }
 0x4cb   : > { %1446 = vmatmul.mubr.msk.bf16.vlgmr.msra.gmra.mrb[4].mxu0 %vm380_vm2, %v627_v47  ;;  %p1756_p13 = pnand %p1755_p6, %p1749_p9 }
 0x4cc   : > { %1450 = vmatpush3.bf16.xpose.msra.mxu0 %v761_v49  ;;  %1453 = vmatprep.mubr.msk.bf16.mxu0 %vm319_vm0, %v739_v50 }
 0x4cd   : > { %1488 = vmatprep.subr.msk.bf16.mxu0 %vm319_vm0, %v753_v51 }
 0x4d4   : > { %1452 = vmatpush3.bf16.xpose.msra.mxu0 %v764_v52 }
 0x4db   : > { %1454 = vmatmul.mubr.msk.bf16.vlgmr.msra.gmra.mrb[8].mxu0 %vm319_vm0, %v741_v53 }
 0x59e   : > { %v2181_v54 = vpop.f32.mrb[4].mxu0 }
 0x59f   : > { %v2183_v55 = vpop.f32.mrb[5].mxu0 }
 0x5a0   : > { %v1448_v56 = vpop.f32.mrb[6].mxu0 }
 0x5a1   : > { %v2185_v57 = vpop.f32.mrb[7].mxu0 }
 0x5ae   : > { %v1455_v58 = vpop.f32.mrb[8].mxu0 }
 0x5af   : > { %v800_v59 = vpop.f32.mrb[9].mxu0  ;;  %v809_v63 = vadd.f32 %v1455_v58, %v2110_v9 }
 0x5b0   : > { %v801_v60 = vadd.f32 %v800_v59, %v2110_v9  ;;  %v1456_v61 = vpop.f32.mrb[10].mxu0 }
 0x5b1   : > { %v803_v62 = vpop.f32.mrb[11].mxu0  ;;  %v820_v3 = vsel %vm380_vm2, %v809_v63, -inf }
 0x5b2   : > { %v804_v0 = vadd.f32 %v803_v62, %v2110_v9  ;;  %v814_v1 = vsel %vm380_vm2, %v801_v60, -inf }
 0x5b3   : > { %815 = vmax.xlane.f32.xlu0 %v814_v1 }
 0x5b4   : > { %v817_v2 = vsel %vm380_vm2, %v804_v0, -inf }
 0x5b5   : > { %818 = vmax.xlane.f32.xlu1 %v817_v2 }
 0x5b7   : > { %821 = vmax.xlane.f32.xlu0 %v820_v3 }
 0x640   : > { %v816_v4 = vpop.xlane.xlu0 %815 }
 0x641   : > { %v823_v5 = vsub.f32 %v801_v60, %v816_v4 }
 0x642   : > { %v819_v6 = vpop.xlane.xlu1 %818 }
 0x643   : > { %v826_v7 = vmul.f32 1.442695, %v823_v5  ;;  %v824_v8 = vsub.f32 %v804_v0, %v819_v6 }
 0x644   : > { %v822_v10 = vpop.xlane.xlu0 %821 }
 0x645   : > { %1632 = vpow2.f32 %v826_v7  ;;  %v828_v11 = vmul.f32 1.442695, %v824_v8  ;;  %v825_v12 = vsub.f32 %v809_v63, %v822_v10 }
 0x647   : > { %1634 = vpow2.f32 %v828_v11  ;;  %v830_v13 = vmul.f32 1.442695, %v825_v12 }
 0x649   : > { %1636 = vpow2.f32 %v830_v13 }
 0x64f   : > { %v1633_v14 = vpop.eup %1632 }
 0x650   : > { %v832_v15 = vsel %vm380_vm2, %v1633_v14, 0.0 }
 0x651   : > { %v1635_v16 = vpop.eup %1634  ;;  %833 = vadd.xlane.f32.xlu0 %v832_v15  ;;  %v1607_v15 = vld [vmem:[%s2124_s18] sm:$0xff]  }
 0x652   : > { %v835_v18 = vsel %vm380_vm2, %v1635_v16, 0.0 }
 0x653   : > { %v1637_v17 = vpop.eup %1636 }
 0x654   : > { %v838_v19 = vsel %vm380_vm2, %v1637_v17, 0.0 }
 0x655   : > { %836 = vadd.xlane.f32.xlu0 %v835_v18  ;;  %839 = vadd.xlane.f32.xlu1 %v838_v19  ;;  %v1378_v18 = vpack.c.bf16 %v2181_v54, %v2181_v54 }
 0x666   : > { %859 = vrot.lane.b32.xlu1 %v1601_v20, %s1841_s20 }
 0x66a   : > { %971 = vrot.lane.b32.xlu1 %v1602_v21, %s1842_s5 }
 0x66b   : > { %857 = vrot.lane.b32.xlu0 %v1600_v22, %s1841_s20 }
 0x66e   : > { %973 = vrot.lane.b32.xlu1 %v1603_v23, %s1842_s5 }
 0x66f   : > { %959 = vrot.lane.b32.xlu0 %v1604_v24, %s1842_s5 }
 0x672   : > { %961 = vrot.lane.b32.xlu1 %v1605_v25, %s1842_s5 }
 0x6de   : > { %v834_v26 = vpop.xlane.xlu0 %833 }
 0x6df   : > { %1638 = vrcp.f32 %v834_v26 }
 0x6e2   : > { %v840_v27 = vpop.xlane.xlu1 %839  ;;  %v837_v28 = vpop.xlane.xlu0 %836 }
 0x6e3   : > { %1640 = vrcp.f32 %v840_v27 }
 0x6e4   : > { %1642 = vrcp.f32 %v837_v28 }
 0x6e6   : > { %v858_v29 = vpop.permute.xlu0 %857  ;;  %v860_v30 = vpop.permute.xlu1 %859 }
 0x6e7   : > { %1457 = vmatprep.subr.bf16.mxu1 %v858_v29  ;;  %v869_v31 = vsel %vm431_vm3, %v860_v30, 0 }
 0x6e8   : > { %1458 = vmatpush3.bf16.msra.mxu1 %v858_v29 }
 0x6e9   : > { %1489 = vmatprep.subr.msk.bf16.mxu1 %vm431_vm3, %v860_v30  ;;  %v1639_v33 = vpop.eup %1638 }
 0x6ea   : > { %v972_v32 = vpop.permute.xlu1 %971  ;;  %v844_v37 = vmul.f32 %v1639_v33, %v1633_v14  ;;  %v960_v42 = vpop.permute.xlu0 %959  ;;  %v1606_v14 = vld [vmem:[%s2124_s18 + $0x8] ss:$0 sps:$4 sm:$0xff]  }
 0x6eb   : > { %v982_v41 = vsel %vm319_vm0, %v972_v32, 0 }
 0x6ec   : > { %1460 = vmatpush3.bf16.msra.mxu1 %v869_v31 }
 0x6ed   : > { %v1641_v34 = vpop.eup %1640  ;;  %1490 = vmatprep.subr.msk.bf16.mxu1 %vm319_vm0, %v972_v32 }
 0x6ee   : > { %v1643_v35 = vpop.eup %1642  ;;  %v846_v36 = vmul.f32 %v1641_v34, %v1637_v17  ;;  %v974_v43 = vpop.permute.xlu1 %973  ;;  %v1377_v17 = vpack.c.bf16 %v2185_v57, %v2185_v57 }
 0x6ef   : > { %v845_v38 = vmul.f32 %v1643_v35, %v1635_v16  ;;  %v985_v44 = vsel %vm319_vm0, %v974_v43, 0  ;;  %v1376_v16 = vpack.c.bf16 %v2183_v55, %v2183_v55 }
 0x6f0   : > { %v848_v39 = vpack.c.bf16 %v846_v36, %v846_v36 }
 0x6f1   : > { %v847_v40 = vpack.c.bf16 %v845_v38, %v844_v37 }
 0x6f2   : > { %v962_v45 = vpop.permute.xlu1 %961 }
 0x6f3   : > { %1461 = vmatprep.mubr.msk.bf16.mxu1 %vm380_vm2, %v847_v40 }
 0x6f4   : > { %1462 = vmatmul.mubr.msk.bf16.vlgmr.msra.gmra.mrb[8].mxu1 %vm380_vm2, %v848_v39 }
 0x6f5   : > { %1466 = vmatpush3.bf16.xpose.msra.mxu1 %v982_v41  ;;  %1469 = vmatprep.mubr.msk.bf16.mxu1 %vm319_vm0, %v960_v42 }
 0x6f6   : > { %1491 = vmatprep.subr.msk.bf16.mxu1 %vm319_vm0, %v974_v43 }
 0x6fd   : > { %1468 = vmatpush3.bf16.xpose.msra.mxu1 %v985_v44 }
 0x704   : > { %1470 = vmatmul.mubr.msk.bf16.vlgmr.msra.gmra.mrb[12].mxu1 %vm319_vm0, %v962_v45 }
 0x7c7   : > { %v1463_v46 = vpop.f32.mrb[8].mxu1 }
 0x7c8   : > { %v905_v47 = vpop.f32.mrb[9].mxu1  ;;  %v1381_v21 = vpack.c.bf16 %v1463_v46, %v1463_v46 }
 0x7c9   : > { %v1464_v48 = vpop.f32.mrb[10].mxu1  ;;  %v1379_v19 = vpack.c.bf16 %v905_v47, %v905_v47 }
 0x7ca   : > { %v908_v49 = vpop.f32.mrb[11].mxu1 }
 0x7cb   : > { %v1380_v20 = vpack.c.bf16 %v908_v49, %v908_v49 }
 0x7d7   : > { %v1471_v50 = vpop.f32.mrb[12].mxu1 }
 0x7d8   : > { %v1021_v51 = vpop.f32.mrb[13].mxu1  ;;  %v1030_v58 = vadd.f32 %v1471_v50, %v2110_v9 }
 0x7d9   : > { %v1022_v52 = vadd.f32 %v1021_v51, %v2110_v9  ;;  %v1472_v53 = vpop.f32.mrb[14].mxu1 }
 0x7da   : > { %v1024_v56 = vpop.f32.mrb[15].mxu1  ;;  %v1041_v62 = vsel %vm380_vm2, %v1030_v58, -inf }
 0x7db   : > { %v1025_v59 = vadd.f32 %v1024_v56, %v2110_v9  ;;  %v1035_v60 = vsel %vm380_vm2, %v1022_v52, -inf }
 0x7dc   : > { %1036 = vmax.xlane.f32.xlu0 %v1035_v60 }
 0x7dd   : > { %v1038_v61 = vsel %vm380_vm2, %v1025_v59, -inf }
 0x7de   : > { %1039 = vmax.xlane.f32.xlu1 %v1038_v61 }
 0x7e0   : > { %1042 = vmax.xlane.f32.xlu0 %v1041_v62 }
 0x869   : > { %v1037_v63 = vpop.xlane.xlu0 %1036 }
 0x86a   : > { %v1044_v0 = vsub.f32 %v1022_v52, %v1037_v63 }
 0x86b   : > { %v1040_v1 = vpop.xlane.xlu1 %1039 }
 0x86c   : > { %v1047_v2 = vmul.f32 1.442695, %v1044_v0  ;;  %v1045_v3 = vsub.f32 %v1025_v59, %v1040_v1 }
 0x86d   : > { %v1043_v4 = vpop.xlane.xlu0 %1042 }
 0x86e   : > { %1644 = vpow2.f32 %v1047_v2  ;;  %v1049_v5 = vmul.f32 1.442695, %v1045_v3  ;;  %v1046_v9 = vsub.f32 %v1030_v58, %v1043_v4 }
 0x870   : > { %1646 = vpow2.f32 %v1049_v5  ;;  %v1051_v6 = vmul.f32 1.442695, %v1046_v9 }
 0x872   : > { %1648 = vpow2.f32 %v1051_v6 }
 0x878   : > { %v1645_v7 = vpop.eup %1644 }
 0x879   : > { %v1053_v8 = vsel %vm380_vm2, %v1645_v7, 0.0 }
 0x87a   : > { %v1647_v10 = vpop.eup %1646  ;;  %1054 = vadd.xlane.f32.xlu0 %v1053_v8 }
 0x87b   : > { %v1056_v12 = vsel %vm380_vm2, %v1647_v10, 0.0 }
 0x87c   : > { %v1649_v11 = vpop.eup %1648 }
 0x87d   : > { %v1059_v13 = vsel %vm380_vm2, %v1649_v11, 0.0 }
 0x87e   : > { %1057 = vadd.xlane.f32.xlu0 %v1056_v12  ;;  %1060 = vadd.xlane.f32.xlu1 %v1059_v13 }
 0x88f   : > { %1080 = vrot.lane.b32.xlu1 %v1606_v14, %s1842_s5 }
 0x893   : > { %708 = vrot.lane.b32.xlu1 %v1376_v16, %s1843_s7 }
 0x894   : > { %1078 = vrot.lane.b32.xlu0 %v1607_v15, %s1842_s5 }
 0x897   : > { %710 = vrot.lane.b32.xlu1 %v1377_v17, %s1843_s7 }
 0x898   : > { %712 = vrot.lane.b32.xlu0 %v1378_v18, %s1843_s7 }
 0x89b   : > { %929 = vrot.lane.b32.xlu1 %v1379_v19, %s1844_s30 }
 0x89c   : > { %931 = vrot.lane.b32.xlu0 %v1380_v20, %s1844_s30 }
 0x89f   : > { %933 = vrot.lane.b32.xlu1 %v1381_v21, %s1844_s30 }
 0x907   : > { %v1055_v55 = vpop.xlane.xlu0 %1054 }
 0x908   : > { %1650 = vrcp.f32 %v1055_v55 }
 0x90b   : > { %v1061_v22 = vpop.xlane.xlu1 %1060  ;;  %v1058_v23 = vpop.xlane.xlu0 %1057 }
 0x90c   : > { %1652 = vrcp.f32 %v1061_v22 }
 0x90d   : > { %1654 = vrcp.f32 %v1058_v23 }
 0x90f   : > { %v1081_v57 = vpop.permute.xlu1 %1080  ;;  %v1079_v24 = vpop.permute.xlu0 %1078 }
 0x910   : > { %1473 = vmatprep.subr.bf16.mxu0 %v1079_v24  ;;  %v1090_v54 = vsel %vm431_vm3, %v1081_v57, 0 }
 0x911   : > { %1474 = vmatpush3.bf16.msra.mxu0 %v1079_v24 }
 0x912   : > { %1492 = vmatprep.subr.msk.bf16.mxu0 %vm431_vm3, %v1081_v57  ;;  %v1651_v27 = vpop.eup %1650 }
 0x913   : > { %v709_v25 = vpop.permute.xlu1 %708  ;;  %v713_v26 = vpop.permute.xlu0 %712  ;;  %v1065_v33 = vmul.f32 %v1651_v27, %v1645_v7 }
 0x914   : > { %718 = vst.msk [vmem:[%s2145_s16] sm:$0xf] %vm717_vm5, %v709_v25  ;;  %720 = vst.msk [vmem:[%s2145_s16 + $0x8] sm:$0xf] %vm717_vm5, %v713_v26 }
 0x915   : > { %1476 = vmatpush3.bf16.msra.mxu0 %v1090_v54 }
 0x916   : > { %v1653_v28 = vpop.eup %1652 }
 0x917   : > { %v1655_v29 = vpop.eup %1654  ;;  %v1067_v30 = vmul.f32 %v1653_v28, %v1649_v11  ;;  %v711_v31 = vpop.permute.xlu1 %710 }
 0x918   : > { %v932_v32 = vpop.permute.xlu0 %931  ;;  %719 = vst.msk [vmem:[%s2145_s16 + $0x4] sm:$0xf] %vm717_vm5, %v711_v31  ;;  %v1066_v34 = vmul.f32 %v1655_v29, %v1647_v10 }
 0x919   : > { %940 = vst.msk [vmem:[%s2145_s16 + $0x4] sm:$0xf] %vm938_vm6, %v932_v32  ;;  %v1069_v35 = vpack.c.bf16 %v1067_v30, %v1067_v30 }
 0x91a   : > { %v1068_v36 = vpack.c.bf16 %v1066_v34, %v1065_v33 }
 0x91b   : > { %v930_v37 = vpop.permute.xlu1 %929 }
 0x91c   : > { %939 = vst.msk [vmem:[%s2145_s16] sm:$0xf] %vm938_vm6, %v930_v37  ;;  %1477 = vmatprep.mubr.msk.bf16.mxu0 %vm380_vm2, %v1068_v36 }
 0x91d   : > { %1478 = vmatmul.mubr.msk.bf16.vlgmr.msra.gmra.mrb[12].mxu0 %vm380_vm2, %v1069_v35 }
 0x91f   : > { %v934_v38 = vpop.permute.xlu1 %933 }
 0x920   : > { %941 = vst.msk [vmem:[%s2145_s16 + $0x8] sm:$0xf] %vm938_vm6, %v934_v38 }
 0x9f0   : > { %v1479_v39 = vpop.f32.mrb[12].mxu0 }
 0x9f1   : > { %v1126_v40 = vpop.f32.mrb[13].mxu0  ;;  %v1384_v45 = vpack.c.bf16 %v1479_v39, %v1479_v39 }
 0x9f2   : > { %v1382_v41 = vpack.c.bf16 %v1126_v40, %v1126_v40  ;;  %v1480_v42 = vpop.f32.mrb[14].mxu0 }
 0x9f3   : > { %v1129_v43 = vpop.f32.mrb[15].mxu0 }
 0x9f4   : > { %v1383_v44 = vpack.c.bf16 %v1129_v43, %v1129_v43  ;;  %1150 = vrot.lane.b32.xlu0 %v1382_v41, %s1845_s6 }
 0x9f6   : > { %1152 = vrot.lane.b32.xlu1 %v1383_v44, %s1845_s6 }
 0x9f8   : > { %1154 = vrot.lane.b32.xlu0 %v1384_v45, %s1845_s6 }
 0xa66   : > { %v1151_v46 = vpop.permute.xlu0 %1150 }
 0xa67   : > { %1160 = vst.msk [vmem:[%s2145_s16] sm:$0xf] %vm1159_vm7, %v1151_v46 }
 0xa68   : > { %v1153_v47 = vpop.permute.xlu1 %1152 }
 0xa69   : > { %1161 = vst.msk [vmem:[%s2145_s16 + $0x4] sm:$0xf] %vm1159_vm7, %v1153_v47 }
 0xa6a   : > { %v1155_v48 = vpop.permute.xlu0 %1154 }
 0xa6b   : > { %1162 = vst.msk [vmem:[%s2145_s16 + $0x8] sm:$0xf] %vm1159_vm7, %v1155_v48 }
 0xa6c   : > { %1759 = shalt.err (!%p1756_p13)
}
 0xa6d   : > { %s1760_s11 = scalar_lea.hbm %s2259_s29, 192  ;;  %s1764_s18 = scalar_lea.hbm %s2315_s3, 384 }
 0xa6e   : > { %p1761_p11 = scmp.ne.s32.totalorder %s2259_s29, %s1760_s11  ;;  %p1765_p7 = scmp.lt.u32.totalorder %s2259_s29, %s2315_s3 }
 0xa6f   : > { %p1766_p4 = scmp.lt.u32.totalorder %s1764_s18, %s1760_s11  ;;  %p1768_p0 = scmp.lt.u32.totalorder %s1760_s11, %s2259_s29 }
 0xa70   : > { %p1762_p2 = pnand %p1761_p11, %p2344_p10 }
 0xa71   : > { %p1767_p3 = por %p1766_p4, %p1765_p7 }
 0xa72   : > { %p1763_p5 = pneg %p1762_p2 }
 0xa73   : > { %p1769_p8 = por %p1768_p0, %p1767_p3 }
 0xa75   : > { %p1770_p9 = pnand %p1769_p8, %p1763_p5 }
 0xa77   : > { %1773 = shalt.err (!%p1770_p9)
}
 0xa78   : > { %s1847_s20 = smov 64   ;;  %s1848_s5 = smov 4  }
 0xa79   : > { %1507 = dma.vmem_to_hbm [thread:$0]  (%p2344_p10), %s2261_s26, 192, %s2259_s29, %s1164_s23, %s1847_s20, %s1847_s20, %s1848_s5  }
 0xa7a PF: > { %s1193_s7 = sand.u32 1, %s1812_s12   ;;  %p2345_p12 = scmp.ne.s32.totalorder %s2332_s27, 0 }
 0xa7b   : > { %p2346_p1 = scmp.ge.s32.totalorder %s1832_s17, 2  ;;  %s1194_s30 = scalar_lea.sflag [#allocation4], %s1193_s7 }
 0xa7d   : > { %p1520_p6 = pnand %p2346_p1, %p2345_p12 }
 0xa7f   : > { %1807 = dma.done.wait (!%p1520_p6), %s1194_s30, 192  }
 0xa80   : > { %1809 = vsyncadd (!%p1520_p6), %s1194_s30, 4294967104  ;;  %s22_s17 = sadd.s32 1, %s1832_s17   ;;  %s2347_s6 = sld [smem:[#allocation14_spill]] }
 0xa81   : > { %p19_p13 = scmp.ge.s32.totalorder %s22_s17, 4   ;;  %s2348_s15 = sld [smem:[#allocation12_spill]] }
 0xa82   : > { %s2349_s16 = sld [smem:[#allocation13_spill]]  ;;  %s2350_s12 = smov %s1816_s13 }
 0xa83   : > { %s2351_s13 = smov %s1820_s14  ;;  %21 = sbr.rel (!%p19_p13) target bundleno = 10 (0xa), region = 101 }
 0xa86   : > { %s2352_s14 = smov %s2347_s6 }
 0xa8a   :  { %1199 = vsyncpa [#allocation3], 1 }
 0xa8b   :  { %1201 = vsyncpa [#allocation3 + $0x1], 1 }
 0xa8c   :  { %1202 = vsyncpa [#allocation6], 1 }
 0xa8d   :  { %1204 = vsyncpa [#allocation6 + $0x1], 1 }
 0xa8e   :  { %1205 = vsyncpa [#allocation4], 1 }
 0xa8f   :  { %1207 = vsyncpa [#allocation4 + $0x1], 1 }

// kernel: _lambda_.21
= control target key start
LH: loop header
LB: loop body
LE: loop exit
PB: predicated region body
PF: predicated region fallthrough
CT: control target
= control target key end

     0   :  { %9 = vsyncpa [#allocation4], 0  ;;  %s650_s0 = inlined_call_operand.hbm [shape: bf16[48,128], index: 0, kind: input, shape index: {}]   ;;  %s651_s1 = inlined_call_operand.hbm [shape: bf16[128,32], index: 1, kind: input, shape index: {}]   ;;  %s652_s2 = inlined_call_operand.hbm [shape: f32[1,32], index: 2, kind: input, shape index: {}]   ;;  %s653_s3 = inlined_call_operand.hbm [shape: f32[48,32], index: 3, kind: input, shape index: {}]   ;;  %s654_s4 = inlined_call_operand.hbm [shape: f32[48,32], index: 4, kind: output, shape index: {}]  }
   0x1   :  { %10 = vsyncpa [#allocation7], 0 }
   0x2   :  { %11 = vsyncpa [#allocation10], 0 }
   0x3   :  { %12 = vsyncpa [#allocation5], 0  ;;  %s513_s15 = smov [#allocation6]   ;;  %s514_s17 = smov [#allocation3]  }
   0x4   :  { %s30_s16 = sshll.u32 %s513_s15, 4  ;;  %s18_s18 = sshll.u32 %s514_s17, 4  ;;  %s31_s16 = int_to_ptr.vmem [resolvable:$true] %s30_s16  ;;  %s549_s18 = int_to_ptr.vmem [resolvable:$true] %s18_s18 }
   0x5   :  { %s395_s21 = scalar_lea.hbm %s651_s1, 1024 }
   0x6   :  { %p396_p0 = scmp.ne.s32.totalorder %s651_s1, %s395_s21  ;;  %p399_p1 = scmp.lt.u32.totalorder %s395_s21, %s651_s1 }
   0x8   :  { %p401_p2 = pnand %p399_p1, %p396_p0 }
   0xa   :  { %404 = shalt.err (!%p401_p2)
}
   0xb   :  { %s405_s26 = scalar_lea.vmem %s31_s16, 1024  ;;  %p410_p4 = scmp.lt.s32.totalorder %s31_s16, %s31_s16 }
   0xc   :  { %p406_p3 = scmp.ne.s32.totalorder %s31_s16, %s405_s26  ;;  %p411_p5 = scmp.lt.s32.totalorder %s405_s26, %s405_s26 }
   0xe   :  { %p412_p6 = por %p411_p5, %p410_p4 }
  0x10   :  { %p413_p7 = pnand %p412_p6, %p406_p3 }
  0x12   :  { %416 = shalt.err (!%p413_p7)
}
  0x13   :  { %s515_s27 = smov 64   ;;  %s516_s28 = smov 4  }
  0x14   :  { %36 = dma.hbm_to_vmem [thread:$0]  %s651_s1, 1024, %s31_s16, [#allocation7], %s515_s27, %s515_s27, %s516_s28  }
  0x15   :  { %s417_s7 = scalar_lea.hbm %s650_s0, 384 }
  0x16   :  { %p418_p8 = scmp.ne.s32.totalorder %s650_s0, %s417_s7  ;;  %p421_p9 = scmp.lt.u32.totalorder %s417_s7, %s650_s0 }
  0x18   :  { %p423_p10 = pnand %p421_p9, %p418_p8 }
  0x1a   :  { %426 = shalt.err (!%p423_p10)
}
  0x1b   :  { %s427_s12 = scalar_lea.vmem %s549_s18, 384  ;;  %p432_p12 = scmp.lt.s32.totalorder %s549_s18, %s549_s18 }
  0x1c   :  { %p428_p11 = scmp.ne.s32.totalorder %s549_s18, %s427_s12  ;;  %p433_p13 = scmp.lt.s32.totalorder %s427_s12, %s427_s12 }
  0x1e   :  { %p434_p0 = por %p433_p13, %p432_p12 }
  0x20   :  { %p435_p1 = pnand %p434_p0, %p428_p11 }
  0x22   :  { %438 = shalt.err (!%p435_p1)
}
  0x23   :  { %24 = dma.hbm_to_vmem [thread:$0]  %s650_s0, 384, %s549_s18, [#allocation4], %s515_s27, %s515_s27, %s516_s28  }
  0x24   :  { %s517_s14 = smov [#allocation8]   ;;  %s518_s16 = smov [#allocation9]  }
  0x25   :  { %s43_s15 = sshll.u32 %s517_s14, 4  ;;  %s52_s17 = sshll.u32 %s518_s16, 4  ;;  %s44_s15 = int_to_ptr.vmem [resolvable:$true] %s43_s15  ;;  %s580_s17 = int_to_ptr.vmem [resolvable:$true] %s52_s17 }
  0x26   :  { %s439_s21 = scalar_lea.hbm %s652_s2, 16 }
  0x27   :  { %p440_p2 = scmp.ne.s32.totalorder %s652_s2, %s439_s21  ;;  %p443_p3 = scmp.lt.u32.totalorder %s439_s21, %s652_s2 }
  0x29   :  { %p445_p4 = pnand %p443_p3, %p440_p2 }
  0x2b   :  { %448 = shalt.err (!%p445_p4)
}
  0x2c   :  { %s449_s0 = scalar_lea.vmem %s44_s15, 16  ;;  %s453_s18 = scalar_lea.vmem %s44_s15, 32 }
  0x2d   :  { %p450_p5 = scmp.ne.s32.totalorder %s44_s15, %s449_s0  ;;  %p454_p6 = scmp.lt.s32.totalorder %s44_s15, %s44_s15 }
  0x2e   :  { %p455_p7 = scmp.lt.s32.totalorder %s453_s18, %s449_s0 }
  0x30   :  { %p456_p8 = por %p455_p7, %p454_p6 }
  0x32   :  { %p457_p9 = pnand %p456_p8, %p450_p5 }
  0x34   :  { %460 = shalt.err (!%p457_p9)
}
  0x35   :  { %46 = dma.hbm_to_vmem [thread:$0]  %s652_s2, 16, %s44_s15, [#allocation7]  }
  0x36   :  { %s461_s30 = scalar_lea.hbm %s653_s3, 768 }
  0x37   :  { %p462_p10 = scmp.ne.s32.totalorder %s653_s3, %s461_s30  ;;  %p465_p11 = scmp.lt.u32.totalorder %s461_s30, %s653_s3 }
  0x39   :  { %p467_p12 = pnand %p465_p11, %p462_p10 }
  0x3b   :  { %470 = shalt.err (!%p467_p12)
}
  0x3c   :  { %s471_s9 = scalar_lea.vmem %s580_s17, 768  ;;  %p476_p0 = scmp.lt.s32.totalorder %s580_s17, %s580_s17 }
  0x3d   :  { %p472_p13 = scmp.ne.s32.totalorder %s580_s17, %s471_s9  ;;  %p477_p1 = scmp.lt.s32.totalorder %s471_s9, %s471_s9 }
  0x3f   :  { %p478_p2 = por %p477_p1, %p476_p0 }
  0x41   :  { %p479_p3 = pnand %p478_p2, %p472_p13 }
  0x43   :  { %482 = shalt.err (!%p479_p3)
}
  0x44   :  { %s519_s2 = smov 128   ;;  %s520_s10 = smov 8  }
  0x45   :  { %58 = dma.hbm_to_vmem [thread:$0]  %s653_s3, 768, %s580_s17, [#allocation10], %s519_s2, %s519_s2, %s520_s10  }
  0x46   :  { %505 = dma.done.wait [#allocation4], 384  }
  0x47   :  { %506 = vsyncadd [#allocation4], 4294966912 }
  0x48   :  { %507 = dma.done.wait [#allocation7], 1040  }
  0x49   :  { %508 = vsyncadd [#allocation7], 4294966256 }
  0x4a   :  { %509 = dma.done.wait [#allocation10], 768  }
  0x4b   :  { %510 = vsyncadd [#allocation10], 4294966528  ;;  %vm76_vm0 = vcmask 261120   ;;  %v521_v0 = vmov 0.0   ;;  %vm522_vm1 = vmmov 0   ;;  %v384_v1 = vld [vmem:[#allocation6] sm:$0xff]  }
  0x4c   :  { %357 = vmatprep.subr.bf16.mxu1 %v521_v0  ;;  %329 = vmatprep.subr.bf16.mxu0 %v521_v0  ;;  %79 = vst.msk [vmem:[#allocation2 + $0x10] sm:$0xff] %vm76_vm0, %v521_v0  ;;  %77 = vst.msk [vmem:[#allocation2] sm:$0xff] %vm76_vm0, %v521_v0  ;;  %v385_v2 = vld [vmem:[#allocation6 + $0x8] sm:$0xff]   ;;  %v386_v3 = vld [vmem:[#allocation6 + $0x10] sm:$0xff]   ;;  %s523_s3 = smov [#allocation11]  }
  0x4d   :  { %78 = vst.msk [vmem:[#allocation2 + $0x8] sm:$0xff] %vm76_vm0, %v521_v0  ;;  %80 = vst.msk [vmem:[#allocation2 + $0x18] sm:$0xff] %vm76_vm0, %v521_v0  ;;  %349 = vmatprep.mubr.msk.bf16.mxu1 %vm522_vm1, %v521_v0  ;;  %345 = vmatprep.mubr.msk.bf16.mxu0 %vm522_vm1, %v521_v0  ;;  %v387_v4 = vld [vmem:[#allocation6 + $0x18] sm:$0xff]   ;;  %v388_v5 = vld [vmem:[#allocation6 + $0x20] sm:$0xff]   ;;  %s292_s1 = sshll.u32 %s523_s3, 4  ;;  %s293_s1 = int_to_ptr.vmem [resolvable:$true] %s292_s1 }
  0x4e   :  { %81 = vst.msk [vmem:[#allocation2 + $0x20] sm:$0xff] %vm76_vm0, %v521_v0  ;;  %82 = vst.msk [vmem:[#allocation2 + $0x28] sm:$0xff] %vm76_vm0, %v521_v0  ;;  %365 = vmatpush3.bf16.msra.mxu1 %v384_v1  ;;  %330 = vmatpush3.bf16.msra.mxu0 %v384_v1  ;;  %v389_v6 = vld [vmem:[#allocation6 + $0x28] sm:$0xff]   ;;  %v390_v7 = vld [vmem:[#allocation6 + $0x30] sm:$0xff]   ;;  %s483_s13 = scalar_lea.vmem %s293_s1, 768  ;;  %p488_p5 = scmp.lt.s32.totalorder %s293_s1, %s293_s1 }
  0x4f   :  { %358 = vmatprep.subr.bf16.mxu1 %v521_v0  ;;  %331 = vmatprep.subr.bf16.mxu0 %v521_v0  ;;  %v391_v8 = vld [vmem:[#allocation6 + $0x38] sm:$0xff]   ;;  %v392_v9 = vld [vmem:[#allocation3 + $0x8] sm:$0xff]   ;;  %v393_v10 = vld [vmem:[#allocation3] sm:$0xff]   ;;  %p484_p4 = scmp.ne.s32.totalorder %s293_s1, %s483_s13  ;;  %p489_p6 = scmp.lt.s32.totalorder %s483_s13, %s483_s13 }
  0x50   :  { %v394_v11 = vld [vmem:[#allocation3 + $0x10] sm:$0xff]   ;;  %v317_v31 = vld [vmem:[#allocation8] ss:$0 sm:$0xff]  ;;  %v269_v38 = vld [vmem:[#allocation9] sm:$0xff] }
  0x51   :  { %v271_v34 = vld [vmem:[#allocation9 + $0x10] sm:$0xff]  ;;  %v272_v43 = vld [vmem:[#allocation9 + $0x18] sm:$0xff]  ;;  %v270_v46 = vld [vmem:[#allocation9 + $0x8] sm:$0xff]  ;;  %p490_p7 = por %p489_p6, %p488_p5 }
  0x52   :  { %366 = vmatpush3.bf16.msra.mxu1 %v385_v2  ;;  %332 = vmatpush3.bf16.msra.mxu0 %v385_v2  ;;  %v273_v54 = vld [vmem:[#allocation9 + $0x20] sm:$0xff]  ;;  %v274_v57 = vld [vmem:[#allocation9 + $0x28] sm:$0xff] }
  0x53   :  { %359 = vmatprep.subr.bf16.mxu1 %v521_v0  ;;  %333 = vmatprep.subr.bf16.mxu0 %v521_v0  ;;  %v91_v12 = vld [vmem:[#allocation2 + $0x10] sm:$0xff]  ;;  %v89_v13 = vld [vmem:[#allocation2] sm:$0xff]  ;;  %p491_p8 = pnand %p490_p7, %p484_p4 }
  0x54   :  { %v92_v15 = vld [vmem:[#allocation2 + $0x18] sm:$0xff]  ;;  %v90_v17 = vld [vmem:[#allocation2 + $0x8] sm:$0xff] }
  0x55   :  { %v93_v28 = vld [vmem:[#allocation2 + $0x20] sm:$0xff]  ;;  %v94_v30 = vld [vmem:[#allocation2 + $0x28] sm:$0xff] }
  0x56   :  { %367 = vmatpush3.bf16.msra.mxu1 %v386_v3  ;;  %334 = vmatpush3.bf16.msra.mxu0 %v386_v3 }
  0x57   :  { %360 = vmatprep.subr.bf16.mxu1 %v521_v0  ;;  %335 = vmatprep.subr.bf16.mxu0 %v521_v0 }
  0x5a   :  { %368 = vmatpush3.bf16.msra.mxu1 %v387_v4  ;;  %336 = vmatpush3.bf16.msra.mxu0 %v387_v4 }
  0x5b   :  { %361 = vmatprep.subr.bf16.mxu1 %v521_v0  ;;  %337 = vmatprep.subr.bf16.mxu0 %v521_v0 }
  0x5e   :  { %369 = vmatpush3.bf16.msra.mxu1 %v388_v5  ;;  %338 = vmatpush3.bf16.msra.mxu0 %v388_v5 }
  0x5f   :  { %362 = vmatprep.subr.bf16.mxu1 %v521_v0  ;;  %339 = vmatprep.subr.bf16.mxu0 %v521_v0 }
  0x62   :  { %370 = vmatpush3.bf16.msra.mxu1 %v389_v6  ;;  %340 = vmatpush3.bf16.msra.mxu0 %v389_v6 }
  0x63   :  { %363 = vmatprep.subr.bf16.mxu1 %v521_v0  ;;  %341 = vmatprep.subr.bf16.mxu0 %v521_v0 }
  0x66   :  { %371 = vmatpush3.bf16.msra.mxu1 %v390_v7  ;;  %342 = vmatpush3.bf16.msra.mxu0 %v390_v7 }
  0x67   :  { %364 = vmatprep.subr.bf16.mxu1 %v521_v0  ;;  %343 = vmatprep.subr.bf16.mxu0 %v521_v0 }
  0x6a   :  { %372 = vmatpush3.bf16.msra.mxu1 %v391_v8  ;;  %344 = vmatpush3.bf16.msra.mxu0 %v391_v8 }
  0x6d   :  { %350 = vmatmul.mubr.bf16.vlgmr.msra.gmra.mrb[0].mxu1 %v392_v9  ;;  %346 = vmatmul.mubr.bf16.vlgmr.msra.gmra.mrb[0].mxu0 %v393_v10 }
  0x6e   :  { %353 = vmatprep.mubr.msk.bf16.mxu1 %vm522_vm1, %v521_v0 }
  0x75   :  { %354 = vmatmul.mubr.bf16.gmra.mrb[4].mxu1 %v394_v11 }
 0x140   :  { %v219_v14 = vpop.f32.mrb[0].mxu1  ;;  %v211_v16 = vpop.f32.mrb[0].mxu0 }
 0x141   :  { %v236_v18 = vadd.f32 %v219_v14, %v91_v12  ;;  %v351_v19 = vpop.f32.mrb[1].mxu1  ;;  %v234_v20 = vadd.f32 %v211_v16, %v89_v13  ;;  %v347_v21 = vpop.f32.mrb[1].mxu0 }
 0x142   :  { %v222_v22 = vpop.f32.mrb[2].mxu1  ;;  %v214_v23 = vpop.f32.mrb[2].mxu0 }
 0x143   :  { %243 = vst.msk [vmem:[#allocation2 + $0x10] sm:$0xff] %vm76_vm0, %v236_v18  ;;  %v237_v24 = vadd.f32 %v222_v22, %v92_v15  ;;  %v352_v25 = vpop.f32.mrb[3].mxu1  ;;  %241 = vst.msk [vmem:[#allocation2] sm:$0xff] %vm76_vm0, %v234_v20  ;;  %v235_v26 = vadd.f32 %v214_v23, %v90_v17  ;;  %v348_v27 = vpop.f32.mrb[3].mxu0 }
 0x145   :  { %244 = vst.msk [vmem:[#allocation2 + $0x18] sm:$0xff] %vm76_vm0, %v237_v24  ;;  %242 = vst.msk [vmem:[#allocation2 + $0x8] sm:$0xff] %vm76_vm0, %v235_v26 }
 0x148   :  { %v227_v29 = vpop.f32.mrb[4].mxu1 }
 0x149   :  { %v238_v32 = vadd.f32 %v227_v29, %v93_v28  ;;  %v355_v33 = vpop.f32.mrb[5].mxu1 }
 0x14a   :  { %v230_v35 = vpop.f32.mrb[6].mxu1  ;;  %v250_v36 = vld [vmem:[#allocation2] sm:$0xff]  ;;  %v252_v37 = vld [vmem:[#allocation2 + $0x10] sm:$0xff] }
 0x14b   :  { %245 = vst.msk [vmem:[#allocation2 + $0x20] sm:$0xff] %vm76_vm0, %v238_v32  ;;  %v239_v39 = vadd.f32 %v230_v35, %v94_v30  ;;  %v356_v40 = vpop.f32.mrb[7].mxu1  ;;  %v263_v41 = vadd.f32 %v317_v31, %v250_v36  ;;  %v265_v42 = vadd.f32 %v317_v31, %v252_v37 }
 0x14c   :  { %v251_v44 = vld [vmem:[#allocation2 + $0x8] sm:$0xff]  ;;  %v253_v45 = vld [vmem:[#allocation2 + $0x18] sm:$0xff] }
 0x14d   :  { %246 = vst.msk [vmem:[#allocation2 + $0x28] sm:$0xff] %vm76_vm0, %v239_v39  ;;  %v264_v47 = vadd.f32 %v317_v31, %v251_v44  ;;  %v266_v48 = vadd.f32 %v317_v31, %v253_v45  ;;  %v275_v49 = vadd.f32 %v269_v38, %v263_v41  ;;  %v277_v50 = vadd.f32 %v271_v34, %v265_v42 }
 0x14f   :  { %v276_v51 = vadd.f32 %v270_v46, %v264_v47  ;;  %v278_v52 = vadd.f32 %v272_v43, %v266_v48  ;;  %281 = vst.msk [vmem:[#allocation11] sm:$0xff] %vm76_vm0, %v275_v49  ;;  %283 = vst.msk [vmem:[#allocation11 + $0x10] sm:$0xff] %vm76_vm0, %v277_v50 }
 0x151   :  { %282 = vst.msk [vmem:[#allocation11 + $0x8] sm:$0xff] %vm76_vm0, %v276_v51  ;;  %284 = vst.msk [vmem:[#allocation11 + $0x18] sm:$0xff] %vm76_vm0, %v278_v52 }
 0x152   :  { %v254_v53 = vld [vmem:[#allocation2 + $0x20] sm:$0xff] }
 0x153   :  { %v267_v55 = vadd.f32 %v317_v31, %v254_v53 }
 0x154   :  { %v255_v56 = vld [vmem:[#allocation2 + $0x28] sm:$0xff] }
 0x155   :  { %v268_v58 = vadd.f32 %v317_v31, %v255_v56  ;;  %v279_v59 = vadd.f32 %v273_v54, %v267_v55 }
 0x157   :  { %v280_v60 = vadd.f32 %v274_v57, %v268_v58  ;;  %285 = vst.msk [vmem:[#allocation11 + $0x20] sm:$0xff] %vm76_vm0, %v279_v59 }
 0x159   :  { %286 = vst.msk [vmem:[#allocation11 + $0x28] sm:$0xff] %vm76_vm0, %v280_v60 }
 0x15a   :  { %494 = shalt.err (!%p491_p8)
}
 0x15b   :  { %s495_s16 = scalar_lea.hbm %s654_s4, 768 }
 0x15c   :  { %p496_p9 = scmp.ne.s32.totalorder %s654_s4, %s495_s16  ;;  %p499_p10 = scmp.lt.u32.totalorder %s495_s16, %s654_s4 }
 0x15e   :  { %p501_p11 = pnand %p499_p10, %p496_p9 }
 0x160   :  { %504 = shalt.err (!%p501_p11)
}
 0x161   :  { %298 = dma.vmem_to_hbm [thread:$0]  %s293_s1, 768, %s654_s4, [#allocation5], %s519_s2, %s519_s2, %s520_s10  }
 0x162   :  { %511 = dma.done.wait [#allocation5], 768  }
 0x163   :  { %512 = vsyncadd [#allocation5], 4294966528 }
 0x164   :  { %302 = vsyncpa [#allocation4], 1 }
 0x165   :  { %303 = vsyncpa [#allocation7], 1 }
 0x166   :  { %304 = vsyncpa [#allocation10], 1 }
 0x167   :  { %305 = vsyncpa [#allocation5], 1 }

// kernel: _lambda_.27
= control target key start
LH: loop header
LB: loop body
LE: loop exit
PB: predicated region body
PF: predicated region fallthrough
CT: control target
= control target key end

     0   :  { %9 = vsyncpa [#allocation3], 0  ;;  %s281_s0 = inlined_call_operand.vmem [shape: f32[2,32], index: 0, kind: input, shape index: {}]   ;;  %s282_s1 = inlined_call_operand.vmem [shape: f32[1,32], index: 1, kind: input, shape index: {}]   ;;  %s283_s2 = inlined_call_operand.vmem [shape: f32[1,32], index: 2, kind: input, shape index: {}]   ;;  %s284_s3 = inlined_call_operand.hbm [shape: bf16[32,64], index: 3, kind: input, shape index: {}]   ;;  %s285_s4 = inlined_call_operand.hbm [shape: f32[2,64], index: 4, kind: output, shape index: {}]  }
   0x1   :  { %10 = vsyncpa [#allocation4], 0  ;;  %s217_s15 = smov [#allocation2]   ;;  %s169_s19 = scalar_lea.hbm %s284_s3, 256 }
   0x2   :  { %s22_s16 = sshll.u32 %s217_s15, 4  ;;  %p170_p0 = scmp.ne.s32.totalorder %s284_s3, %s169_s19  ;;  %s23_s16 = int_to_ptr.vmem [resolvable:$true] %s22_s16 }
   0x3   :  { %p173_p1 = scmp.lt.u32.totalorder %s169_s19, %s284_s3 }
   0x5   :  { %p175_p2 = pnand %p173_p1, %p170_p0 }
   0x7   :  { %178 = shalt.err (!%p175_p2)
}
   0x8   :  { %s179_s24 = scalar_lea.vmem %s23_s16, 256  ;;  %p184_p4 = scmp.lt.s32.totalorder %s23_s16, %s23_s16 }
   0x9   :  { %p180_p3 = scmp.ne.s32.totalorder %s23_s16, %s179_s24  ;;  %p185_p5 = scmp.lt.s32.totalorder %s179_s24, %s179_s24 }
   0xb   :  { %p186_p6 = por %p185_p5, %p184_p4 }
   0xd   :  { %p187_p7 = pnand %p186_p6, %p180_p3 }
   0xf   :  { %190 = shalt.err (!%p187_p7)
}
  0x10   :  { %s218_s25 = smov 64   ;;  %s219_s26 = smov 4  }
  0x11   :  { %28 = dma.hbm_to_vmem [thread:$0]  %s284_s3, 256, %s23_s16, [#allocation3], %s218_s25, %s218_s25, %s219_s26  }
  0x12   :  { %213 = dma.done.wait [#allocation3], 256  }
  0x13   :  { %214 = vsyncadd [#allocation3], 4294967040  ;;  %vm34_vm0 = vcmask 254976   ;;  %v33_v0 = vld [vmem:[%s281_s0] sm:$0x3]  ;;  %v220_v8 = vmov 0.0  }
  0x14   :  { %v35_v1 = vsel %vm34_vm0, %v33_v0, 0.0  ;;  %v165_v7 = vld [vmem:[#allocation2] sm:$0xff]   ;;  %151 = vmatprep.subr.bf16.mxu0 %v220_v8  ;;  %v166_v9 = vld [vmem:[#allocation2 + $0x8] sm:$0xff]   ;;  %vm221_vm1 = vmmov 0   ;;  %vm82_vm2 = vcmask 261120   ;;  %s222_s7 = smov [#allocation5]  }
  0x15   :  { %36 = vadd.xlane.f32.xlu0 %v35_v1  ;;  %152 = vmatpush3.bf16.msra.mxu0 %v165_v7  ;;  %v143_v14 = vld [vmem:[%s282_s1] ss:$0 sm:$0xff]  ;;  %s134_s8 = sshll.u32 %s222_s7, 4  ;;  %vm126_vm3 = vcmask 517120   ;;  %s135_s8 = int_to_ptr.vmem [resolvable:$true] %s134_s8 }
  0x16   :  { %155 = vmatprep.mubr.msk.bf16.mxu0 %vm221_vm1, %v220_v8  ;;  %153 = vmatprep.subr.bf16.mxu0 %v220_v8  ;;  %v144_v16 = vld [vmem:[%s283_s2] ss:$0 sm:$0xff]  ;;  %s191_s9 = scalar_lea.vmem %s135_s8, 32  ;;  %p196_p9 = scmp.lt.s32.totalorder %s135_s8, %s135_s8 }
  0x17   :  { %p192_p8 = scmp.ne.s32.totalorder %s135_s8, %s191_s9  ;;  %p197_p10 = scmp.lt.s32.totalorder %s191_s9, %s191_s9 }
  0x19   :  { %154 = vmatpush3.bf16.msra.mxu0 %v166_v9  ;;  %p198_p11 = por %p197_p10, %p196_p9 }
  0x1b   :  { %p199_p12 = pnand %p198_p11, %p192_p8 }
  0xa2   :  { %v37_v2 = vpop.xlane.xlu0 %36 }
  0xa3   :  { %v39_v3 = vmul.f32 0.03125, %v37_v2 }
  0xa5   :  { %v40_v4 = vsub.f32 %v33_v0, %v39_v3 }
  0xa7   :  { %v41_v5 = vmul.f32 %v40_v4, %v40_v4 }
  0xa9   :  { %v42_v6 = vsel %vm34_vm0, %v41_v5, 0.0 }
  0xaa   :  { %43 = vadd.xlane.f32.xlu0 %v42_v6 }
 0x137   :  { %v44_v10 = vpop.xlane.xlu0 %43 }
 0x138   :  { %v45_v11 = vmul.f32 0.03125, %v44_v10 }
 0x13a   :  { %v46_v12 = vadd.f32 1e-05, %v45_v11 }
 0x13c   :  { %167 = vrsqrt.f32 %v46_v12 }
 0x146   :  { %v168_v13 = vpop.eup %167 }
 0x147   :  { %v48_v15 = vmul.f32 %v168_v13, %v40_v4 }
 0x149   :  { %v56_v17 = vmul.f32 %v143_v14, %v48_v15 }
 0x14b   :  { %v64_v18 = vadd.f32 %v144_v16, %v56_v17 }
 0x14d   :  { %v65_v19 = vpack.c.bf16 %v64_v18, %v64_v18 }
 0x14f   :  { %156 = vmatmul.mubr.msk.bf16.vlgmr.msra.gmra.mrb[0].mxu0 %vm82_vm2, %v65_v19 }
 0x222   :  { %v120_v20 = vpop.f32.mrb[0].mxu0 }
 0x223   :  { %v157_v21 = vpop.f32.mrb[1].mxu0  ;;  %127 = vst.msk [vmem:[#allocation5] sm:$0x3] %vm126_vm3, %v120_v20 }
 0x224   :  { %v123_v22 = vpop.f32.mrb[2].mxu0 }
 0x225   :  { %202 = shalt.err (!%p199_p12)
}
 0x226   :  { %s203_s10 = scalar_lea.hbm %s285_s4, 32 }
 0x227   :  { %p204_p13 = scmp.ne.s32.totalorder %s285_s4, %s203_s10  ;;  %p207_p0 = scmp.lt.u32.totalorder %s203_s10, %s285_s4 }
 0x229   :  { %p209_p1 = pnand %p207_p0, %p204_p13 }
 0x22b   :  { %212 = shalt.err (!%p209_p1)
}
 0x22c   :  { %137 = dma.vmem_to_hbm [thread:$0]  %s135_s8, 32, %s285_s4, [#allocation4]   ;;  %v158_v23 = vpop.f32.mrb[3].mxu0 }
 0x22d   :  { %215 = dma.done.wait [#allocation4], 32  }
 0x22e   :  { %216 = vsyncadd [#allocation4], 4294967264 }
 0x22f   :  { %141 = vsyncpa [#allocation3], 1 }
 0x230   :  { %142 = vsyncpa [#allocation4], 1 }

</bundles_post_ra>
